<compile_context>
chip_gen: v7x
topology: tpu7x:2x2x1
jax: 0.10.0
libtpu: 0.0.40
codegen_flags: <defaults>
</compile_context>

<pallas_src>
import jax
import jax.numpy as jnp
import numpy as np
from jax import lax
from jax.experimental import pallas as pl
from jax.experimental.pallas import tpu as pltpu

ALIGN = 256            # v6e/v7x MXU is 2x256x256; 128 would half-fill it.
BF16 = jnp.bfloat16


def _round_up(x, m):
    return ((x + m - 1) // m) * m


def _pad2d(a, rows, cols):
    r, c = a.shape
    if r == rows and c == cols:
        return a
    return jnp.pad(a, ((0, rows - r), (0, cols - c)))


def _pick_tile(n, candidates):
    for t in candidates:
        if t <= n and n % t == 0:
            return t
    return n


def _compiler_params(semantics, buffer_bytes):
    # ~2x for double-buffered pipelining + headroom; floor above the 16/32 MiB
    # scoped defaults, cap below v7x's 64 MiB physical VMEM.
    limit = int(min(max(2 * buffer_bytes + (8 << 20), 32 << 20), 56 << 20))
    return pltpu.CompilerParams(dimension_semantics=semantics,
                                vmem_limit_bytes=limit)


# ---------------------------------------------------------------------------
# Kernels
# ---------------------------------------------------------------------------
def _feat_matmul_kernel(h_ref, w_ref, hw_ref):
    # HW = H @ W  (bf16 operands, f32 accumulation, bf16 store)
    hw_ref[...] = jnp.dot(h_ref[...], w_ref[...],
                          preferred_element_type=jnp.float32).astype(hw_ref.dtype)


def _propagate_relu_kernel(adj_ref, hw_ref, out_ref):
    acc = jnp.dot(adj_ref[...], hw_ref[...], preferred_element_type=jnp.float32)
    out_ref[...] = jnp.maximum(acc, 0.0).astype(out_ref.dtype)


def _propagate_id_kernel(adj_ref, hw_ref, out_ref):
    acc = jnp.dot(adj_ref[...], hw_ref[...], preferred_element_type=jnp.float32)
    out_ref[...] = acc.astype(out_ref.dtype)


def _propagate_final_kernel(adj_ref, hw_ref, zf32_ref, zbf16_ref):
    # Last layer: emit Z in f32 (API return) and bf16 (decode feed) at once.
    acc = jnp.dot(adj_ref[...], hw_ref[...], preferred_element_type=jnp.float32)
    zf32_ref[...] = acc
    zbf16_ref[...] = acc.astype(zbf16_ref.dtype)


def _decode_kernel(zi_ref, zj_ref, a_ref):
    # logits tile = Z_i @ Z_j^T via dot_general contracting dim 1 of both
    # (no transpose/relayout of Z), then sigmoid.
    logits = lax.dot_general(zi_ref[...], zj_ref[...],
                             dimension_numbers=(((1,), (1,)), ((), ())),
                             preferred_element_type=jnp.float32)
    a_ref[...] = jax.nn.sigmoid(logits).astype(a_ref.dtype)


# ---------------------------------------------------------------------------
# Per-layer wrappers
# ---------------------------------------------------------------------------
def _feat_matmul(h_bf, w_bf, tm):
    n_pad, d_in = h_bf.shape
    d_out = w_bf.shape[1]
    buf_bytes = (tm * d_in + d_in * d_out + tm * d_out) * 2
    return pl.pallas_call(
        _feat_matmul_kernel,
        out_shape=jax.ShapeDtypeStruct((n_pad, d_out), BF16),
        grid=(n_pad // tm,),
        in_specs=[pl.BlockSpec((tm, d_in), lambda i: (i, 0)),      # H rows
                  pl.BlockSpec((d_in, d_out), lambda i: (0, 0))],  # W resident
        out_specs=pl.BlockSpec((tm, d_out), lambda i: (i, 0)),
        compiler_params=_compiler_params(("parallel",), buf_bytes),
    )(h_bf, w_bf)


def _propagate(adj_bf, hw_bf, tm, *, relu, emit_f32):
    n_pad = adj_bf.shape[0]
    h = hw_bf.shape[1]
    if emit_f32:
        kernel = _propagate_final_kernel
        out_shape = (jax.ShapeDtypeStruct((n_pad, h), jnp.float32),
                     jax.ShapeDtypeStruct((n_pad, h), BF16))
        out_specs = (pl.BlockSpec((tm, h), lambda i: (i, 0)),
                     pl.BlockSpec((tm, h), lambda i: (i, 0)))
        out_bytes = tm * h * (4 + 2)
    else:
        kernel = _propagate_relu_kernel if relu else _propagate_id_kernel
        out_shape = jax.ShapeDtypeStruct((n_pad, h), BF16)
        out_specs = pl.BlockSpec((tm, h), lambda i: (i, 0))
        out_bytes = tm * h * 2
    buf_bytes = (tm * n_pad + n_pad * h) * 2 + out_bytes
    return pl.pallas_call(
        kernel,
        out_shape=out_shape,
        grid=(n_pad // tm,),
        in_specs=[pl.BlockSpec((tm, n_pad), lambda i: (i, 0)),   # adj row stripe
                  pl.BlockSpec((n_pad, h), lambda i: (0, 0))],   # HW resident
        out_specs=out_specs,
        compiler_params=_compiler_params(("parallel",), buf_bytes),
    )(adj_bf, hw_bf)


def _decode(z_bf):
    n_pad, h3p = z_bf.shape
    tm = _pick_tile(n_pad, (512, 256))
    tn = _pick_tile(n_pad, (1024, 512, 256))
    buf_bytes = (tm * h3p + tn * h3p) * 2 + tm * tn * 4
    return pl.pallas_call(
        _decode_kernel,
        out_shape=jax.ShapeDtypeStruct((n_pad, n_pad), jnp.float32),
        grid=(n_pad // tm, n_pad // tn),
        in_specs=[pl.BlockSpec((tm, h3p), lambda i, j: (i, 0)),   # Z rows tile i
                  pl.BlockSpec((tn, h3p), lambda i, j: (j, 0))],  # Z rows tile j
        out_specs=pl.BlockSpec((tm, tn), lambda i, j: (i, j)),
        compiler_params=_compiler_params(("parallel", "parallel"), buf_bytes),
    )(z_bf, z_bf)


# ---------------------------------------------------------------------------
# Full forward: pad to 256-aligned MXU-friendly shapes, run 3 row-tiled GCN
# layers + tiled decode, slice the padding back off.
# ---------------------------------------------------------------------------
def gae_forward(adj, x, w0, w1, w2):
    n, d_in = x.shape
    h1d, h2d, h3d = w0.shape[1], w1.shape[1], w2.shape[1]

    n_pad = _round_up(n, ALIGN)
    d_pad = _round_up(d_in, ALIGN)
    h1p = _round_up(h1d, ALIGN)
    h2p = _round_up(h2d, ALIGN)
    h3p = _round_up(h3d, ALIGN)

    adj_bf = _pad2d(adj, n_pad, n_pad).astype(BF16)
    x_bf = _pad2d(x, n_pad, d_pad).astype(BF16)
    w0_bf = _pad2d(w0, d_pad, h1p).astype(BF16)
    w1_bf = _pad2d(w1, h1p, h2p).astype(BF16)
    w2_bf = _pad2d(w2, h2p, h3p).astype(BF16)

    tm = _pick_tile(n_pad, (512, 256))

    # base_gcn: relu(adj @ (X @ W0))
    h1 = _propagate(adj_bf, _feat_matmul(x_bf, w0_bf, tm), tm,
                    relu=True, emit_f32=False)
    # gcn_mean_1 (identity activation)
    h2 = _propagate(adj_bf, _feat_matmul(h1, w1_bf, tm), tm,
                    relu=False, emit_f32=False)
    # gcn_mean (identity activation) -> Z (f32 for API, bf16 for decode)
    z_f32, z_bf = _propagate(adj_bf, _feat_matmul(h2, w2_bf, tm), tm,
                             relu=False, emit_f32=True)

    # dot-product decode: sigmoid(Z Z^T)
    a_pred_pad = _decode(z_bf)

    return a_pred_pad[:n, :n], z_f32[:n, :h3d]


# ---------------------------------------------------------------------------
# Deterministic parameter init (glorot_init equivalent: uniform +/- range)
# ---------------------------------------------------------------------------
def glorot_init(key, input_dim, output_dim):
    init_range = np.sqrt(6.0 / (input_dim + output_dim))
    return jax.random.uniform(key, (input_dim, output_dim),
                              dtype=jnp.float32,
                              minval=-init_range, maxval=init_range)


# ---------------------------------------------------------------------------
# Pure-JAX reference mirroring the kernel's precision (bf16 operands,
# f32 accumulation) for validation.
# ---------------------------------------------------------------------------
def gae_forward_ref(adj, x, w0, w1, w2):
    bf = jnp.bfloat16

    def dot(a, b):
        return jnp.dot(a.astype(bf), b.astype(bf),
                       preferred_element_type=jnp.float32)

    h1 = jnp.maximum(dot(adj, dot(x, w0)), 0.0)
    h2 = dot(adj, dot(h1, w1))
    z = dot(adj, dot(h2, w2))
    logits = lax.dot_general(z.astype(bf), z.astype(bf),
                             dimension_numbers=(((1,), (1,)), ((), ())),
                             preferred_element_type=jnp.float32)
    return jax.nn.sigmoid(logits), z


if __name__ == "__main__":
    # Small graph: N nodes, feature dims matching GAE's three GCN layers.
    N = 64
    input_dim = 32
    hidden1 = 32
    hidden2 = 16
    hidden3 = 16

    key = jax.random.PRNGKey(0)
    k_x, k_adj, k_w0, k_w1, k_w2 = jax.random.split(key, 5)

    X = jax.random.normal(k_x, (N, input_dim), dtype=jnp.float32)

    # Symmetric, row-normalized dense adjacency (stands in for the sparse adj).
    A = (jax.random.uniform(k_adj, (N, N)) < 0.1).astype(jnp.float32)
    A = jnp.maximum(A, A.T) + jnp.eye(N, dtype=jnp.float32)
    deg = jnp.sum(A, axis=1, keepdims=True)
    adj = A / deg

    W0 = glorot_init(k_w0, input_dim, hidden1)
    W1 = glorot_init(k_w1, hidden1, hidden2)
    W2 = glorot_init(k_w2, hidden2, hidden3)

    fwd = jax.jit(gae_forward)
    a_pred, z = fwd(adj, X, W0, W1, W2)
    a_pred, z = jax.block_until_ready((a_pred, z))

    a_ref, z_ref = gae_forward_ref(adj, X, W0, W1, W2)
    np.testing.assert_allclose(np.asarray(z), np.asarray(z_ref),
                               rtol=1e-3, atol=1e-3)
    np.testing.assert_allclose(np.asarray(a_pred), np.asarray(a_ref),
                               rtol=1e-3, atol=1e-3)

    assert a_pred.shape == (N, N) and z.shape == (N, hidden3)
    print("KERNEL_OK")
</pallas_src>

<mosaic_0001>
module attributes {stable_mosaic.version = 11 : i64} {
  func.func @_propagate_relu_kernel(%arg0: i32, %arg1: memref<256x256xbf16, #tpu.memory_space<vmem>>, %arg2: memref<256x256xbf16, #tpu.memory_space<vmem>>, %arg3: memref<256x256xbf16, #tpu.memory_space<vmem>>) attributes {dimension_semantics = [#tpu.dimension_semantics<parallel>], iteration_bounds = array<i64: 1>, scalar_prefetch = 0 : i64, scratch_operands = 0 : i64, tpu.core_type = #tpu.core_type<tc>, window_params = [{transform_indices = @transform_0, window_bounds = array<i64: 256, 256>}, {pipeline_mode = #tpu.pipeline_mode<synchronous>, transform_indices = @transform_1, window_bounds = array<i64: 256, 256>}, {transform_indices = @transform_2, window_bounds = array<i64: 256, 256>}]} {
    %c0 = arith.constant 0 : index
    %c0_0 = arith.constant 0 : index
    %0 = vector.load %arg1[%c0, %c0_0] : memref<256x256xbf16, #tpu.memory_space<vmem>>, vector<256x256xbf16>
    %c0_1 = arith.constant 0 : index
    %c0_2 = arith.constant 0 : index
    %1 = vector.load %arg2[%c0_1, %c0_2] : memref<256x256xbf16, #tpu.memory_space<vmem>>, vector<256x256xbf16>
    %cst = arith.constant dense<0.000000e+00> : vector<256x256xf32>
    %2 = tpu.matmul %0, %1, %cst {dimension_numbers = #tpu.dot_dimension_numbers<[1], [0], [0], [1], [0, 0, 1, 1], [], []>} : vector<256x256xbf16>, vector<256x256xbf16>, vector<256x256xf32> -> vector<256x256xf32>
    %cst_3 = arith.constant 0.000000e+00 : f32
    %3 = vector.broadcast %cst_3 : f32 to vector<256x256xf32>
    %4 = arith.maximumf %2, %3 : vector<256x256xf32>
    %5 = arith.truncf %4 : vector<256x256xf32> to vector<256x256xbf16>
    %c0_4 = arith.constant 0 : index
    %c0_5 = arith.constant 0 : index
    %6 = vector.load %arg3[%c0_4, %c0_5] : memref<256x256xbf16, #tpu.memory_space<vmem>>, vector<256x256xbf16>
    tpu.vector_store %arg3[%c0_4, %c0_5], %5 {strides = array<i32>} : memref<256x256xbf16, #tpu.memory_space<vmem>>, vector<256x256xbf16>,
    return
  }
  func.func @transform_0(%arg0: i32) -> (i32, i32) {
    %c0_i32 = arith.constant 0 : i32
    %c0_i32_0 = arith.constant 0 : i32
    return %arg0, %c0_i32 : i32, i32
  }
  func.func @transform_1(%arg0: i32) -> (i32, i32) {
    %c0_i32 = arith.constant 0 : i32
    %c0_i32_0 = arith.constant 0 : i32
    %c0_i32_1 = arith.constant 0 : i32
    return %c0_i32, %c0_i32_0 : i32, i32
  }
  func.func @transform_2(%arg0: i32) -> (i32, i32) {
    %c0_i32 = arith.constant 0 : i32
    %c0_i32_0 = arith.constant 0 : i32
    return %arg0, %c0_i32 : i32, i32
  }
}

module attributes {stable_mosaic.version = 11 : i64} {
  func.func @_feat_matmul_kernel(%arg0: i32, %arg1: memref<256x256xbf16, #tpu.memory_space<vmem>>, %arg2: memref<256x256xbf16, #tpu.memory_space<vmem>>, %arg3: memref<256x256xbf16, #tpu.memory_space<vmem>>) attributes {dimension_semantics = [#tpu.dimension_semantics<parallel>], iteration_bounds = array<i64: 1>, scalar_prefetch = 0 : i64, scratch_operands = 0 : i64, tpu.core_type = #tpu.core_type<tc>, window_params = [{transform_indices = @transform_0, window_bounds = array<i64: 256, 256>}, {pipeline_mode = #tpu.pipeline_mode<synchronous>, transform_indices = @transform_1, window_bounds = array<i64: 256, 256>}, {transform_indices = @transform_2, window_bounds = array<i64: 256, 256>}]} {
    %c0 = arith.constant 0 : index
    %c0_0 = arith.constant 0 : index
    %0 = vector.load %arg1[%c0, %c0_0] : memref<256x256xbf16, #tpu.memory_space<vmem>>, vector<256x256xbf16>
    %c0_1 = arith.constant 0 : index
    %c0_2 = arith.constant 0 : index
    %1 = vector.load %arg2[%c0_1, %c0_2] : memref<256x256xbf16, #tpu.memory_space<vmem>>, vector<256x256xbf16>
    %cst = arith.constant dense<0.000000e+00> : vector<256x256xf32>
    %2 = tpu.matmul %0, %1, %cst {dimension_numbers = #tpu.dot_dimension_numbers<[1], [0], [0], [1], [0, 0, 1, 1], [], []>} : vector<256x256xbf16>, vector<256x256xbf16>, vector<256x256xf32> -> vector<256x256xf32>
    %3 = arith.truncf %2 : vector<256x256xf32> to vector<256x256xbf16>
    %c0_3 = arith.constant 0 : index
    %c0_4 = arith.constant 0 : index
    %4 = vector.load %arg3[%c0_3, %c0_4] : memref<256x256xbf16, #tpu.memory_space<vmem>>, vector<256x256xbf16>
    tpu.vector_store %arg3[%c0_3, %c0_4], %3 {strides = array<i32>} : memref<256x256xbf16, #tpu.memory_space<vmem>>, vector<256x256xbf16>,
    return
  }
  func.func @transform_0(%arg0: i32) -> (i32, i32) {
    %c0_i32 = arith.constant 0 : i32
    %c0_i32_0 = arith.constant 0 : i32
    return %arg0, %c0_i32 : i32, i32
  }
  func.func @transform_1(%arg0: i32) -> (i32, i32) {
    %c0_i32 = arith.constant 0 : i32
    %c0_i32_0 = arith.constant 0 : i32
    %c0_i32_1 = arith.constant 0 : i32
    return %c0_i32, %c0_i32_0 : i32, i32
  }
  func.func @transform_2(%arg0: i32) -> (i32, i32) {
    %c0_i32 = arith.constant 0 : i32
    %c0_i32_0 = arith.constant 0 : i32
    return %arg0, %c0_i32 : i32, i32
  }
}

module attributes {stable_mosaic.version = 11 : i64} {
  func.func @_propagate_id_kernel(%arg0: i32, %arg1: memref<256x256xbf16, #tpu.memory_space<vmem>>, %arg2: memref<256x256xbf16, #tpu.memory_space<vmem>>, %arg3: memref<256x256xbf16, #tpu.memory_space<vmem>>) attributes {dimension_semantics = [#tpu.dimension_semantics<parallel>], iteration_bounds = array<i64: 1>, scalar_prefetch = 0 : i64, scratch_operands = 0 : i64, tpu.core_type = #tpu.core_type<tc>, window_params = [{transform_indices = @transform_0, window_bounds = array<i64: 256, 256>}, {pipeline_mode = #tpu.pipeline_mode<synchronous>, transform_indices = @transform_1, window_bounds = array<i64: 256, 256>}, {transform_indices = @transform_2, window_bounds = array<i64: 256, 256>}]} {
    %c0 = arith.constant 0 : index
    %c0_0 = arith.constant 0 : index
    %0 = vector.load %arg1[%c0, %c0_0] : memref<256x256xbf16, #tpu.memory_space<vmem>>, vector<256x256xbf16>
    %c0_1 = arith.constant 0 : index
    %c0_2 = arith.constant 0 : index
    %1 = vector.load %arg2[%c0_1, %c0_2] : memref<256x256xbf16, #tpu.memory_space<vmem>>, vector<256x256xbf16>
    %cst = arith.constant dense<0.000000e+00> : vector<256x256xf32>
    %2 = tpu.matmul %0, %1, %cst {dimension_numbers = #tpu.dot_dimension_numbers<[1], [0], [0], [1], [0, 0, 1, 1], [], []>} : vector<256x256xbf16>, vector<256x256xbf16>, vector<256x256xf32> -> vector<256x256xf32>
    %3 = arith.truncf %2 : vector<256x256xf32> to vector<256x256xbf16>
    %c0_3 = arith.constant 0 : index
    %c0_4 = arith.constant 0 : index
    %4 = vector.load %arg3[%c0_3, %c0_4] : memref<256x256xbf16, #tpu.memory_space<vmem>>, vector<256x256xbf16>
    tpu.vector_store %arg3[%c0_3, %c0_4], %3 {strides = array<i32>} : memref<256x256xbf16, #tpu.memory_space<vmem>>, vector<256x256xbf16>,
    return
  }
  func.func @transform_0(%arg0: i32) -> (i32, i32) {
    %c0_i32 = arith.constant 0 : i32
    %c0_i32_0 = arith.constant 0 : i32
    return %arg0, %c0_i32 : i32, i32
  }
  func.func @transform_1(%arg0: i32) -> (i32, i32) {
    %c0_i32 = arith.constant 0 : i32
    %c0_i32_0 = arith.constant 0 : i32
    %c0_i32_1 = arith.constant 0 : i32
    return %c0_i32, %c0_i32_0 : i32, i32
  }
  func.func @transform_2(%arg0: i32) -> (i32, i32) {
    %c0_i32 = arith.constant 0 : i32
    %c0_i32_0 = arith.constant 0 : i32
    return %arg0, %c0_i32 : i32, i32
  }
}

module attributes {stable_mosaic.version = 11 : i64} {
  func.func @_propagate_final_kernel(%arg0: i32, %arg1: memref<256x256xbf16, #tpu.memory_space<vmem>>, %arg2: memref<256x256xbf16, #tpu.memory_space<vmem>>, %arg3: memref<256x256xf32, #tpu.memory_space<vmem>>, %arg4: memref<256x256xbf16, #tpu.memory_space<vmem>>) attributes {dimension_semantics = [#tpu.dimension_semantics<parallel>], iteration_bounds = array<i64: 1>, scalar_prefetch = 0 : i64, scratch_operands = 0 : i64, tpu.core_type = #tpu.core_type<tc>, window_params = [{transform_indices = @transform_0, window_bounds = array<i64: 256, 256>}, {pipeline_mode = #tpu.pipeline_mode<synchronous>, transform_indices = @transform_1, window_bounds = array<i64: 256, 256>}, {transform_indices = @transform_2, window_bounds = array<i64: 256, 256>}, {transform_indices = @transform_3, window_bounds = array<i64: 256, 256>}]} {
    %c0 = arith.constant 0 : index
    %c0_0 = arith.constant 0 : index
    %0 = vector.load %arg1[%c0, %c0_0] : memref<256x256xbf16, #tpu.memory_space<vmem>>, vector<256x256xbf16>
    %c0_1 = arith.constant 0 : index
    %c0_2 = arith.constant 0 : index
    %1 = vector.load %arg2[%c0_1, %c0_2] : memref<256x256xbf16, #tpu.memory_space<vmem>>, vector<256x256xbf16>
    %cst = arith.constant dense<0.000000e+00> : vector<256x256xf32>
    %2 = tpu.matmul %0, %1, %cst {dimension_numbers = #tpu.dot_dimension_numbers<[1], [0], [0], [1], [0, 0, 1, 1], [], []>} : vector<256x256xbf16>, vector<256x256xbf16>, vector<256x256xf32> -> vector<256x256xf32>
    %c0_3 = arith.constant 0 : index
    %c0_4 = arith.constant 0 : index
    %3 = vector.load %arg3[%c0_3, %c0_4] : memref<256x256xf32, #tpu.memory_space<vmem>>, vector<256x256xf32>
    tpu.vector_store %arg3[%c0_3, %c0_4], %2 {strides = array<i32>} : memref<256x256xf32, #tpu.memory_space<vmem>>, vector<256x256xf32>,
    %4 = arith.truncf %2 : vector<256x256xf32> to vector<256x256xbf16>
    %c0_5 = arith.constant 0 : index
    %c0_6 = arith.constant 0 : index
    %5 = vector.load %arg4[%c0_5, %c0_6] : memref<256x256xbf16, #tpu.memory_space<vmem>>, vector<256x256xbf16>
    tpu.vector_store %arg4[%c0_5, %c0_6], %4 {strides = array<i32>} : memref<256x256xbf16, #tpu.memory_space<vmem>>, vector<256x256xbf16>,
    return
  }
  func.func @transform_0(%arg0: i32) -> (i32, i32) {
    %c0_i32 = arith.constant 0 : i32
    %c0_i32_0 = arith.constant 0 : i32
    return %arg0, %c0_i32 : i32, i32
  }
  func.func @transform_1(%arg0: i32) -> (i32, i32) {
    %c0_i32 = arith.constant 0 : i32
    %c0_i32_0 = arith.constant 0 : i32
    %c0_i32_1 = arith.constant 0 : i32
    return %c0_i32, %c0_i32_0 : i32, i32
  }
  func.func @transform_2(%arg0: i32) -> (i32, i32) {
    %c0_i32 = arith.constant 0 : i32
    %c0_i32_0 = arith.constant 0 : i32
    return %arg0, %c0_i32 : i32, i32
  }
  func.func @transform_3(%arg0: i32) -> (i32, i32) {
    %c0_i32 = arith.constant 0 : i32
    %c0_i32_0 = arith.constant 0 : i32
    return %arg0, %c0_i32 : i32, i32
  }
}

module attributes {stable_mosaic.version = 11 : i64} {
  func.func @_decode_kernel(%arg0: i32, %arg1: i32, %arg2: memref<256x256xbf16, #tpu.memory_space<vmem>>, %arg3: memref<256x256xbf16, #tpu.memory_space<vmem>>, %arg4: memref<256x256xf32, #tpu.memory_space<vmem>>) attributes {dimension_semantics = [#tpu.dimension_semantics<parallel>, #tpu.dimension_semantics<parallel>], iteration_bounds = array<i64: 1, 1>, scalar_prefetch = 0 : i64, scratch_operands = 0 : i64, tpu.core_type = #tpu.core_type<tc>, window_params = [{transform_indices = @transform_0, window_bounds = array<i64: 256, 256>}, {transform_indices = @transform_1, window_bounds = array<i64: 256, 256>}, {transform_indices = @transform_2, window_bounds = array<i64: 256, 256>}]} {
    %c0 = arith.constant 0 : index
    %c0_0 = arith.constant 0 : index
    %0 = vector.load %arg2[%c0, %c0_0] : memref<256x256xbf16, #tpu.memory_space<vmem>>, vector<256x256xbf16>
    %c0_1 = arith.constant 0 : index
    %c0_2 = arith.constant 0 : index
    %1 = vector.load %arg3[%c0_1, %c0_2] : memref<256x256xbf16, #tpu.memory_space<vmem>>, vector<256x256xbf16>
    %cst = arith.constant dense<0.000000e+00> : vector<256x256xf32>
    %2 = tpu.matmul %0, %1, %cst {dimension_numbers = #tpu.dot_dimension_numbers<[1], [1], [0], [0], [0, 0, 1, 0], [], []>} : vector<256x256xbf16>, vector<256x256xbf16>, vector<256x256xf32> -> vector<256x256xf32>
    %3 = arith.negf %2 : vector<256x256xf32>
    %4 = math.exp %3 : vector<256x256xf32>
    %cst_3 = arith.constant 1.000000e+00 : f32
    %5 = vector.broadcast %cst_3 : f32 to vector<256x256xf32>
    %6 = arith.addf %5, %4 : vector<256x256xf32>
    %7 = arith.divf %5, %6 : vector<256x256xf32>
    %c0_4 = arith.constant 0 : index
    %c0_5 = arith.constant 0 : index
    %8 = vector.load %arg4[%c0_4, %c0_5] : memref<256x256xf32, #tpu.memory_space<vmem>>, vector<256x256xf32>
    tpu.vector_store %arg4[%c0_4, %c0_5], %7 {strides = array<i32>} : memref<256x256xf32, #tpu.memory_space<vmem>>, vector<256x256xf32>,
    return
  }
  func.func @transform_0(%arg0: i32, %arg1: i32) -> (i32, i32) {
    %c0_i32 = arith.constant 0 : i32
    %c0_i32_0 = arith.constant 0 : i32
    return %arg0, %c0_i32 : i32, i32
  }
  func.func @transform_1(%arg0: i32, %arg1: i32) -> (i32, i32) {
    %c0_i32 = arith.constant 0 : i32
    %c0_i32_0 = arith.constant 0 : i32
    return %arg1, %c0_i32 : i32, i32
  }
  func.func @transform_2(%arg0: i32, %arg1: i32) -> (i32, i32) {
    %c0_i32 = arith.constant 0 : i32
    return %arg0, %arg1 : i32, i32
  }
}

</mosaic_0001>

<bundles_post_ra>
// kernel: gae_forward.7
= control target key start
LH: loop header
LB: loop body
LE: loop exit
PB: predicated region body
PF: predicated region fallthrough
CT: control target
= control target key end

     0   :  { %s1375_s1 = inlined_call_operand.vmem [shape: bf16[256,256], index: 1, kind: input, shape index: {}]   ;;  %s1376_s0 = inlined_call_operand.vmem [shape: bf16[256,256], index: 0, kind: input, shape index: {}]   ;;  %s1377_s2 = inlined_call_operand.vmem [shape: bf16[256,256], index: 2, kind: output, shape index: {}]  }
   0x1   :  { %v976_v0 = vld [vmem:[%s1375_s1 + $0x4] ss:$8 sps:$4 sm:$0xff]   ;;  %v978_v1 = vld [vmem:[%s1375_s1] ss:$8 sps:$4 sm:$0xff]   ;;  %v979_v2 = vld [vmem:[%s1375_s1 + $0x14] ss:$8 sps:$4 sm:$0xff]  }
   0x2   :  { %395 = vmatprep.subr.bf16.mxu0 %v976_v0  ;;  %944 = vmatprep.subr.bf16.mxu1 %v976_v0  ;;  %v981_v3 = vld [vmem:[%s1375_s1 + $0x10] ss:$8 sps:$4 sm:$0xff]   ;;  %v982_v4 = vld [vmem:[%s1375_s1 + $0x24] ss:$8 sps:$4 sm:$0xff]   ;;  %v984_v5 = vld [vmem:[%s1375_s1 + $0x20] ss:$8 sps:$4 sm:$0xff]  }
   0x3   :  { %396 = vmatpush1.bf16.msra.mxu0 %v978_v1  ;;  %960 = vmatpush1.bf16.msra.mxu1 %v978_v1  ;;  %v985_v6 = vld [vmem:[%s1375_s1 + $0x34] ss:$8 sps:$4 sm:$0xff]   ;;  %v987_v7 = vld [vmem:[%s1375_s1 + $0x30] ss:$8 sps:$4 sm:$0xff]   ;;  %v988_v8 = vld [vmem:[%s1375_s1 + $0x44] ss:$8 sps:$4 sm:$0xff]  }
   0x4   :  { %397 = vmatprep.subr.bf16.mxu0 %v979_v2  ;;  %945 = vmatprep.subr.bf16.mxu1 %v979_v2  ;;  %v990_v9 = vld [vmem:[%s1375_s1 + $0x40] ss:$8 sps:$4 sm:$0xff]   ;;  %v991_v10 = vld [vmem:[%s1375_s1 + $0x54] ss:$8 sps:$4 sm:$0xff]   ;;  %v993_v11 = vld [vmem:[%s1375_s1 + $0x50] ss:$8 sps:$4 sm:$0xff]  }
   0x5   :  { %v994_v12 = vld [vmem:[%s1375_s1 + $0x64] ss:$8 sps:$4 sm:$0xff]   ;;  %v996_v14 = vld [vmem:[%s1375_s1 + $0x60] ss:$8 sps:$4 sm:$0xff]   ;;  %v997_v16 = vld [vmem:[%s1375_s1 + $0x74] ss:$8 sps:$4 sm:$0xff]  }
   0x6   :  { %v1026_v13 = vld [vmem:[%s1376_s0 + $0x4] ss:$8 sps:$4 sm:$0xff]   ;;  %v999_v17 = vld [vmem:[%s1375_s1 + $0x70] ss:$8 sps:$4 sm:$0xff]   ;;  %v1002_v19 = vld [vmem:[%s1375_s1 + $0x80] ss:$8 sps:$4 sm:$0xff]  }
   0x7   :  { %398 = vmatpush1.bf16.msra.mxu0 %v981_v3  ;;  %961 = vmatpush1.bf16.msra.mxu1 %v981_v3  ;;  %v1029_v15 = vld [vmem:[%s1376_s0 + $0x84] ss:$8 sps:$4 sm:$0xff]   ;;  %v1003_v20 = vld [vmem:[%s1375_s1 + $0x94] ss:$8 sps:$4 sm:$0xff]   ;;  %v1005_v21 = vld [vmem:[%s1375_s1 + $0x90] ss:$8 sps:$4 sm:$0xff]  }
   0x8   :  { %399 = vmatprep.subr.bf16.mxu0 %v982_v4  ;;  %946 = vmatprep.subr.bf16.mxu1 %v982_v4  ;;  %v1000_v18 = vld [vmem:[%s1375_s1 + $0x84] ss:$8 sps:$4 sm:$0xff]   ;;  %v1008_v23 = vld [vmem:[%s1375_s1 + $0xa0] ss:$8 sps:$4 sm:$0xff]   ;;  %v1009_v24 = vld [vmem:[%s1375_s1 + $0xb4] ss:$8 sps:$4 sm:$0xff]  }
   0x9   :  { %427 = vmatprep.mubr.bf16.mxu0 %v1026_v13  ;;  %507 = vmatprep.mubr.bf16.mxu1 %v1029_v15  ;;  %v1006_v22 = vld [vmem:[%s1375_s1 + $0xa4] ss:$8 sps:$4 sm:$0xff]   ;;  %v1011_v25 = vld [vmem:[%s1375_s1 + $0xb0] ss:$8 sps:$4 sm:$0xff]   ;;  %v1014_v27 = vld [vmem:[%s1375_s1 + $0xc0] ss:$8 sps:$4 sm:$0xff]  }
   0xa   :  { %v1012_v26 = vld [vmem:[%s1375_s1 + $0xc4] ss:$8 sps:$4 sm:$0xff]   ;;  %v1015_v28 = vld [vmem:[%s1375_s1 + $0xd4] ss:$8 sps:$4 sm:$0xff]   ;;  %v1017_v29 = vld [vmem:[%s1375_s1 + $0xd0] ss:$8 sps:$4 sm:$0xff]  }
   0xb   :  { %400 = vmatpush1.bf16.msra.mxu0 %v984_v5  ;;  %962 = vmatpush1.bf16.msra.mxu1 %v984_v5  ;;  %v1018_v30 = vld [vmem:[%s1375_s1 + $0xe4] ss:$8 sps:$4 sm:$0xff]   ;;  %v1020_v31 = vld [vmem:[%s1375_s1 + $0xe0] ss:$8 sps:$4 sm:$0xff]   ;;  %v1021_v32 = vld [vmem:[%s1375_s1 + $0xf4] ss:$8 sps:$4 sm:$0xff]  }
   0xc   :  { %401 = vmatprep.subr.bf16.mxu0 %v985_v6  ;;  %947 = vmatprep.subr.bf16.mxu1 %v985_v6  ;;  %v1023_v33 = vld [vmem:[%s1375_s1 + $0xf0] ss:$8 sps:$4 sm:$0xff]   ;;  %v1024_v34 = vld [vmem:[%s1376_s0] ss:$8 sps:$4 sm:$0xff]   ;;  %v1030_v36 = vld [vmem:[%s1376_s0 + $0x14] ss:$8 sps:$4 sm:$0xff]  }
   0xd   :  { %v1027_v35 = vld [vmem:[%s1376_s0 + $0x80] ss:$8 sps:$4 sm:$0xff]   ;;  %v1032_v37 = vld [vmem:[%s1376_s0 + $0x94] ss:$8 sps:$4 sm:$0xff]   ;;  %v1034_v38 = vld [vmem:[%s1376_s0 + $0x10] ss:$8 sps:$4 sm:$0xff]  }
   0xe   :  { %v1035_v39 = vld [vmem:[%s1376_s0 + $0x90] ss:$8 sps:$4 sm:$0xff]   ;;  %v1036_v40 = vld [vmem:[%s1376_s0 + $0x24] ss:$8 sps:$4 sm:$0xff]   ;;  %v1040_v42 = vld [vmem:[%s1376_s0 + $0x20] ss:$8 sps:$4 sm:$0xff]  }
   0xf   :  { %402 = vmatpush1.bf16.msra.mxu0 %v987_v7  ;;  %963 = vmatpush1.bf16.msra.mxu1 %v987_v7  ;;  %v1038_v41 = vld [vmem:[%s1376_s0 + $0xa4] ss:$8 sps:$4 sm:$0xff]   ;;  %v1041_v43 = vld [vmem:[%s1376_s0 + $0xa0] ss:$8 sps:$4 sm:$0xff]   ;;  %v1042_v44 = vld [vmem:[%s1376_s0 + $0x34] ss:$8 sps:$4 sm:$0xff]  }
  0x10   :  { %403 = vmatprep.subr.bf16.mxu0 %v988_v8  ;;  %948 = vmatprep.subr.bf16.mxu1 %v988_v8  ;;  %v1044_v45 = vld [vmem:[%s1376_s0 + $0xb4] ss:$8 sps:$4 sm:$0xff]   ;;  %v1046_v46 = vld [vmem:[%s1376_s0 + $0x30] ss:$8 sps:$4 sm:$0xff]   ;;  %v1048_v48 = vld [vmem:[%s1376_s0 + $0x44] ss:$8 sps:$4 sm:$0xff]  }
  0x11   :  { %v1047_v47 = vld [vmem:[%s1376_s0 + $0xb0] ss:$8 sps:$4 sm:$0xff]   ;;  %v1050_v49 = vld [vmem:[%s1376_s0 + $0xc4] ss:$8 sps:$4 sm:$0xff]   ;;  %v1052_v50 = vld [vmem:[%s1376_s0 + $0x40] ss:$8 sps:$4 sm:$0xff]  }
  0x12   :  { %v1053_v51 = vld [vmem:[%s1376_s0 + $0xc0] ss:$8 sps:$4 sm:$0xff]   ;;  %v1054_v52 = vld [vmem:[%s1376_s0 + $0x54] ss:$8 sps:$4 sm:$0xff]   ;;  %v1058_v54 = vld [vmem:[%s1376_s0 + $0x50] ss:$8 sps:$4 sm:$0xff]  }
  0x13   :  { %404 = vmatpush1.bf16.msra.mxu0 %v990_v9  ;;  %964 = vmatpush1.bf16.msra.mxu1 %v990_v9  ;;  %v1056_v53 = vld [vmem:[%s1376_s0 + $0xd4] ss:$8 sps:$4 sm:$0xff]   ;;  %v1059_v55 = vld [vmem:[%s1376_s0 + $0xd0] ss:$8 sps:$4 sm:$0xff]   ;;  %v1060_v56 = vld [vmem:[%s1376_s0 + $0x64] ss:$8 sps:$4 sm:$0xff]  }
  0x14   :  { %405 = vmatprep.subr.bf16.mxu0 %v991_v10  ;;  %949 = vmatprep.subr.bf16.mxu1 %v991_v10  ;;  %v1062_v57 = vld [vmem:[%s1376_s0 + $0xe4] ss:$8 sps:$4 sm:$0xff]   ;;  %v1064_v58 = vld [vmem:[%s1376_s0 + $0x60] ss:$8 sps:$4 sm:$0xff]   ;;  %v1066_v60 = vld [vmem:[%s1376_s0 + $0x74] ss:$8 sps:$4 sm:$0xff]  }
  0x15   :  { %v1065_v59 = vld [vmem:[%s1376_s0 + $0xe0] ss:$8 sps:$4 sm:$0xff]   ;;  %v1068_v61 = vld [vmem:[%s1376_s0 + $0xf4] ss:$8 sps:$4 sm:$0xff]   ;;  %v1070_v62 = vld [vmem:[%s1376_s0 + $0x70] ss:$8 sps:$4 sm:$0xff]  }
  0x16   :  { %v1071_v63 = vld [vmem:[%s1376_s0 + $0xf0] ss:$8 sps:$4 sm:$0xff]  }
  0x17   :  { %406 = vmatpush1.bf16.msra.mxu0 %v993_v11  ;;  %965 = vmatpush1.bf16.msra.mxu1 %v993_v11 }
  0x18   :  { %407 = vmatprep.subr.bf16.mxu0 %v994_v12  ;;  %950 = vmatprep.subr.bf16.mxu1 %v994_v12 }
  0x1b   :  { %408 = vmatpush1.bf16.msra.mxu0 %v996_v14  ;;  %966 = vmatpush1.bf16.msra.mxu1 %v996_v14 }
  0x1c   :  { %409 = vmatprep.subr.bf16.mxu0 %v997_v16  ;;  %951 = vmatprep.subr.bf16.mxu1 %v997_v16 }
  0x1f   :  { %410 = vmatpush1.bf16.msra.mxu0 %v999_v17  ;;  %967 = vmatpush1.bf16.msra.mxu1 %v999_v17 }
  0x20   :  { %411 = vmatprep.subr.bf16.mxu0 %v1000_v18  ;;  %952 = vmatprep.subr.bf16.mxu1 %v1000_v18 }
  0x23   :  { %412 = vmatpush1.bf16.msra.mxu0 %v1002_v19  ;;  %968 = vmatpush1.bf16.msra.mxu1 %v1002_v19 }
  0x24   :  { %413 = vmatprep.subr.bf16.mxu0 %v1003_v20  ;;  %953 = vmatprep.subr.bf16.mxu1 %v1003_v20 }
  0x27   :  { %414 = vmatpush1.bf16.msra.mxu0 %v1005_v21  ;;  %969 = vmatpush1.bf16.msra.mxu1 %v1005_v21 }
  0x28   :  { %415 = vmatprep.subr.bf16.mxu0 %v1006_v22  ;;  %954 = vmatprep.subr.bf16.mxu1 %v1006_v22 }
  0x2b   :  { %416 = vmatpush1.bf16.msra.mxu0 %v1008_v23  ;;  %970 = vmatpush1.bf16.msra.mxu1 %v1008_v23 }
  0x2c   :  { %417 = vmatprep.subr.bf16.mxu0 %v1009_v24  ;;  %955 = vmatprep.subr.bf16.mxu1 %v1009_v24 }
  0x2f   :  { %418 = vmatpush1.bf16.msra.mxu0 %v1011_v25  ;;  %971 = vmatpush1.bf16.msra.mxu1 %v1011_v25 }
  0x30   :  { %419 = vmatprep.subr.bf16.mxu0 %v1012_v26  ;;  %956 = vmatprep.subr.bf16.mxu1 %v1012_v26 }
  0x33   :  { %420 = vmatpush1.bf16.msra.mxu0 %v1014_v27  ;;  %972 = vmatpush1.bf16.msra.mxu1 %v1014_v27 }
  0x34   :  { %421 = vmatprep.subr.bf16.mxu0 %v1015_v28  ;;  %957 = vmatprep.subr.bf16.mxu1 %v1015_v28 }
  0x37   :  { %422 = vmatpush1.bf16.msra.mxu0 %v1017_v29  ;;  %973 = vmatpush1.bf16.msra.mxu1 %v1017_v29 }
  0x38   :  { %423 = vmatprep.subr.bf16.mxu0 %v1018_v30  ;;  %958 = vmatprep.subr.bf16.mxu1 %v1018_v30 }
  0x3b   :  { %424 = vmatpush1.bf16.msra.mxu0 %v1020_v31  ;;  %974 = vmatpush1.bf16.msra.mxu1 %v1020_v31 }
  0x3c   :  { %425 = vmatprep.subr.bf16.mxu0 %v1021_v32  ;;  %959 = vmatprep.subr.bf16.mxu1 %v1021_v32 }
  0x3f   :  { %426 = vmatpush1.bf16.msra.mxu0 %v1023_v33  ;;  %975 = vmatpush1.bf16.msra.mxu1 %v1023_v33 }
  0x42   :  { %428 = vmatmul.mubr.bf16.vlgmr.msra.gmra.mrb[0].mxu0 %v1024_v34  ;;  %508 = vmatmul.mubr.bf16.vlgmr.msra.gmra.mrb[0].mxu1 %v1027_v35 }
  0x43   :  { %437 = vmatprep.mubr.bf16.mxu0 %v1030_v36  ;;  %517 = vmatprep.mubr.bf16.mxu1 %v1032_v37 }
  0x4a   :  { %438 = vmatmul.mubr.bf16.gmra.mrb[4].mxu0 %v1034_v38  ;;  %518 = vmatmul.mubr.bf16.gmra.mrb[4].mxu1 %v1035_v39 }
  0x4b   :  { %447 = vmatprep.mubr.bf16.mxu0 %v1036_v40  ;;  %527 = vmatprep.mubr.bf16.mxu1 %v1038_v41 }
  0x52   :  { %448 = vmatmul.mubr.bf16.gmra.mrb[8].mxu0 %v1040_v42  ;;  %528 = vmatmul.mubr.bf16.gmra.mrb[8].mxu1 %v1041_v43 }
  0x53   :  { %457 = vmatprep.mubr.bf16.mxu0 %v1042_v44  ;;  %537 = vmatprep.mubr.bf16.mxu1 %v1044_v45 }
  0x5a   :  { %458 = vmatmul.mubr.bf16.gmra.mrb[12].mxu0 %v1046_v46  ;;  %538 = vmatmul.mubr.bf16.gmra.mrb[12].mxu1 %v1047_v47 }
  0x5b   :  { %467 = vmatprep.mubr.bf16.mxu0 %v1048_v48  ;;  %547 = vmatprep.mubr.bf16.mxu1 %v1050_v49 }
  0x62   :  { %468 = vmatmul.mubr.bf16.gmra.mrb[16].mxu0 %v1052_v50  ;;  %548 = vmatmul.mubr.bf16.gmra.mrb[16].mxu1 %v1053_v51 }
  0x63   :  { %477 = vmatprep.mubr.bf16.mxu0 %v1054_v52  ;;  %557 = vmatprep.mubr.bf16.mxu1 %v1056_v53 }
  0x6a   :  { %478 = vmatmul.mubr.bf16.gmra.mrb[20].mxu0 %v1058_v54  ;;  %558 = vmatmul.mubr.bf16.gmra.mrb[20].mxu1 %v1059_v55 }
  0x6b   :  { %487 = vmatprep.mubr.bf16.mxu0 %v1060_v56  ;;  %567 = vmatprep.mubr.bf16.mxu1 %v1062_v57 }
  0x72   :  { %488 = vmatmul.mubr.bf16.gmra.mrb[24].mxu0 %v1064_v58  ;;  %568 = vmatmul.mubr.bf16.gmra.mrb[24].mxu1 %v1065_v59 }
  0x73   :  { %497 = vmatprep.mubr.bf16.mxu0 %v1066_v60  ;;  %577 = vmatprep.mubr.bf16.mxu1 %v1068_v61 }
  0x7a   :  { %498 = vmatmul.mubr.bf16.gmra.mrb[28].mxu0 %v1070_v62  ;;  %578 = vmatmul.mubr.bf16.gmra.mrb[28].mxu1 %v1071_v63 }
 0x115   :  { %v429_v0 = vpop.f32.mrb[0].mxu0  ;;  %v509_v1 = vpop.f32.mrb[0].mxu1 }
 0x116   :  { %v431_v2 = vpop.f32.mrb[1].mxu0  ;;  %v511_v3 = vpop.f32.mrb[1].mxu1 }
 0x117   :  { %v912_v4 = vpack.c.bf16 %v431_v2, %v429_v0  ;;  %v928_v5 = vpack.c.bf16 %v511_v3, %v509_v1  ;;  %v433_v6 = vpop.f32.mrb[2].mxu0  ;;  %v513_v7 = vpop.f32.mrb[2].mxu1 }
 0x118   :  { %v435_v8 = vpop.f32.mrb[3].mxu0  ;;  %v515_v9 = vpop.f32.mrb[3].mxu1 }
 0x119   :  { %780 = vst [vmem:[%s1377_s2] sm:$0xff] %v912_v4  ;;  %796 = vst [vmem:[%s1377_s2 + $0x80] sm:$0xff] %v928_v5  ;;  %v913_v10 = vpack.c.bf16 %v435_v8, %v433_v6  ;;  %v929_v11 = vpack.c.bf16 %v515_v9, %v513_v7 }
 0x11b   :  { %781 = vst [vmem:[%s1377_s2 + $0x8] sm:$0xff] %v913_v10  ;;  %797 = vst [vmem:[%s1377_s2 + $0x88] sm:$0xff] %v929_v11 }
 0x11d   :  { %v439_v12 = vpop.f32.mrb[4].mxu0  ;;  %v519_v13 = vpop.f32.mrb[4].mxu1 }
 0x11e   :  { %v441_v14 = vpop.f32.mrb[5].mxu0  ;;  %v521_v15 = vpop.f32.mrb[5].mxu1 }
 0x11f   :  { %v914_v16 = vpack.c.bf16 %v441_v14, %v439_v12  ;;  %v930_v17 = vpack.c.bf16 %v521_v15, %v519_v13  ;;  %v443_v18 = vpop.f32.mrb[6].mxu0  ;;  %v523_v19 = vpop.f32.mrb[6].mxu1 }
 0x120   :  { %v445_v20 = vpop.f32.mrb[7].mxu0  ;;  %v525_v21 = vpop.f32.mrb[7].mxu1 }
 0x121   :  { %782 = vst [vmem:[%s1377_s2 + $0x10] sm:$0xff] %v914_v16  ;;  %798 = vst [vmem:[%s1377_s2 + $0x90] sm:$0xff] %v930_v17  ;;  %v915_v22 = vpack.c.bf16 %v445_v20, %v443_v18  ;;  %v931_v23 = vpack.c.bf16 %v525_v21, %v523_v19 }
 0x123   :  { %783 = vst [vmem:[%s1377_s2 + $0x18] sm:$0xff] %v915_v22  ;;  %799 = vst [vmem:[%s1377_s2 + $0x98] sm:$0xff] %v931_v23 }
 0x125   :  { %v449_v24 = vpop.f32.mrb[8].mxu0  ;;  %v529_v25 = vpop.f32.mrb[8].mxu1 }
 0x126   :  { %v451_v26 = vpop.f32.mrb[9].mxu0  ;;  %v531_v27 = vpop.f32.mrb[9].mxu1 }
 0x127   :  { %v916_v28 = vpack.c.bf16 %v451_v26, %v449_v24  ;;  %v932_v29 = vpack.c.bf16 %v531_v27, %v529_v25  ;;  %v453_v30 = vpop.f32.mrb[10].mxu0  ;;  %v533_v31 = vpop.f32.mrb[10].mxu1 }
 0x128   :  { %v455_v32 = vpop.f32.mrb[11].mxu0  ;;  %v535_v33 = vpop.f32.mrb[11].mxu1 }
 0x129   :  { %784 = vst [vmem:[%s1377_s2 + $0x20] sm:$0xff] %v916_v28  ;;  %800 = vst [vmem:[%s1377_s2 + $0xa0] sm:$0xff] %v932_v29  ;;  %v917_v34 = vpack.c.bf16 %v455_v32, %v453_v30  ;;  %v933_v35 = vpack.c.bf16 %v535_v33, %v533_v31 }
 0x12b   :  { %785 = vst [vmem:[%s1377_s2 + $0x28] sm:$0xff] %v917_v34  ;;  %801 = vst [vmem:[%s1377_s2 + $0xa8] sm:$0xff] %v933_v35 }
 0x12d   :  { %v459_v36 = vpop.f32.mrb[12].mxu0  ;;  %v539_v37 = vpop.f32.mrb[12].mxu1 }
 0x12e   :  { %v461_v38 = vpop.f32.mrb[13].mxu0  ;;  %v541_v39 = vpop.f32.mrb[13].mxu1 }
 0x12f   :  { %v918_v40 = vpack.c.bf16 %v461_v38, %v459_v36  ;;  %v934_v41 = vpack.c.bf16 %v541_v39, %v539_v37  ;;  %v463_v42 = vpop.f32.mrb[14].mxu0  ;;  %v543_v43 = vpop.f32.mrb[14].mxu1 }
 0x130   :  { %v465_v44 = vpop.f32.mrb[15].mxu0  ;;  %v545_v45 = vpop.f32.mrb[15].mxu1 }
 0x131   :  { %786 = vst [vmem:[%s1377_s2 + $0x30] sm:$0xff] %v918_v40  ;;  %802 = vst [vmem:[%s1377_s2 + $0xb0] sm:$0xff] %v934_v41  ;;  %v919_v46 = vpack.c.bf16 %v465_v44, %v463_v42  ;;  %v935_v47 = vpack.c.bf16 %v545_v45, %v543_v43 }
 0x133   :  { %787 = vst [vmem:[%s1377_s2 + $0x38] sm:$0xff] %v919_v46  ;;  %803 = vst [vmem:[%s1377_s2 + $0xb8] sm:$0xff] %v935_v47 }
 0x135   :  { %v469_v48 = vpop.f32.mrb[16].mxu0  ;;  %v549_v49 = vpop.f32.mrb[16].mxu1 }
 0x136   :  { %v471_v50 = vpop.f32.mrb[17].mxu0  ;;  %v551_v51 = vpop.f32.mrb[17].mxu1 }
 0x137   :  { %v920_v52 = vpack.c.bf16 %v471_v50, %v469_v48  ;;  %v936_v53 = vpack.c.bf16 %v551_v51, %v549_v49  ;;  %v473_v54 = vpop.f32.mrb[18].mxu0  ;;  %v553_v55 = vpop.f32.mrb[18].mxu1 }
 0x138   :  { %v475_v56 = vpop.f32.mrb[19].mxu0  ;;  %v555_v57 = vpop.f32.mrb[19].mxu1 }
 0x139   :  { %788 = vst [vmem:[%s1377_s2 + $0x40] sm:$0xff] %v920_v52  ;;  %804 = vst [vmem:[%s1377_s2 + $0xc0] sm:$0xff] %v936_v53  ;;  %v921_v58 = vpack.c.bf16 %v475_v56, %v473_v54  ;;  %v937_v59 = vpack.c.bf16 %v555_v57, %v553_v55 }
 0x13b   :  { %789 = vst [vmem:[%s1377_s2 + $0x48] sm:$0xff] %v921_v58  ;;  %805 = vst [vmem:[%s1377_s2 + $0xc8] sm:$0xff] %v937_v59 }
 0x13d   :  { %v479_v60 = vpop.f32.mrb[20].mxu0  ;;  %v559_v61 = vpop.f32.mrb[20].mxu1 }
 0x13e   :  { %v481_v62 = vpop.f32.mrb[21].mxu0  ;;  %v561_v63 = vpop.f32.mrb[21].mxu1 }
 0x13f   :  { %v922_v0 = vpack.c.bf16 %v481_v62, %v479_v60  ;;  %v938_v1 = vpack.c.bf16 %v561_v63, %v559_v61  ;;  %v483_v2 = vpop.f32.mrb[22].mxu0  ;;  %v563_v3 = vpop.f32.mrb[22].mxu1 }
 0x140   :  { %v485_v4 = vpop.f32.mrb[23].mxu0  ;;  %v565_v5 = vpop.f32.mrb[23].mxu1 }
 0x141   :  { %790 = vst [vmem:[%s1377_s2 + $0x50] sm:$0xff] %v922_v0  ;;  %806 = vst [vmem:[%s1377_s2 + $0xd0] sm:$0xff] %v938_v1  ;;  %v923_v6 = vpack.c.bf16 %v485_v4, %v483_v2  ;;  %v939_v7 = vpack.c.bf16 %v565_v5, %v563_v3 }
 0x143   :  { %791 = vst [vmem:[%s1377_s2 + $0x58] sm:$0xff] %v923_v6  ;;  %807 = vst [vmem:[%s1377_s2 + $0xd8] sm:$0xff] %v939_v7 }
 0x145   :  { %v489_v8 = vpop.f32.mrb[24].mxu0  ;;  %v569_v9 = vpop.f32.mrb[24].mxu1 }
 0x146   :  { %v491_v10 = vpop.f32.mrb[25].mxu0  ;;  %v571_v11 = vpop.f32.mrb[25].mxu1 }
 0x147   :  { %v924_v12 = vpack.c.bf16 %v491_v10, %v489_v8  ;;  %v940_v13 = vpack.c.bf16 %v571_v11, %v569_v9  ;;  %v493_v14 = vpop.f32.mrb[26].mxu0  ;;  %v573_v15 = vpop.f32.mrb[26].mxu1 }
 0x148   :  { %v495_v16 = vpop.f32.mrb[27].mxu0  ;;  %v575_v17 = vpop.f32.mrb[27].mxu1 }
 0x149   :  { %792 = vst [vmem:[%s1377_s2 + $0x60] sm:$0xff] %v924_v12  ;;  %808 = vst [vmem:[%s1377_s2 + $0xe0] sm:$0xff] %v940_v13  ;;  %v925_v18 = vpack.c.bf16 %v495_v16, %v493_v14  ;;  %v941_v19 = vpack.c.bf16 %v575_v17, %v573_v15 }
 0x14b   :  { %793 = vst [vmem:[%s1377_s2 + $0x68] sm:$0xff] %v925_v18  ;;  %809 = vst [vmem:[%s1377_s2 + $0xe8] sm:$0xff] %v941_v19 }
 0x14d   :  { %v499_v20 = vpop.f32.mrb[28].mxu0  ;;  %v579_v21 = vpop.f32.mrb[28].mxu1 }
 0x14e   :  { %v501_v22 = vpop.f32.mrb[29].mxu0  ;;  %v581_v23 = vpop.f32.mrb[29].mxu1 }
 0x14f   :  { %v926_v24 = vpack.c.bf16 %v501_v22, %v499_v20  ;;  %v942_v25 = vpack.c.bf16 %v581_v23, %v579_v21  ;;  %v503_v26 = vpop.f32.mrb[30].mxu0  ;;  %v583_v27 = vpop.f32.mrb[30].mxu1 }
 0x150   :  { %v505_v28 = vpop.f32.mrb[31].mxu0  ;;  %v585_v29 = vpop.f32.mrb[31].mxu1 }
 0x151   :  { %794 = vst [vmem:[%s1377_s2 + $0x70] sm:$0xff] %v926_v24  ;;  %810 = vst [vmem:[%s1377_s2 + $0xf0] sm:$0xff] %v942_v25  ;;  %v927_v30 = vpack.c.bf16 %v505_v28, %v503_v26  ;;  %v943_v31 = vpack.c.bf16 %v585_v29, %v583_v27 }
 0x153   :  { %795 = vst [vmem:[%s1377_s2 + $0x78] sm:$0xff] %v927_v30  ;;  %811 = vst [vmem:[%s1377_s2 + $0xf8] sm:$0xff] %v943_v31 }

// kernel: gae_forward.8
= control target key start
LH: loop header
LB: loop body
LE: loop exit
PB: predicated region body
PF: predicated region fallthrough
CT: control target
= control target key end

     0   :  { %s1439_s1 = inlined_call_operand.vmem [shape: bf16[256,256], index: 1, kind: input, shape index: {}]   ;;  %s1440_s0 = inlined_call_operand.vmem [shape: bf16[256,256], index: 0, kind: input, shape index: {}]   ;;  %s1441_s2 = inlined_call_operand.vmem [shape: bf16[256,256], index: 2, kind: output, shape index: {}]  }
   0x1   :  { %v1040_v0 = vld [vmem:[%s1439_s1 + $0x4] ss:$8 sps:$4 sm:$0xff]   ;;  %v1042_v1 = vld [vmem:[%s1439_s1] ss:$8 sps:$4 sm:$0xff]   ;;  %v1043_v2 = vld [vmem:[%s1439_s1 + $0x14] ss:$8 sps:$4 sm:$0xff]  }
   0x2   :  { %395 = vmatprep.subr.bf16.mxu0 %v1040_v0  ;;  %1008 = vmatprep.subr.bf16.mxu1 %v1040_v0  ;;  %v1045_v3 = vld [vmem:[%s1439_s1 + $0x10] ss:$8 sps:$4 sm:$0xff]   ;;  %v1046_v4 = vld [vmem:[%s1439_s1 + $0x24] ss:$8 sps:$4 sm:$0xff]   ;;  %v1048_v5 = vld [vmem:[%s1439_s1 + $0x20] ss:$8 sps:$4 sm:$0xff]  }
   0x3   :  { %396 = vmatpush1.bf16.msra.mxu0 %v1042_v1  ;;  %1024 = vmatpush1.bf16.msra.mxu1 %v1042_v1  ;;  %v1049_v6 = vld [vmem:[%s1439_s1 + $0x34] ss:$8 sps:$4 sm:$0xff]   ;;  %v1051_v7 = vld [vmem:[%s1439_s1 + $0x30] ss:$8 sps:$4 sm:$0xff]   ;;  %v1052_v8 = vld [vmem:[%s1439_s1 + $0x44] ss:$8 sps:$4 sm:$0xff]  }
   0x4   :  { %397 = vmatprep.subr.bf16.mxu0 %v1043_v2  ;;  %1009 = vmatprep.subr.bf16.mxu1 %v1043_v2  ;;  %v1054_v9 = vld [vmem:[%s1439_s1 + $0x40] ss:$8 sps:$4 sm:$0xff]   ;;  %v1055_v10 = vld [vmem:[%s1439_s1 + $0x54] ss:$8 sps:$4 sm:$0xff]   ;;  %v1057_v11 = vld [vmem:[%s1439_s1 + $0x50] ss:$8 sps:$4 sm:$0xff]  }
   0x5   :  { %v1058_v12 = vld [vmem:[%s1439_s1 + $0x64] ss:$8 sps:$4 sm:$0xff]   ;;  %v1060_v14 = vld [vmem:[%s1439_s1 + $0x60] ss:$8 sps:$4 sm:$0xff]   ;;  %v1061_v16 = vld [vmem:[%s1439_s1 + $0x74] ss:$8 sps:$4 sm:$0xff]  }
   0x6   :  { %v1090_v13 = vld [vmem:[%s1440_s0 + $0x4] ss:$8 sps:$4 sm:$0xff]   ;;  %v1063_v17 = vld [vmem:[%s1439_s1 + $0x70] ss:$8 sps:$4 sm:$0xff]   ;;  %v1066_v19 = vld [vmem:[%s1439_s1 + $0x80] ss:$8 sps:$4 sm:$0xff]  }
   0x7   :  { %398 = vmatpush1.bf16.msra.mxu0 %v1045_v3  ;;  %1025 = vmatpush1.bf16.msra.mxu1 %v1045_v3  ;;  %v1093_v15 = vld [vmem:[%s1440_s0 + $0x84] ss:$8 sps:$4 sm:$0xff]   ;;  %v1067_v20 = vld [vmem:[%s1439_s1 + $0x94] ss:$8 sps:$4 sm:$0xff]   ;;  %v1069_v21 = vld [vmem:[%s1439_s1 + $0x90] ss:$8 sps:$4 sm:$0xff]  }
   0x8   :  { %399 = vmatprep.subr.bf16.mxu0 %v1046_v4  ;;  %1010 = vmatprep.subr.bf16.mxu1 %v1046_v4  ;;  %v1064_v18 = vld [vmem:[%s1439_s1 + $0x84] ss:$8 sps:$4 sm:$0xff]   ;;  %v1072_v23 = vld [vmem:[%s1439_s1 + $0xa0] ss:$8 sps:$4 sm:$0xff]   ;;  %v1073_v24 = vld [vmem:[%s1439_s1 + $0xb4] ss:$8 sps:$4 sm:$0xff]  }
   0x9   :  { %427 = vmatprep.mubr.bf16.mxu0 %v1090_v13  ;;  %507 = vmatprep.mubr.bf16.mxu1 %v1093_v15  ;;  %v1070_v22 = vld [vmem:[%s1439_s1 + $0xa4] ss:$8 sps:$4 sm:$0xff]   ;;  %v1075_v25 = vld [vmem:[%s1439_s1 + $0xb0] ss:$8 sps:$4 sm:$0xff]   ;;  %v1078_v27 = vld [vmem:[%s1439_s1 + $0xc0] ss:$8 sps:$4 sm:$0xff]  }
   0xa   :  { %v1076_v26 = vld [vmem:[%s1439_s1 + $0xc4] ss:$8 sps:$4 sm:$0xff]   ;;  %v1079_v28 = vld [vmem:[%s1439_s1 + $0xd4] ss:$8 sps:$4 sm:$0xff]   ;;  %v1081_v29 = vld [vmem:[%s1439_s1 + $0xd0] ss:$8 sps:$4 sm:$0xff]  }
   0xb   :  { %400 = vmatpush1.bf16.msra.mxu0 %v1048_v5  ;;  %1026 = vmatpush1.bf16.msra.mxu1 %v1048_v5  ;;  %v1082_v30 = vld [vmem:[%s1439_s1 + $0xe4] ss:$8 sps:$4 sm:$0xff]   ;;  %v1084_v31 = vld [vmem:[%s1439_s1 + $0xe0] ss:$8 sps:$4 sm:$0xff]   ;;  %v1085_v32 = vld [vmem:[%s1439_s1 + $0xf4] ss:$8 sps:$4 sm:$0xff]  }
   0xc   :  { %401 = vmatprep.subr.bf16.mxu0 %v1049_v6  ;;  %1011 = vmatprep.subr.bf16.mxu1 %v1049_v6  ;;  %v1087_v33 = vld [vmem:[%s1439_s1 + $0xf0] ss:$8 sps:$4 sm:$0xff]   ;;  %v1088_v34 = vld [vmem:[%s1440_s0] ss:$8 sps:$4 sm:$0xff]   ;;  %v1094_v36 = vld [vmem:[%s1440_s0 + $0x14] ss:$8 sps:$4 sm:$0xff]  }
   0xd   :  { %v1091_v35 = vld [vmem:[%s1440_s0 + $0x80] ss:$8 sps:$4 sm:$0xff]   ;;  %v1096_v37 = vld [vmem:[%s1440_s0 + $0x94] ss:$8 sps:$4 sm:$0xff]   ;;  %v1098_v38 = vld [vmem:[%s1440_s0 + $0x10] ss:$8 sps:$4 sm:$0xff]  }
   0xe   :  { %v1099_v39 = vld [vmem:[%s1440_s0 + $0x90] ss:$8 sps:$4 sm:$0xff]   ;;  %v1100_v40 = vld [vmem:[%s1440_s0 + $0x24] ss:$8 sps:$4 sm:$0xff]   ;;  %v1104_v42 = vld [vmem:[%s1440_s0 + $0x20] ss:$8 sps:$4 sm:$0xff]  }
   0xf   :  { %402 = vmatpush1.bf16.msra.mxu0 %v1051_v7  ;;  %1027 = vmatpush1.bf16.msra.mxu1 %v1051_v7  ;;  %v1102_v41 = vld [vmem:[%s1440_s0 + $0xa4] ss:$8 sps:$4 sm:$0xff]   ;;  %v1105_v43 = vld [vmem:[%s1440_s0 + $0xa0] ss:$8 sps:$4 sm:$0xff]   ;;  %v1106_v44 = vld [vmem:[%s1440_s0 + $0x34] ss:$8 sps:$4 sm:$0xff]  }
  0x10   :  { %403 = vmatprep.subr.bf16.mxu0 %v1052_v8  ;;  %1012 = vmatprep.subr.bf16.mxu1 %v1052_v8  ;;  %v1108_v45 = vld [vmem:[%s1440_s0 + $0xb4] ss:$8 sps:$4 sm:$0xff]   ;;  %v1110_v46 = vld [vmem:[%s1440_s0 + $0x30] ss:$8 sps:$4 sm:$0xff]   ;;  %v1112_v48 = vld [vmem:[%s1440_s0 + $0x44] ss:$8 sps:$4 sm:$0xff]  }
  0x11   :  { %v1111_v47 = vld [vmem:[%s1440_s0 + $0xb0] ss:$8 sps:$4 sm:$0xff]   ;;  %v1114_v49 = vld [vmem:[%s1440_s0 + $0xc4] ss:$8 sps:$4 sm:$0xff]   ;;  %v1116_v50 = vld [vmem:[%s1440_s0 + $0x40] ss:$8 sps:$4 sm:$0xff]  }
  0x12   :  { %v1117_v51 = vld [vmem:[%s1440_s0 + $0xc0] ss:$8 sps:$4 sm:$0xff]   ;;  %v1118_v52 = vld [vmem:[%s1440_s0 + $0x54] ss:$8 sps:$4 sm:$0xff]   ;;  %v1122_v54 = vld [vmem:[%s1440_s0 + $0x50] ss:$8 sps:$4 sm:$0xff]  }
  0x13   :  { %404 = vmatpush1.bf16.msra.mxu0 %v1054_v9  ;;  %1028 = vmatpush1.bf16.msra.mxu1 %v1054_v9  ;;  %v1120_v53 = vld [vmem:[%s1440_s0 + $0xd4] ss:$8 sps:$4 sm:$0xff]   ;;  %v1123_v55 = vld [vmem:[%s1440_s0 + $0xd0] ss:$8 sps:$4 sm:$0xff]   ;;  %v1124_v56 = vld [vmem:[%s1440_s0 + $0x64] ss:$8 sps:$4 sm:$0xff]  }
  0x14   :  { %405 = vmatprep.subr.bf16.mxu0 %v1055_v10  ;;  %1013 = vmatprep.subr.bf16.mxu1 %v1055_v10  ;;  %v1126_v57 = vld [vmem:[%s1440_s0 + $0xe4] ss:$8 sps:$4 sm:$0xff]   ;;  %v1128_v58 = vld [vmem:[%s1440_s0 + $0x60] ss:$8 sps:$4 sm:$0xff]   ;;  %v1130_v60 = vld [vmem:[%s1440_s0 + $0x74] ss:$8 sps:$4 sm:$0xff]  }
  0x15   :  { %v1129_v59 = vld [vmem:[%s1440_s0 + $0xe0] ss:$8 sps:$4 sm:$0xff]   ;;  %v1132_v61 = vld [vmem:[%s1440_s0 + $0xf4] ss:$8 sps:$4 sm:$0xff]   ;;  %v1134_v62 = vld [vmem:[%s1440_s0 + $0x70] ss:$8 sps:$4 sm:$0xff]  }
  0x16   :  { %v1135_v63 = vld [vmem:[%s1440_s0 + $0xf0] ss:$8 sps:$4 sm:$0xff]  }
  0x17   :  { %406 = vmatpush1.bf16.msra.mxu0 %v1057_v11  ;;  %1029 = vmatpush1.bf16.msra.mxu1 %v1057_v11 }
  0x18   :  { %407 = vmatprep.subr.bf16.mxu0 %v1058_v12  ;;  %1014 = vmatprep.subr.bf16.mxu1 %v1058_v12 }
  0x1b   :  { %408 = vmatpush1.bf16.msra.mxu0 %v1060_v14  ;;  %1030 = vmatpush1.bf16.msra.mxu1 %v1060_v14 }
  0x1c   :  { %409 = vmatprep.subr.bf16.mxu0 %v1061_v16  ;;  %1015 = vmatprep.subr.bf16.mxu1 %v1061_v16 }
  0x1f   :  { %410 = vmatpush1.bf16.msra.mxu0 %v1063_v17  ;;  %1031 = vmatpush1.bf16.msra.mxu1 %v1063_v17 }
  0x20   :  { %411 = vmatprep.subr.bf16.mxu0 %v1064_v18  ;;  %1016 = vmatprep.subr.bf16.mxu1 %v1064_v18 }
  0x23   :  { %412 = vmatpush1.bf16.msra.mxu0 %v1066_v19  ;;  %1032 = vmatpush1.bf16.msra.mxu1 %v1066_v19 }
  0x24   :  { %413 = vmatprep.subr.bf16.mxu0 %v1067_v20  ;;  %1017 = vmatprep.subr.bf16.mxu1 %v1067_v20 }
  0x27   :  { %414 = vmatpush1.bf16.msra.mxu0 %v1069_v21  ;;  %1033 = vmatpush1.bf16.msra.mxu1 %v1069_v21 }
  0x28   :  { %415 = vmatprep.subr.bf16.mxu0 %v1070_v22  ;;  %1018 = vmatprep.subr.bf16.mxu1 %v1070_v22 }
  0x2b   :  { %416 = vmatpush1.bf16.msra.mxu0 %v1072_v23  ;;  %1034 = vmatpush1.bf16.msra.mxu1 %v1072_v23 }
  0x2c   :  { %417 = vmatprep.subr.bf16.mxu0 %v1073_v24  ;;  %1019 = vmatprep.subr.bf16.mxu1 %v1073_v24 }
  0x2f   :  { %418 = vmatpush1.bf16.msra.mxu0 %v1075_v25  ;;  %1035 = vmatpush1.bf16.msra.mxu1 %v1075_v25 }
  0x30   :  { %419 = vmatprep.subr.bf16.mxu0 %v1076_v26  ;;  %1020 = vmatprep.subr.bf16.mxu1 %v1076_v26 }
  0x33   :  { %420 = vmatpush1.bf16.msra.mxu0 %v1078_v27  ;;  %1036 = vmatpush1.bf16.msra.mxu1 %v1078_v27 }
  0x34   :  { %421 = vmatprep.subr.bf16.mxu0 %v1079_v28  ;;  %1021 = vmatprep.subr.bf16.mxu1 %v1079_v28 }
  0x37   :  { %422 = vmatpush1.bf16.msra.mxu0 %v1081_v29  ;;  %1037 = vmatpush1.bf16.msra.mxu1 %v1081_v29 }
  0x38   :  { %423 = vmatprep.subr.bf16.mxu0 %v1082_v30  ;;  %1022 = vmatprep.subr.bf16.mxu1 %v1082_v30 }
  0x3b   :  { %424 = vmatpush1.bf16.msra.mxu0 %v1084_v31  ;;  %1038 = vmatpush1.bf16.msra.mxu1 %v1084_v31 }
  0x3c   :  { %425 = vmatprep.subr.bf16.mxu0 %v1085_v32  ;;  %1023 = vmatprep.subr.bf16.mxu1 %v1085_v32 }
  0x3f   :  { %426 = vmatpush1.bf16.msra.mxu0 %v1087_v33  ;;  %1039 = vmatpush1.bf16.msra.mxu1 %v1087_v33 }
  0x42   :  { %428 = vmatmul.mubr.bf16.vlgmr.msra.gmra.mrb[0].mxu0 %v1088_v34  ;;  %508 = vmatmul.mubr.bf16.vlgmr.msra.gmra.mrb[0].mxu1 %v1091_v35 }
  0x43   :  { %437 = vmatprep.mubr.bf16.mxu0 %v1094_v36  ;;  %517 = vmatprep.mubr.bf16.mxu1 %v1096_v37 }
  0x4a   :  { %438 = vmatmul.mubr.bf16.gmra.mrb[4].mxu0 %v1098_v38  ;;  %518 = vmatmul.mubr.bf16.gmra.mrb[4].mxu1 %v1099_v39 }
  0x4b   :  { %447 = vmatprep.mubr.bf16.mxu0 %v1100_v40  ;;  %527 = vmatprep.mubr.bf16.mxu1 %v1102_v41 }
  0x52   :  { %448 = vmatmul.mubr.bf16.gmra.mrb[8].mxu0 %v1104_v42  ;;  %528 = vmatmul.mubr.bf16.gmra.mrb[8].mxu1 %v1105_v43 }
  0x53   :  { %457 = vmatprep.mubr.bf16.mxu0 %v1106_v44  ;;  %537 = vmatprep.mubr.bf16.mxu1 %v1108_v45 }
  0x5a   :  { %458 = vmatmul.mubr.bf16.gmra.mrb[12].mxu0 %v1110_v46  ;;  %538 = vmatmul.mubr.bf16.gmra.mrb[12].mxu1 %v1111_v47 }
  0x5b   :  { %467 = vmatprep.mubr.bf16.mxu0 %v1112_v48  ;;  %547 = vmatprep.mubr.bf16.mxu1 %v1114_v49 }
  0x62   :  { %468 = vmatmul.mubr.bf16.gmra.mrb[16].mxu0 %v1116_v50  ;;  %548 = vmatmul.mubr.bf16.gmra.mrb[16].mxu1 %v1117_v51 }
  0x63   :  { %477 = vmatprep.mubr.bf16.mxu0 %v1118_v52  ;;  %557 = vmatprep.mubr.bf16.mxu1 %v1120_v53 }
  0x6a   :  { %478 = vmatmul.mubr.bf16.gmra.mrb[20].mxu0 %v1122_v54  ;;  %558 = vmatmul.mubr.bf16.gmra.mrb[20].mxu1 %v1123_v55 }
  0x6b   :  { %487 = vmatprep.mubr.bf16.mxu0 %v1124_v56  ;;  %567 = vmatprep.mubr.bf16.mxu1 %v1126_v57 }
  0x72   :  { %488 = vmatmul.mubr.bf16.gmra.mrb[24].mxu0 %v1128_v58  ;;  %568 = vmatmul.mubr.bf16.gmra.mrb[24].mxu1 %v1129_v59 }
  0x73   :  { %497 = vmatprep.mubr.bf16.mxu0 %v1130_v60  ;;  %577 = vmatprep.mubr.bf16.mxu1 %v1132_v61 }
  0x7a   :  { %498 = vmatmul.mubr.bf16.gmra.mrb[28].mxu0 %v1134_v62  ;;  %578 = vmatmul.mubr.bf16.gmra.mrb[28].mxu1 %v1135_v63 }
 0x115   :  { %v429_v0 = vpop.f32.mrb[0].mxu0  ;;  %v509_v1 = vpop.f32.mrb[0].mxu1 }
 0x116   :  { %v588_v2 = vmax.f32 %v429_v0, 0.0  ;;  %v620_v3 = vmax.f32 %v509_v1, 0.0  ;;  %v431_v4 = vpop.f32.mrb[1].mxu0  ;;  %v511_v5 = vpop.f32.mrb[1].mxu1 }
 0x117   :  { %v589_v6 = vmax.f32 %v431_v4, 0.0  ;;  %v621_v7 = vmax.f32 %v511_v5, 0.0  ;;  %v433_v8 = vpop.f32.mrb[2].mxu0  ;;  %v513_v9 = vpop.f32.mrb[2].mxu1 }
 0x118   :  { %v590_v10 = vmax.f32 %v433_v8, 0.0  ;;  %v622_v11 = vmax.f32 %v513_v9, 0.0  ;;  %v435_v12 = vpop.f32.mrb[3].mxu0  ;;  %v515_v13 = vpop.f32.mrb[3].mxu1 }
 0x119   :  { %v976_v14 = vpack.c.bf16 %v589_v6, %v588_v2  ;;  %v992_v15 = vpack.c.bf16 %v621_v7, %v620_v3  ;;  %v591_v16 = vmax.f32 %v435_v12, 0.0  ;;  %v623_v17 = vmax.f32 %v515_v13, 0.0 }
 0x11b   :  { %844 = vst [vmem:[%s1441_s2] sm:$0xff] %v976_v14  ;;  %860 = vst [vmem:[%s1441_s2 + $0x80] sm:$0xff] %v992_v15  ;;  %v977_v18 = vpack.c.bf16 %v591_v16, %v590_v10  ;;  %v993_v19 = vpack.c.bf16 %v623_v17, %v622_v11 }
 0x11d   :  { %845 = vst [vmem:[%s1441_s2 + $0x8] sm:$0xff] %v977_v18  ;;  %861 = vst [vmem:[%s1441_s2 + $0x88] sm:$0xff] %v993_v19  ;;  %v439_v20 = vpop.f32.mrb[4].mxu0  ;;  %v519_v21 = vpop.f32.mrb[4].mxu1 }
 0x11e   :  { %v592_v22 = vmax.f32 %v439_v20, 0.0  ;;  %v624_v23 = vmax.f32 %v519_v21, 0.0  ;;  %v441_v24 = vpop.f32.mrb[5].mxu0  ;;  %v521_v25 = vpop.f32.mrb[5].mxu1 }
 0x11f   :  { %v593_v26 = vmax.f32 %v441_v24, 0.0  ;;  %v625_v27 = vmax.f32 %v521_v25, 0.0  ;;  %v443_v28 = vpop.f32.mrb[6].mxu0  ;;  %v523_v29 = vpop.f32.mrb[6].mxu1 }
 0x120   :  { %v594_v30 = vmax.f32 %v443_v28, 0.0  ;;  %v626_v31 = vmax.f32 %v523_v29, 0.0  ;;  %v445_v32 = vpop.f32.mrb[7].mxu0  ;;  %v525_v33 = vpop.f32.mrb[7].mxu1 }
 0x121   :  { %v978_v34 = vpack.c.bf16 %v593_v26, %v592_v22  ;;  %v994_v35 = vpack.c.bf16 %v625_v27, %v624_v23  ;;  %v595_v36 = vmax.f32 %v445_v32, 0.0  ;;  %v627_v37 = vmax.f32 %v525_v33, 0.0 }
 0x123   :  { %846 = vst [vmem:[%s1441_s2 + $0x10] sm:$0xff] %v978_v34  ;;  %862 = vst [vmem:[%s1441_s2 + $0x90] sm:$0xff] %v994_v35  ;;  %v979_v38 = vpack.c.bf16 %v595_v36, %v594_v30  ;;  %v995_v39 = vpack.c.bf16 %v627_v37, %v626_v31 }
 0x125   :  { %847 = vst [vmem:[%s1441_s2 + $0x18] sm:$0xff] %v979_v38  ;;  %863 = vst [vmem:[%s1441_s2 + $0x98] sm:$0xff] %v995_v39  ;;  %v449_v40 = vpop.f32.mrb[8].mxu0  ;;  %v529_v41 = vpop.f32.mrb[8].mxu1 }
 0x126   :  { %v596_v42 = vmax.f32 %v449_v40, 0.0  ;;  %v628_v43 = vmax.f32 %v529_v41, 0.0  ;;  %v451_v44 = vpop.f32.mrb[9].mxu0  ;;  %v531_v45 = vpop.f32.mrb[9].mxu1 }
 0x127   :  { %v597_v46 = vmax.f32 %v451_v44, 0.0  ;;  %v629_v47 = vmax.f32 %v531_v45, 0.0  ;;  %v453_v48 = vpop.f32.mrb[10].mxu0  ;;  %v533_v49 = vpop.f32.mrb[10].mxu1 }
 0x128   :  { %v598_v50 = vmax.f32 %v453_v48, 0.0  ;;  %v630_v51 = vmax.f32 %v533_v49, 0.0  ;;  %v455_v52 = vpop.f32.mrb[11].mxu0  ;;  %v535_v53 = vpop.f32.mrb[11].mxu1 }
 0x129   :  { %v980_v54 = vpack.c.bf16 %v597_v46, %v596_v42  ;;  %v996_v55 = vpack.c.bf16 %v629_v47, %v628_v43  ;;  %v599_v56 = vmax.f32 %v455_v52, 0.0  ;;  %v631_v57 = vmax.f32 %v535_v53, 0.0 }
 0x12b   :  { %848 = vst [vmem:[%s1441_s2 + $0x20] sm:$0xff] %v980_v54  ;;  %864 = vst [vmem:[%s1441_s2 + $0xa0] sm:$0xff] %v996_v55  ;;  %v981_v58 = vpack.c.bf16 %v599_v56, %v598_v50  ;;  %v997_v59 = vpack.c.bf16 %v631_v57, %v630_v51 }
 0x12d   :  { %849 = vst [vmem:[%s1441_s2 + $0x28] sm:$0xff] %v981_v58  ;;  %865 = vst [vmem:[%s1441_s2 + $0xa8] sm:$0xff] %v997_v59  ;;  %v459_v60 = vpop.f32.mrb[12].mxu0  ;;  %v539_v61 = vpop.f32.mrb[12].mxu1 }
 0x12e   :  { %v600_v62 = vmax.f32 %v459_v60, 0.0  ;;  %v632_v63 = vmax.f32 %v539_v61, 0.0  ;;  %v461_v0 = vpop.f32.mrb[13].mxu0  ;;  %v541_v1 = vpop.f32.mrb[13].mxu1 }
 0x12f   :  { %v601_v2 = vmax.f32 %v461_v0, 0.0  ;;  %v633_v3 = vmax.f32 %v541_v1, 0.0  ;;  %v463_v4 = vpop.f32.mrb[14].mxu0  ;;  %v543_v5 = vpop.f32.mrb[14].mxu1 }
 0x130   :  { %v602_v6 = vmax.f32 %v463_v4, 0.0  ;;  %v634_v7 = vmax.f32 %v543_v5, 0.0  ;;  %v465_v8 = vpop.f32.mrb[15].mxu0  ;;  %v545_v9 = vpop.f32.mrb[15].mxu1 }
 0x131   :  { %v982_v10 = vpack.c.bf16 %v601_v2, %v600_v62  ;;  %v998_v11 = vpack.c.bf16 %v633_v3, %v632_v63  ;;  %v603_v12 = vmax.f32 %v465_v8, 0.0  ;;  %v635_v13 = vmax.f32 %v545_v9, 0.0 }
 0x133   :  { %850 = vst [vmem:[%s1441_s2 + $0x30] sm:$0xff] %v982_v10  ;;  %866 = vst [vmem:[%s1441_s2 + $0xb0] sm:$0xff] %v998_v11  ;;  %v983_v14 = vpack.c.bf16 %v603_v12, %v602_v6  ;;  %v999_v15 = vpack.c.bf16 %v635_v13, %v634_v7 }
 0x135   :  { %851 = vst [vmem:[%s1441_s2 + $0x38] sm:$0xff] %v983_v14  ;;  %867 = vst [vmem:[%s1441_s2 + $0xb8] sm:$0xff] %v999_v15  ;;  %v469_v16 = vpop.f32.mrb[16].mxu0  ;;  %v549_v17 = vpop.f32.mrb[16].mxu1 }
 0x136   :  { %v604_v18 = vmax.f32 %v469_v16, 0.0  ;;  %v636_v19 = vmax.f32 %v549_v17, 0.0  ;;  %v471_v20 = vpop.f32.mrb[17].mxu0  ;;  %v551_v21 = vpop.f32.mrb[17].mxu1 }
 0x137   :  { %v605_v22 = vmax.f32 %v471_v20, 0.0  ;;  %v637_v23 = vmax.f32 %v551_v21, 0.0  ;;  %v473_v24 = vpop.f32.mrb[18].mxu0  ;;  %v553_v25 = vpop.f32.mrb[18].mxu1 }
 0x138   :  { %v606_v26 = vmax.f32 %v473_v24, 0.0  ;;  %v638_v27 = vmax.f32 %v553_v25, 0.0  ;;  %v475_v28 = vpop.f32.mrb[19].mxu0  ;;  %v555_v29 = vpop.f32.mrb[19].mxu1 }
 0x139   :  { %v984_v30 = vpack.c.bf16 %v605_v22, %v604_v18  ;;  %v1000_v31 = vpack.c.bf16 %v637_v23, %v636_v19  ;;  %v607_v32 = vmax.f32 %v475_v28, 0.0  ;;  %v639_v33 = vmax.f32 %v555_v29, 0.0 }
 0x13b   :  { %852 = vst [vmem:[%s1441_s2 + $0x40] sm:$0xff] %v984_v30  ;;  %868 = vst [vmem:[%s1441_s2 + $0xc0] sm:$0xff] %v1000_v31  ;;  %v985_v34 = vpack.c.bf16 %v607_v32, %v606_v26  ;;  %v1001_v35 = vpack.c.bf16 %v639_v33, %v638_v27 }
 0x13d   :  { %853 = vst [vmem:[%s1441_s2 + $0x48] sm:$0xff] %v985_v34  ;;  %869 = vst [vmem:[%s1441_s2 + $0xc8] sm:$0xff] %v1001_v35  ;;  %v479_v36 = vpop.f32.mrb[20].mxu0  ;;  %v559_v37 = vpop.f32.mrb[20].mxu1 }
 0x13e   :  { %v608_v38 = vmax.f32 %v479_v36, 0.0  ;;  %v640_v39 = vmax.f32 %v559_v37, 0.0  ;;  %v481_v40 = vpop.f32.mrb[21].mxu0  ;;  %v561_v41 = vpop.f32.mrb[21].mxu1 }
 0x13f   :  { %v609_v42 = vmax.f32 %v481_v40, 0.0  ;;  %v641_v43 = vmax.f32 %v561_v41, 0.0  ;;  %v483_v44 = vpop.f32.mrb[22].mxu0  ;;  %v563_v45 = vpop.f32.mrb[22].mxu1 }
 0x140   :  { %v610_v46 = vmax.f32 %v483_v44, 0.0  ;;  %v642_v47 = vmax.f32 %v563_v45, 0.0  ;;  %v485_v48 = vpop.f32.mrb[23].mxu0  ;;  %v565_v49 = vpop.f32.mrb[23].mxu1 }
 0x141   :  { %v986_v50 = vpack.c.bf16 %v609_v42, %v608_v38  ;;  %v1002_v51 = vpack.c.bf16 %v641_v43, %v640_v39  ;;  %v611_v52 = vmax.f32 %v485_v48, 0.0  ;;  %v643_v53 = vmax.f32 %v565_v49, 0.0 }
 0x143   :  { %854 = vst [vmem:[%s1441_s2 + $0x50] sm:$0xff] %v986_v50  ;;  %870 = vst [vmem:[%s1441_s2 + $0xd0] sm:$0xff] %v1002_v51  ;;  %v987_v54 = vpack.c.bf16 %v611_v52, %v610_v46  ;;  %v1003_v55 = vpack.c.bf16 %v643_v53, %v642_v47 }
 0x145   :  { %855 = vst [vmem:[%s1441_s2 + $0x58] sm:$0xff] %v987_v54  ;;  %871 = vst [vmem:[%s1441_s2 + $0xd8] sm:$0xff] %v1003_v55  ;;  %v489_v56 = vpop.f32.mrb[24].mxu0  ;;  %v569_v57 = vpop.f32.mrb[24].mxu1 }
 0x146   :  { %v612_v58 = vmax.f32 %v489_v56, 0.0  ;;  %v644_v59 = vmax.f32 %v569_v57, 0.0  ;;  %v491_v60 = vpop.f32.mrb[25].mxu0  ;;  %v571_v61 = vpop.f32.mrb[25].mxu1 }
 0x147   :  { %v613_v62 = vmax.f32 %v491_v60, 0.0  ;;  %v645_v63 = vmax.f32 %v571_v61, 0.0  ;;  %v493_v0 = vpop.f32.mrb[26].mxu0  ;;  %v573_v1 = vpop.f32.mrb[26].mxu1 }
 0x148   :  { %v614_v2 = vmax.f32 %v493_v0, 0.0  ;;  %v646_v3 = vmax.f32 %v573_v1, 0.0  ;;  %v495_v4 = vpop.f32.mrb[27].mxu0  ;;  %v575_v5 = vpop.f32.mrb[27].mxu1 }
 0x149   :  { %v988_v6 = vpack.c.bf16 %v613_v62, %v612_v58  ;;  %v1004_v7 = vpack.c.bf16 %v645_v63, %v644_v59  ;;  %v615_v8 = vmax.f32 %v495_v4, 0.0  ;;  %v647_v9 = vmax.f32 %v575_v5, 0.0 }
 0x14b   :  { %856 = vst [vmem:[%s1441_s2 + $0x60] sm:$0xff] %v988_v6  ;;  %872 = vst [vmem:[%s1441_s2 + $0xe0] sm:$0xff] %v1004_v7  ;;  %v989_v10 = vpack.c.bf16 %v615_v8, %v614_v2  ;;  %v1005_v11 = vpack.c.bf16 %v647_v9, %v646_v3 }
 0x14d   :  { %857 = vst [vmem:[%s1441_s2 + $0x68] sm:$0xff] %v989_v10  ;;  %873 = vst [vmem:[%s1441_s2 + $0xe8] sm:$0xff] %v1005_v11  ;;  %v499_v12 = vpop.f32.mrb[28].mxu0  ;;  %v579_v13 = vpop.f32.mrb[28].mxu1 }
 0x14e   :  { %v616_v14 = vmax.f32 %v499_v12, 0.0  ;;  %v648_v15 = vmax.f32 %v579_v13, 0.0  ;;  %v501_v16 = vpop.f32.mrb[29].mxu0  ;;  %v581_v17 = vpop.f32.mrb[29].mxu1 }
 0x14f   :  { %v617_v18 = vmax.f32 %v501_v16, 0.0  ;;  %v649_v19 = vmax.f32 %v581_v17, 0.0  ;;  %v503_v20 = vpop.f32.mrb[30].mxu0  ;;  %v583_v21 = vpop.f32.mrb[30].mxu1 }
 0x150   :  { %v618_v22 = vmax.f32 %v503_v20, 0.0  ;;  %v650_v23 = vmax.f32 %v583_v21, 0.0  ;;  %v505_v24 = vpop.f32.mrb[31].mxu0  ;;  %v585_v25 = vpop.f32.mrb[31].mxu1 }
 0x151   :  { %v990_v26 = vpack.c.bf16 %v617_v18, %v616_v14  ;;  %v1006_v27 = vpack.c.bf16 %v649_v19, %v648_v15  ;;  %v619_v28 = vmax.f32 %v505_v24, 0.0  ;;  %v651_v29 = vmax.f32 %v585_v25, 0.0 }
 0x153   :  { %858 = vst [vmem:[%s1441_s2 + $0x70] sm:$0xff] %v990_v26  ;;  %874 = vst [vmem:[%s1441_s2 + $0xf0] sm:$0xff] %v1006_v27  ;;  %v991_v30 = vpack.c.bf16 %v619_v28, %v618_v22  ;;  %v1007_v31 = vpack.c.bf16 %v651_v29, %v650_v23 }
 0x155   :  { %859 = vst [vmem:[%s1441_s2 + $0x78] sm:$0xff] %v991_v30  ;;  %875 = vst [vmem:[%s1441_s2 + $0xf8] sm:$0xff] %v1007_v31 }

// kernel: gae_forward.10
= control target key start
LH: loop header
LB: loop body
LE: loop exit
PB: predicated region body
PF: predicated region fallthrough
CT: control target
= control target key end

     0   :  { %s1375_s1 = inlined_call_operand.vmem [shape: bf16[256,256], index: 1, kind: input, shape index: {}]   ;;  %s1376_s0 = inlined_call_operand.vmem [shape: bf16[256,256], index: 0, kind: input, shape index: {}]   ;;  %s1377_s2 = inlined_call_operand.vmem [shape: bf16[256,256], index: 2, kind: output, shape index: {}]  }
   0x1   :  { %v976_v0 = vld [vmem:[%s1375_s1 + $0x4] ss:$8 sps:$4 sm:$0xff]   ;;  %v978_v1 = vld [vmem:[%s1375_s1] ss:$8 sps:$4 sm:$0xff]   ;;  %v979_v2 = vld [vmem:[%s1375_s1 + $0x14] ss:$8 sps:$4 sm:$0xff]  }
   0x2   :  { %395 = vmatprep.subr.bf16.mxu0 %v976_v0  ;;  %944 = vmatprep.subr.bf16.mxu1 %v976_v0  ;;  %v981_v3 = vld [vmem:[%s1375_s1 + $0x10] ss:$8 sps:$4 sm:$0xff]   ;;  %v982_v4 = vld [vmem:[%s1375_s1 + $0x24] ss:$8 sps:$4 sm:$0xff]   ;;  %v984_v5 = vld [vmem:[%s1375_s1 + $0x20] ss:$8 sps:$4 sm:$0xff]  }
   0x3   :  { %396 = vmatpush1.bf16.msra.mxu0 %v978_v1  ;;  %960 = vmatpush1.bf16.msra.mxu1 %v978_v1  ;;  %v985_v6 = vld [vmem:[%s1375_s1 + $0x34] ss:$8 sps:$4 sm:$0xff]   ;;  %v987_v7 = vld [vmem:[%s1375_s1 + $0x30] ss:$8 sps:$4 sm:$0xff]   ;;  %v988_v8 = vld [vmem:[%s1375_s1 + $0x44] ss:$8 sps:$4 sm:$0xff]  }
   0x4   :  { %397 = vmatprep.subr.bf16.mxu0 %v979_v2  ;;  %945 = vmatprep.subr.bf16.mxu1 %v979_v2  ;;  %v990_v9 = vld [vmem:[%s1375_s1 + $0x40] ss:$8 sps:$4 sm:$0xff]   ;;  %v991_v10 = vld [vmem:[%s1375_s1 + $0x54] ss:$8 sps:$4 sm:$0xff]   ;;  %v993_v11 = vld [vmem:[%s1375_s1 + $0x50] ss:$8 sps:$4 sm:$0xff]  }
   0x5   :  { %v994_v12 = vld [vmem:[%s1375_s1 + $0x64] ss:$8 sps:$4 sm:$0xff]   ;;  %v996_v14 = vld [vmem:[%s1375_s1 + $0x60] ss:$8 sps:$4 sm:$0xff]   ;;  %v997_v16 = vld [vmem:[%s1375_s1 + $0x74] ss:$8 sps:$4 sm:$0xff]  }
   0x6   :  { %v1026_v13 = vld [vmem:[%s1376_s0 + $0x4] ss:$8 sps:$4 sm:$0xff]   ;;  %v999_v17 = vld [vmem:[%s1375_s1 + $0x70] ss:$8 sps:$4 sm:$0xff]   ;;  %v1002_v19 = vld [vmem:[%s1375_s1 + $0x80] ss:$8 sps:$4 sm:$0xff]  }
   0x7   :  { %398 = vmatpush1.bf16.msra.mxu0 %v981_v3  ;;  %961 = vmatpush1.bf16.msra.mxu1 %v981_v3  ;;  %v1029_v15 = vld [vmem:[%s1376_s0 + $0x84] ss:$8 sps:$4 sm:$0xff]   ;;  %v1003_v20 = vld [vmem:[%s1375_s1 + $0x94] ss:$8 sps:$4 sm:$0xff]   ;;  %v1005_v21 = vld [vmem:[%s1375_s1 + $0x90] ss:$8 sps:$4 sm:$0xff]  }
   0x8   :  { %399 = vmatprep.subr.bf16.mxu0 %v982_v4  ;;  %946 = vmatprep.subr.bf16.mxu1 %v982_v4  ;;  %v1000_v18 = vld [vmem:[%s1375_s1 + $0x84] ss:$8 sps:$4 sm:$0xff]   ;;  %v1008_v23 = vld [vmem:[%s1375_s1 + $0xa0] ss:$8 sps:$4 sm:$0xff]   ;;  %v1009_v24 = vld [vmem:[%s1375_s1 + $0xb4] ss:$8 sps:$4 sm:$0xff]  }
   0x9   :  { %427 = vmatprep.mubr.bf16.mxu0 %v1026_v13  ;;  %507 = vmatprep.mubr.bf16.mxu1 %v1029_v15  ;;  %v1006_v22 = vld [vmem:[%s1375_s1 + $0xa4] ss:$8 sps:$4 sm:$0xff]   ;;  %v1011_v25 = vld [vmem:[%s1375_s1 + $0xb0] ss:$8 sps:$4 sm:$0xff]   ;;  %v1014_v27 = vld [vmem:[%s1375_s1 + $0xc0] ss:$8 sps:$4 sm:$0xff]  }
   0xa   :  { %v1012_v26 = vld [vmem:[%s1375_s1 + $0xc4] ss:$8 sps:$4 sm:$0xff]   ;;  %v1015_v28 = vld [vmem:[%s1375_s1 + $0xd4] ss:$8 sps:$4 sm:$0xff]   ;;  %v1017_v29 = vld [vmem:[%s1375_s1 + $0xd0] ss:$8 sps:$4 sm:$0xff]  }
   0xb   :  { %400 = vmatpush1.bf16.msra.mxu0 %v984_v5  ;;  %962 = vmatpush1.bf16.msra.mxu1 %v984_v5  ;;  %v1018_v30 = vld [vmem:[%s1375_s1 + $0xe4] ss:$8 sps:$4 sm:$0xff]   ;;  %v1020_v31 = vld [vmem:[%s1375_s1 + $0xe0] ss:$8 sps:$4 sm:$0xff]   ;;  %v1021_v32 = vld [vmem:[%s1375_s1 + $0xf4] ss:$8 sps:$4 sm:$0xff]  }
   0xc   :  { %401 = vmatprep.subr.bf16.mxu0 %v985_v6  ;;  %947 = vmatprep.subr.bf16.mxu1 %v985_v6  ;;  %v1023_v33 = vld [vmem:[%s1375_s1 + $0xf0] ss:$8 sps:$4 sm:$0xff]   ;;  %v1024_v34 = vld [vmem:[%s1376_s0] ss:$8 sps:$4 sm:$0xff]   ;;  %v1030_v36 = vld [vmem:[%s1376_s0 + $0x14] ss:$8 sps:$4 sm:$0xff]  }
   0xd   :  { %v1027_v35 = vld [vmem:[%s1376_s0 + $0x80] ss:$8 sps:$4 sm:$0xff]   ;;  %v1032_v37 = vld [vmem:[%s1376_s0 + $0x94] ss:$8 sps:$4 sm:$0xff]   ;;  %v1034_v38 = vld [vmem:[%s1376_s0 + $0x10] ss:$8 sps:$4 sm:$0xff]  }
   0xe   :  { %v1035_v39 = vld [vmem:[%s1376_s0 + $0x90] ss:$8 sps:$4 sm:$0xff]   ;;  %v1036_v40 = vld [vmem:[%s1376_s0 + $0x24] ss:$8 sps:$4 sm:$0xff]   ;;  %v1040_v42 = vld [vmem:[%s1376_s0 + $0x20] ss:$8 sps:$4 sm:$0xff]  }
   0xf   :  { %402 = vmatpush1.bf16.msra.mxu0 %v987_v7  ;;  %963 = vmatpush1.bf16.msra.mxu1 %v987_v7  ;;  %v1038_v41 = vld [vmem:[%s1376_s0 + $0xa4] ss:$8 sps:$4 sm:$0xff]   ;;  %v1041_v43 = vld [vmem:[%s1376_s0 + $0xa0] ss:$8 sps:$4 sm:$0xff]   ;;  %v1042_v44 = vld [vmem:[%s1376_s0 + $0x34] ss:$8 sps:$4 sm:$0xff]  }
  0x10   :  { %403 = vmatprep.subr.bf16.mxu0 %v988_v8  ;;  %948 = vmatprep.subr.bf16.mxu1 %v988_v8  ;;  %v1044_v45 = vld [vmem:[%s1376_s0 + $0xb4] ss:$8 sps:$4 sm:$0xff]   ;;  %v1046_v46 = vld [vmem:[%s1376_s0 + $0x30] ss:$8 sps:$4 sm:$0xff]   ;;  %v1048_v48 = vld [vmem:[%s1376_s0 + $0x44] ss:$8 sps:$4 sm:$0xff]  }
  0x11   :  { %v1047_v47 = vld [vmem:[%s1376_s0 + $0xb0] ss:$8 sps:$4 sm:$0xff]   ;;  %v1050_v49 = vld [vmem:[%s1376_s0 + $0xc4] ss:$8 sps:$4 sm:$0xff]   ;;  %v1052_v50 = vld [vmem:[%s1376_s0 + $0x40] ss:$8 sps:$4 sm:$0xff]  }
  0x12   :  { %v1053_v51 = vld [vmem:[%s1376_s0 + $0xc0] ss:$8 sps:$4 sm:$0xff]   ;;  %v1054_v52 = vld [vmem:[%s1376_s0 + $0x54] ss:$8 sps:$4 sm:$0xff]   ;;  %v1058_v54 = vld [vmem:[%s1376_s0 + $0x50] ss:$8 sps:$4 sm:$0xff]  }
  0x13   :  { %404 = vmatpush1.bf16.msra.mxu0 %v990_v9  ;;  %964 = vmatpush1.bf16.msra.mxu1 %v990_v9  ;;  %v1056_v53 = vld [vmem:[%s1376_s0 + $0xd4] ss:$8 sps:$4 sm:$0xff]   ;;  %v1059_v55 = vld [vmem:[%s1376_s0 + $0xd0] ss:$8 sps:$4 sm:$0xff]   ;;  %v1060_v56 = vld [vmem:[%s1376_s0 + $0x64] ss:$8 sps:$4 sm:$0xff]  }
  0x14   :  { %405 = vmatprep.subr.bf16.mxu0 %v991_v10  ;;  %949 = vmatprep.subr.bf16.mxu1 %v991_v10  ;;  %v1062_v57 = vld [vmem:[%s1376_s0 + $0xe4] ss:$8 sps:$4 sm:$0xff]   ;;  %v1064_v58 = vld [vmem:[%s1376_s0 + $0x60] ss:$8 sps:$4 sm:$0xff]   ;;  %v1066_v60 = vld [vmem:[%s1376_s0 + $0x74] ss:$8 sps:$4 sm:$0xff]  }
  0x15   :  { %v1065_v59 = vld [vmem:[%s1376_s0 + $0xe0] ss:$8 sps:$4 sm:$0xff]   ;;  %v1068_v61 = vld [vmem:[%s1376_s0 + $0xf4] ss:$8 sps:$4 sm:$0xff]   ;;  %v1070_v62 = vld [vmem:[%s1376_s0 + $0x70] ss:$8 sps:$4 sm:$0xff]  }
  0x16   :  { %v1071_v63 = vld [vmem:[%s1376_s0 + $0xf0] ss:$8 sps:$4 sm:$0xff]  }
  0x17   :  { %406 = vmatpush1.bf16.msra.mxu0 %v993_v11  ;;  %965 = vmatpush1.bf16.msra.mxu1 %v993_v11 }
  0x18   :  { %407 = vmatprep.subr.bf16.mxu0 %v994_v12  ;;  %950 = vmatprep.subr.bf16.mxu1 %v994_v12 }
  0x1b   :  { %408 = vmatpush1.bf16.msra.mxu0 %v996_v14  ;;  %966 = vmatpush1.bf16.msra.mxu1 %v996_v14 }
  0x1c   :  { %409 = vmatprep.subr.bf16.mxu0 %v997_v16  ;;  %951 = vmatprep.subr.bf16.mxu1 %v997_v16 }
  0x1f   :  { %410 = vmatpush1.bf16.msra.mxu0 %v999_v17  ;;  %967 = vmatpush1.bf16.msra.mxu1 %v999_v17 }
  0x20   :  { %411 = vmatprep.subr.bf16.mxu0 %v1000_v18  ;;  %952 = vmatprep.subr.bf16.mxu1 %v1000_v18 }
  0x23   :  { %412 = vmatpush1.bf16.msra.mxu0 %v1002_v19  ;;  %968 = vmatpush1.bf16.msra.mxu1 %v1002_v19 }
  0x24   :  { %413 = vmatprep.subr.bf16.mxu0 %v1003_v20  ;;  %953 = vmatprep.subr.bf16.mxu1 %v1003_v20 }
  0x27   :  { %414 = vmatpush1.bf16.msra.mxu0 %v1005_v21  ;;  %969 = vmatpush1.bf16.msra.mxu1 %v1005_v21 }
  0x28   :  { %415 = vmatprep.subr.bf16.mxu0 %v1006_v22  ;;  %954 = vmatprep.subr.bf16.mxu1 %v1006_v22 }
  0x2b   :  { %416 = vmatpush1.bf16.msra.mxu0 %v1008_v23  ;;  %970 = vmatpush1.bf16.msra.mxu1 %v1008_v23 }
  0x2c   :  { %417 = vmatprep.subr.bf16.mxu0 %v1009_v24  ;;  %955 = vmatprep.subr.bf16.mxu1 %v1009_v24 }
  0x2f   :  { %418 = vmatpush1.bf16.msra.mxu0 %v1011_v25  ;;  %971 = vmatpush1.bf16.msra.mxu1 %v1011_v25 }
  0x30   :  { %419 = vmatprep.subr.bf16.mxu0 %v1012_v26  ;;  %956 = vmatprep.subr.bf16.mxu1 %v1012_v26 }
  0x33   :  { %420 = vmatpush1.bf16.msra.mxu0 %v1014_v27  ;;  %972 = vmatpush1.bf16.msra.mxu1 %v1014_v27 }
  0x34   :  { %421 = vmatprep.subr.bf16.mxu0 %v1015_v28  ;;  %957 = vmatprep.subr.bf16.mxu1 %v1015_v28 }
  0x37   :  { %422 = vmatpush1.bf16.msra.mxu0 %v1017_v29  ;;  %973 = vmatpush1.bf16.msra.mxu1 %v1017_v29 }
  0x38   :  { %423 = vmatprep.subr.bf16.mxu0 %v1018_v30  ;;  %958 = vmatprep.subr.bf16.mxu1 %v1018_v30 }
  0x3b   :  { %424 = vmatpush1.bf16.msra.mxu0 %v1020_v31  ;;  %974 = vmatpush1.bf16.msra.mxu1 %v1020_v31 }
  0x3c   :  { %425 = vmatprep.subr.bf16.mxu0 %v1021_v32  ;;  %959 = vmatprep.subr.bf16.mxu1 %v1021_v32 }
  0x3f   :  { %426 = vmatpush1.bf16.msra.mxu0 %v1023_v33  ;;  %975 = vmatpush1.bf16.msra.mxu1 %v1023_v33 }
  0x42   :  { %428 = vmatmul.mubr.bf16.vlgmr.msra.gmra.mrb[0].mxu0 %v1024_v34  ;;  %508 = vmatmul.mubr.bf16.vlgmr.msra.gmra.mrb[0].mxu1 %v1027_v35 }
  0x43   :  { %437 = vmatprep.mubr.bf16.mxu0 %v1030_v36  ;;  %517 = vmatprep.mubr.bf16.mxu1 %v1032_v37 }
  0x4a   :  { %438 = vmatmul.mubr.bf16.gmra.mrb[4].mxu0 %v1034_v38  ;;  %518 = vmatmul.mubr.bf16.gmra.mrb[4].mxu1 %v1035_v39 }
  0x4b   :  { %447 = vmatprep.mubr.bf16.mxu0 %v1036_v40  ;;  %527 = vmatprep.mubr.bf16.mxu1 %v1038_v41 }
  0x52   :  { %448 = vmatmul.mubr.bf16.gmra.mrb[8].mxu0 %v1040_v42  ;;  %528 = vmatmul.mubr.bf16.gmra.mrb[8].mxu1 %v1041_v43 }
  0x53   :  { %457 = vmatprep.mubr.bf16.mxu0 %v1042_v44  ;;  %537 = vmatprep.mubr.bf16.mxu1 %v1044_v45 }
  0x5a   :  { %458 = vmatmul.mubr.bf16.gmra.mrb[12].mxu0 %v1046_v46  ;;  %538 = vmatmul.mubr.bf16.gmra.mrb[12].mxu1 %v1047_v47 }
  0x5b   :  { %467 = vmatprep.mubr.bf16.mxu0 %v1048_v48  ;;  %547 = vmatprep.mubr.bf16.mxu1 %v1050_v49 }
  0x62   :  { %468 = vmatmul.mubr.bf16.gmra.mrb[16].mxu0 %v1052_v50  ;;  %548 = vmatmul.mubr.bf16.gmra.mrb[16].mxu1 %v1053_v51 }
  0x63   :  { %477 = vmatprep.mubr.bf16.mxu0 %v1054_v52  ;;  %557 = vmatprep.mubr.bf16.mxu1 %v1056_v53 }
  0x6a   :  { %478 = vmatmul.mubr.bf16.gmra.mrb[20].mxu0 %v1058_v54  ;;  %558 = vmatmul.mubr.bf16.gmra.mrb[20].mxu1 %v1059_v55 }
  0x6b   :  { %487 = vmatprep.mubr.bf16.mxu0 %v1060_v56  ;;  %567 = vmatprep.mubr.bf16.mxu1 %v1062_v57 }
  0x72   :  { %488 = vmatmul.mubr.bf16.gmra.mrb[24].mxu0 %v1064_v58  ;;  %568 = vmatmul.mubr.bf16.gmra.mrb[24].mxu1 %v1065_v59 }
  0x73   :  { %497 = vmatprep.mubr.bf16.mxu0 %v1066_v60  ;;  %577 = vmatprep.mubr.bf16.mxu1 %v1068_v61 }
  0x7a   :  { %498 = vmatmul.mubr.bf16.gmra.mrb[28].mxu0 %v1070_v62  ;;  %578 = vmatmul.mubr.bf16.gmra.mrb[28].mxu1 %v1071_v63 }
 0x115   :  { %v429_v0 = vpop.f32.mrb[0].mxu0  ;;  %v509_v1 = vpop.f32.mrb[0].mxu1 }
 0x116   :  { %v431_v2 = vpop.f32.mrb[1].mxu0  ;;  %v511_v3 = vpop.f32.mrb[1].mxu1 }
 0x117   :  { %v912_v4 = vpack.c.bf16 %v431_v2, %v429_v0  ;;  %v928_v5 = vpack.c.bf16 %v511_v3, %v509_v1  ;;  %v433_v6 = vpop.f32.mrb[2].mxu0  ;;  %v513_v7 = vpop.f32.mrb[2].mxu1 }
 0x118   :  { %v435_v8 = vpop.f32.mrb[3].mxu0  ;;  %v515_v9 = vpop.f32.mrb[3].mxu1 }
 0x119   :  { %780 = vst [vmem:[%s1377_s2] sm:$0xff] %v912_v4  ;;  %796 = vst [vmem:[%s1377_s2 + $0x80] sm:$0xff] %v928_v5  ;;  %v913_v10 = vpack.c.bf16 %v435_v8, %v433_v6  ;;  %v929_v11 = vpack.c.bf16 %v515_v9, %v513_v7 }
 0x11b   :  { %781 = vst [vmem:[%s1377_s2 + $0x8] sm:$0xff] %v913_v10  ;;  %797 = vst [vmem:[%s1377_s2 + $0x88] sm:$0xff] %v929_v11 }
 0x11d   :  { %v439_v12 = vpop.f32.mrb[4].mxu0  ;;  %v519_v13 = vpop.f32.mrb[4].mxu1 }
 0x11e   :  { %v441_v14 = vpop.f32.mrb[5].mxu0  ;;  %v521_v15 = vpop.f32.mrb[5].mxu1 }
 0x11f   :  { %v914_v16 = vpack.c.bf16 %v441_v14, %v439_v12  ;;  %v930_v17 = vpack.c.bf16 %v521_v15, %v519_v13  ;;  %v443_v18 = vpop.f32.mrb[6].mxu0  ;;  %v523_v19 = vpop.f32.mrb[6].mxu1 }
 0x120   :  { %v445_v20 = vpop.f32.mrb[7].mxu0  ;;  %v525_v21 = vpop.f32.mrb[7].mxu1 }
 0x121   :  { %782 = vst [vmem:[%s1377_s2 + $0x10] sm:$0xff] %v914_v16  ;;  %798 = vst [vmem:[%s1377_s2 + $0x90] sm:$0xff] %v930_v17  ;;  %v915_v22 = vpack.c.bf16 %v445_v20, %v443_v18  ;;  %v931_v23 = vpack.c.bf16 %v525_v21, %v523_v19 }
 0x123   :  { %783 = vst [vmem:[%s1377_s2 + $0x18] sm:$0xff] %v915_v22  ;;  %799 = vst [vmem:[%s1377_s2 + $0x98] sm:$0xff] %v931_v23 }
 0x125   :  { %v449_v24 = vpop.f32.mrb[8].mxu0  ;;  %v529_v25 = vpop.f32.mrb[8].mxu1 }
 0x126   :  { %v451_v26 = vpop.f32.mrb[9].mxu0  ;;  %v531_v27 = vpop.f32.mrb[9].mxu1 }
 0x127   :  { %v916_v28 = vpack.c.bf16 %v451_v26, %v449_v24  ;;  %v932_v29 = vpack.c.bf16 %v531_v27, %v529_v25  ;;  %v453_v30 = vpop.f32.mrb[10].mxu0  ;;  %v533_v31 = vpop.f32.mrb[10].mxu1 }
 0x128   :  { %v455_v32 = vpop.f32.mrb[11].mxu0  ;;  %v535_v33 = vpop.f32.mrb[11].mxu1 }
 0x129   :  { %784 = vst [vmem:[%s1377_s2 + $0x20] sm:$0xff] %v916_v28  ;;  %800 = vst [vmem:[%s1377_s2 + $0xa0] sm:$0xff] %v932_v29  ;;  %v917_v34 = vpack.c.bf16 %v455_v32, %v453_v30  ;;  %v933_v35 = vpack.c.bf16 %v535_v33, %v533_v31 }
 0x12b   :  { %785 = vst [vmem:[%s1377_s2 + $0x28] sm:$0xff] %v917_v34  ;;  %801 = vst [vmem:[%s1377_s2 + $0xa8] sm:$0xff] %v933_v35 }
 0x12d   :  { %v459_v36 = vpop.f32.mrb[12].mxu0  ;;  %v539_v37 = vpop.f32.mrb[12].mxu1 }
 0x12e   :  { %v461_v38 = vpop.f32.mrb[13].mxu0  ;;  %v541_v39 = vpop.f32.mrb[13].mxu1 }
 0x12f   :  { %v918_v40 = vpack.c.bf16 %v461_v38, %v459_v36  ;;  %v934_v41 = vpack.c.bf16 %v541_v39, %v539_v37  ;;  %v463_v42 = vpop.f32.mrb[14].mxu0  ;;  %v543_v43 = vpop.f32.mrb[14].mxu1 }
 0x130   :  { %v465_v44 = vpop.f32.mrb[15].mxu0  ;;  %v545_v45 = vpop.f32.mrb[15].mxu1 }
 0x131   :  { %786 = vst [vmem:[%s1377_s2 + $0x30] sm:$0xff] %v918_v40  ;;  %802 = vst [vmem:[%s1377_s2 + $0xb0] sm:$0xff] %v934_v41  ;;  %v919_v46 = vpack.c.bf16 %v465_v44, %v463_v42  ;;  %v935_v47 = vpack.c.bf16 %v545_v45, %v543_v43 }
 0x133   :  { %787 = vst [vmem:[%s1377_s2 + $0x38] sm:$0xff] %v919_v46  ;;  %803 = vst [vmem:[%s1377_s2 + $0xb8] sm:$0xff] %v935_v47 }
 0x135   :  { %v469_v48 = vpop.f32.mrb[16].mxu0  ;;  %v549_v49 = vpop.f32.mrb[16].mxu1 }
 0x136   :  { %v471_v50 = vpop.f32.mrb[17].mxu0  ;;  %v551_v51 = vpop.f32.mrb[17].mxu1 }
 0x137   :  { %v920_v52 = vpack.c.bf16 %v471_v50, %v469_v48  ;;  %v936_v53 = vpack.c.bf16 %v551_v51, %v549_v49  ;;  %v473_v54 = vpop.f32.mrb[18].mxu0  ;;  %v553_v55 = vpop.f32.mrb[18].mxu1 }
 0x138   :  { %v475_v56 = vpop.f32.mrb[19].mxu0  ;;  %v555_v57 = vpop.f32.mrb[19].mxu1 }
 0x139   :  { %788 = vst [vmem:[%s1377_s2 + $0x40] sm:$0xff] %v920_v52  ;;  %804 = vst [vmem:[%s1377_s2 + $0xc0] sm:$0xff] %v936_v53  ;;  %v921_v58 = vpack.c.bf16 %v475_v56, %v473_v54  ;;  %v937_v59 = vpack.c.bf16 %v555_v57, %v553_v55 }
 0x13b   :  { %789 = vst [vmem:[%s1377_s2 + $0x48] sm:$0xff] %v921_v58  ;;  %805 = vst [vmem:[%s1377_s2 + $0xc8] sm:$0xff] %v937_v59 }
 0x13d   :  { %v479_v60 = vpop.f32.mrb[20].mxu0  ;;  %v559_v61 = vpop.f32.mrb[20].mxu1 }
 0x13e   :  { %v481_v62 = vpop.f32.mrb[21].mxu0  ;;  %v561_v63 = vpop.f32.mrb[21].mxu1 }
 0x13f   :  { %v922_v0 = vpack.c.bf16 %v481_v62, %v479_v60  ;;  %v938_v1 = vpack.c.bf16 %v561_v63, %v559_v61  ;;  %v483_v2 = vpop.f32.mrb[22].mxu0  ;;  %v563_v3 = vpop.f32.mrb[22].mxu1 }
 0x140   :  { %v485_v4 = vpop.f32.mrb[23].mxu0  ;;  %v565_v5 = vpop.f32.mrb[23].mxu1 }
 0x141   :  { %790 = vst [vmem:[%s1377_s2 + $0x50] sm:$0xff] %v922_v0  ;;  %806 = vst [vmem:[%s1377_s2 + $0xd0] sm:$0xff] %v938_v1  ;;  %v923_v6 = vpack.c.bf16 %v485_v4, %v483_v2  ;;  %v939_v7 = vpack.c.bf16 %v565_v5, %v563_v3 }
 0x143   :  { %791 = vst [vmem:[%s1377_s2 + $0x58] sm:$0xff] %v923_v6  ;;  %807 = vst [vmem:[%s1377_s2 + $0xd8] sm:$0xff] %v939_v7 }
 0x145   :  { %v489_v8 = vpop.f32.mrb[24].mxu0  ;;  %v569_v9 = vpop.f32.mrb[24].mxu1 }
 0x146   :  { %v491_v10 = vpop.f32.mrb[25].mxu0  ;;  %v571_v11 = vpop.f32.mrb[25].mxu1 }
 0x147   :  { %v924_v12 = vpack.c.bf16 %v491_v10, %v489_v8  ;;  %v940_v13 = vpack.c.bf16 %v571_v11, %v569_v9  ;;  %v493_v14 = vpop.f32.mrb[26].mxu0  ;;  %v573_v15 = vpop.f32.mrb[26].mxu1 }
 0x148   :  { %v495_v16 = vpop.f32.mrb[27].mxu0  ;;  %v575_v17 = vpop.f32.mrb[27].mxu1 }
 0x149   :  { %792 = vst [vmem:[%s1377_s2 + $0x60] sm:$0xff] %v924_v12  ;;  %808 = vst [vmem:[%s1377_s2 + $0xe0] sm:$0xff] %v940_v13  ;;  %v925_v18 = vpack.c.bf16 %v495_v16, %v493_v14  ;;  %v941_v19 = vpack.c.bf16 %v575_v17, %v573_v15 }
 0x14b   :  { %793 = vst [vmem:[%s1377_s2 + $0x68] sm:$0xff] %v925_v18  ;;  %809 = vst [vmem:[%s1377_s2 + $0xe8] sm:$0xff] %v941_v19 }
 0x14d   :  { %v499_v20 = vpop.f32.mrb[28].mxu0  ;;  %v579_v21 = vpop.f32.mrb[28].mxu1 }
 0x14e   :  { %v501_v22 = vpop.f32.mrb[29].mxu0  ;;  %v581_v23 = vpop.f32.mrb[29].mxu1 }
 0x14f   :  { %v926_v24 = vpack.c.bf16 %v501_v22, %v499_v20  ;;  %v942_v25 = vpack.c.bf16 %v581_v23, %v579_v21  ;;  %v503_v26 = vpop.f32.mrb[30].mxu0  ;;  %v583_v27 = vpop.f32.mrb[30].mxu1 }
 0x150   :  { %v505_v28 = vpop.f32.mrb[31].mxu0  ;;  %v585_v29 = vpop.f32.mrb[31].mxu1 }
 0x151   :  { %794 = vst [vmem:[%s1377_s2 + $0x70] sm:$0xff] %v926_v24  ;;  %810 = vst [vmem:[%s1377_s2 + $0xf0] sm:$0xff] %v942_v25  ;;  %v927_v30 = vpack.c.bf16 %v505_v28, %v503_v26  ;;  %v943_v31 = vpack.c.bf16 %v585_v29, %v583_v27 }
 0x153   :  { %795 = vst [vmem:[%s1377_s2 + $0x78] sm:$0xff] %v927_v30  ;;  %811 = vst [vmem:[%s1377_s2 + $0xf8] sm:$0xff] %v943_v31 }

// kernel: gae_forward.12
= control target key start
LH: loop header
LB: loop body
LE: loop exit
PB: predicated region body
PF: predicated region fallthrough
CT: control target
= control target key end

     0   :  { %s1642_s1 = inlined_call_operand.vmem [shape: bf16[256,256], index: 1, kind: input, shape index: {}]   ;;  %s1643_s0 = inlined_call_operand.vmem [shape: bf16[256,256], index: 0, kind: input, shape index: {}]   ;;  %s1644_s2 = inlined_call_operand.vmem [shape: f32[256,256], index: 2, kind: output, shape index: {0}]   ;;  %s1645_s3 = inlined_call_operand.vmem [shape: bf16[256,256], index: 3, kind: output, shape index: {1}]  }
   0x1   :  { %v1046_v0 = vld [vmem:[%s1642_s1 + $0x4] ss:$8 sps:$4 sm:$0xff]   ;;  %v1048_v1 = vld [vmem:[%s1642_s1] ss:$8 sps:$4 sm:$0xff]   ;;  %v1049_v2 = vld [vmem:[%s1642_s1 + $0x14] ss:$8 sps:$4 sm:$0xff]  }
   0x2   :  { %397 = vmatprep.subr.bf16.mxu0 %v1046_v0  ;;  %1014 = vmatprep.subr.bf16.mxu1 %v1046_v0  ;;  %v1051_v3 = vld [vmem:[%s1642_s1 + $0x10] ss:$8 sps:$4 sm:$0xff]   ;;  %v1052_v4 = vld [vmem:[%s1642_s1 + $0x24] ss:$8 sps:$4 sm:$0xff]   ;;  %v1054_v5 = vld [vmem:[%s1642_s1 + $0x20] ss:$8 sps:$4 sm:$0xff]  }
   0x3   :  { %398 = vmatpush1.bf16.msra.mxu0 %v1048_v1  ;;  %1030 = vmatpush1.bf16.msra.mxu1 %v1048_v1  ;;  %v1055_v6 = vld [vmem:[%s1642_s1 + $0x34] ss:$8 sps:$4 sm:$0xff]   ;;  %v1057_v7 = vld [vmem:[%s1642_s1 + $0x30] ss:$8 sps:$4 sm:$0xff]   ;;  %v1058_v8 = vld [vmem:[%s1642_s1 + $0x44] ss:$8 sps:$4 sm:$0xff]  }
   0x4   :  { %399 = vmatprep.subr.bf16.mxu0 %v1049_v2  ;;  %1015 = vmatprep.subr.bf16.mxu1 %v1049_v2  ;;  %v1060_v9 = vld [vmem:[%s1642_s1 + $0x40] ss:$8 sps:$4 sm:$0xff]   ;;  %v1061_v10 = vld [vmem:[%s1642_s1 + $0x54] ss:$8 sps:$4 sm:$0xff]   ;;  %v1063_v11 = vld [vmem:[%s1642_s1 + $0x50] ss:$8 sps:$4 sm:$0xff]  }
   0x5   :  { %v1064_v12 = vld [vmem:[%s1642_s1 + $0x64] ss:$8 sps:$4 sm:$0xff]   ;;  %v1066_v14 = vld [vmem:[%s1642_s1 + $0x60] ss:$8 sps:$4 sm:$0xff]   ;;  %v1067_v16 = vld [vmem:[%s1642_s1 + $0x74] ss:$8 sps:$4 sm:$0xff]  }
   0x6   :  { %v1096_v13 = vld [vmem:[%s1643_s0 + $0x4] ss:$8 sps:$4 sm:$0xff]   ;;  %v1069_v17 = vld [vmem:[%s1642_s1 + $0x70] ss:$8 sps:$4 sm:$0xff]   ;;  %v1072_v19 = vld [vmem:[%s1642_s1 + $0x80] ss:$8 sps:$4 sm:$0xff]  }
   0x7   :  { %400 = vmatpush1.bf16.msra.mxu0 %v1051_v3  ;;  %1031 = vmatpush1.bf16.msra.mxu1 %v1051_v3  ;;  %v1099_v15 = vld [vmem:[%s1643_s0 + $0x84] ss:$8 sps:$4 sm:$0xff]   ;;  %v1073_v20 = vld [vmem:[%s1642_s1 + $0x94] ss:$8 sps:$4 sm:$0xff]   ;;  %v1075_v21 = vld [vmem:[%s1642_s1 + $0x90] ss:$8 sps:$4 sm:$0xff]  }
   0x8   :  { %401 = vmatprep.subr.bf16.mxu0 %v1052_v4  ;;  %1016 = vmatprep.subr.bf16.mxu1 %v1052_v4  ;;  %v1070_v18 = vld [vmem:[%s1642_s1 + $0x84] ss:$8 sps:$4 sm:$0xff]   ;;  %v1078_v23 = vld [vmem:[%s1642_s1 + $0xa0] ss:$8 sps:$4 sm:$0xff]   ;;  %v1079_v24 = vld [vmem:[%s1642_s1 + $0xb4] ss:$8 sps:$4 sm:$0xff]  }
   0x9   :  { %429 = vmatprep.mubr.bf16.mxu0 %v1096_v13  ;;  %509 = vmatprep.mubr.bf16.mxu1 %v1099_v15  ;;  %v1076_v22 = vld [vmem:[%s1642_s1 + $0xa4] ss:$8 sps:$4 sm:$0xff]   ;;  %v1081_v25 = vld [vmem:[%s1642_s1 + $0xb0] ss:$8 sps:$4 sm:$0xff]   ;;  %v1084_v27 = vld [vmem:[%s1642_s1 + $0xc0] ss:$8 sps:$4 sm:$0xff]  }
   0xa   :  { %v1082_v26 = vld [vmem:[%s1642_s1 + $0xc4] ss:$8 sps:$4 sm:$0xff]   ;;  %v1085_v28 = vld [vmem:[%s1642_s1 + $0xd4] ss:$8 sps:$4 sm:$0xff]   ;;  %v1087_v29 = vld [vmem:[%s1642_s1 + $0xd0] ss:$8 sps:$4 sm:$0xff]  }
   0xb   :  { %402 = vmatpush1.bf16.msra.mxu0 %v1054_v5  ;;  %1032 = vmatpush1.bf16.msra.mxu1 %v1054_v5  ;;  %v1088_v30 = vld [vmem:[%s1642_s1 + $0xe4] ss:$8 sps:$4 sm:$0xff]   ;;  %v1090_v31 = vld [vmem:[%s1642_s1 + $0xe0] ss:$8 sps:$4 sm:$0xff]   ;;  %v1091_v32 = vld [vmem:[%s1642_s1 + $0xf4] ss:$8 sps:$4 sm:$0xff]  }
   0xc   :  { %403 = vmatprep.subr.bf16.mxu0 %v1055_v6  ;;  %1017 = vmatprep.subr.bf16.mxu1 %v1055_v6  ;;  %v1093_v33 = vld [vmem:[%s1642_s1 + $0xf0] ss:$8 sps:$4 sm:$0xff]   ;;  %v1094_v34 = vld [vmem:[%s1643_s0] ss:$8 sps:$4 sm:$0xff]   ;;  %v1100_v36 = vld [vmem:[%s1643_s0 + $0x14] ss:$8 sps:$4 sm:$0xff]  }
   0xd   :  { %v1097_v35 = vld [vmem:[%s1643_s0 + $0x80] ss:$8 sps:$4 sm:$0xff]   ;;  %v1102_v37 = vld [vmem:[%s1643_s0 + $0x94] ss:$8 sps:$4 sm:$0xff]   ;;  %v1104_v38 = vld [vmem:[%s1643_s0 + $0x10] ss:$8 sps:$4 sm:$0xff]  }
   0xe   :  { %v1105_v39 = vld [vmem:[%s1643_s0 + $0x90] ss:$8 sps:$4 sm:$0xff]   ;;  %v1106_v40 = vld [vmem:[%s1643_s0 + $0x24] ss:$8 sps:$4 sm:$0xff]   ;;  %v1110_v42 = vld [vmem:[%s1643_s0 + $0x20] ss:$8 sps:$4 sm:$0xff]  }
   0xf   :  { %404 = vmatpush1.bf16.msra.mxu0 %v1057_v7  ;;  %1033 = vmatpush1.bf16.msra.mxu1 %v1057_v7  ;;  %v1108_v41 = vld [vmem:[%s1643_s0 + $0xa4] ss:$8 sps:$4 sm:$0xff]   ;;  %v1111_v43 = vld [vmem:[%s1643_s0 + $0xa0] ss:$8 sps:$4 sm:$0xff]   ;;  %v1112_v44 = vld [vmem:[%s1643_s0 + $0x34] ss:$8 sps:$4 sm:$0xff]  }
  0x10   :  { %405 = vmatprep.subr.bf16.mxu0 %v1058_v8  ;;  %1018 = vmatprep.subr.bf16.mxu1 %v1058_v8  ;;  %v1114_v45 = vld [vmem:[%s1643_s0 + $0xb4] ss:$8 sps:$4 sm:$0xff]   ;;  %v1116_v46 = vld [vmem:[%s1643_s0 + $0x30] ss:$8 sps:$4 sm:$0xff]   ;;  %v1118_v48 = vld [vmem:[%s1643_s0 + $0x44] ss:$8 sps:$4 sm:$0xff]  }
  0x11   :  { %v1117_v47 = vld [vmem:[%s1643_s0 + $0xb0] ss:$8 sps:$4 sm:$0xff]   ;;  %v1120_v49 = vld [vmem:[%s1643_s0 + $0xc4] ss:$8 sps:$4 sm:$0xff]   ;;  %v1122_v50 = vld [vmem:[%s1643_s0 + $0x40] ss:$8 sps:$4 sm:$0xff]  }
  0x12   :  { %v1123_v51 = vld [vmem:[%s1643_s0 + $0xc0] ss:$8 sps:$4 sm:$0xff]   ;;  %v1124_v52 = vld [vmem:[%s1643_s0 + $0x54] ss:$8 sps:$4 sm:$0xff]   ;;  %v1128_v54 = vld [vmem:[%s1643_s0 + $0x50] ss:$8 sps:$4 sm:$0xff]  }
  0x13   :  { %406 = vmatpush1.bf16.msra.mxu0 %v1060_v9  ;;  %1034 = vmatpush1.bf16.msra.mxu1 %v1060_v9  ;;  %v1126_v53 = vld [vmem:[%s1643_s0 + $0xd4] ss:$8 sps:$4 sm:$0xff]   ;;  %v1129_v55 = vld [vmem:[%s1643_s0 + $0xd0] ss:$8 sps:$4 sm:$0xff]   ;;  %v1130_v56 = vld [vmem:[%s1643_s0 + $0x64] ss:$8 sps:$4 sm:$0xff]  }
  0x14   :  { %407 = vmatprep.subr.bf16.mxu0 %v1061_v10  ;;  %1019 = vmatprep.subr.bf16.mxu1 %v1061_v10  ;;  %v1132_v57 = vld [vmem:[%s1643_s0 + $0xe4] ss:$8 sps:$4 sm:$0xff]   ;;  %v1134_v58 = vld [vmem:[%s1643_s0 + $0x60] ss:$8 sps:$4 sm:$0xff]   ;;  %v1136_v60 = vld [vmem:[%s1643_s0 + $0x74] ss:$8 sps:$4 sm:$0xff]  }
  0x15   :  { %v1135_v59 = vld [vmem:[%s1643_s0 + $0xe0] ss:$8 sps:$4 sm:$0xff]   ;;  %v1138_v61 = vld [vmem:[%s1643_s0 + $0xf4] ss:$8 sps:$4 sm:$0xff]   ;;  %v1140_v62 = vld [vmem:[%s1643_s0 + $0x70] ss:$8 sps:$4 sm:$0xff]  }
  0x16   :  { %v1141_v63 = vld [vmem:[%s1643_s0 + $0xf0] ss:$8 sps:$4 sm:$0xff]  }
  0x17   :  { %408 = vmatpush1.bf16.msra.mxu0 %v1063_v11  ;;  %1035 = vmatpush1.bf16.msra.mxu1 %v1063_v11 }
  0x18   :  { %409 = vmatprep.subr.bf16.mxu0 %v1064_v12  ;;  %1020 = vmatprep.subr.bf16.mxu1 %v1064_v12 }
  0x1b   :  { %410 = vmatpush1.bf16.msra.mxu0 %v1066_v14  ;;  %1036 = vmatpush1.bf16.msra.mxu1 %v1066_v14 }
  0x1c   :  { %411 = vmatprep.subr.bf16.mxu0 %v1067_v16  ;;  %1021 = vmatprep.subr.bf16.mxu1 %v1067_v16 }
  0x1f   :  { %412 = vmatpush1.bf16.msra.mxu0 %v1069_v17  ;;  %1037 = vmatpush1.bf16.msra.mxu1 %v1069_v17 }
  0x20   :  { %413 = vmatprep.subr.bf16.mxu0 %v1070_v18  ;;  %1022 = vmatprep.subr.bf16.mxu1 %v1070_v18 }
  0x23   :  { %414 = vmatpush1.bf16.msra.mxu0 %v1072_v19  ;;  %1038 = vmatpush1.bf16.msra.mxu1 %v1072_v19 }
  0x24   :  { %415 = vmatprep.subr.bf16.mxu0 %v1073_v20  ;;  %1023 = vmatprep.subr.bf16.mxu1 %v1073_v20 }
  0x27   :  { %416 = vmatpush1.bf16.msra.mxu0 %v1075_v21  ;;  %1039 = vmatpush1.bf16.msra.mxu1 %v1075_v21 }
  0x28   :  { %417 = vmatprep.subr.bf16.mxu0 %v1076_v22  ;;  %1024 = vmatprep.subr.bf16.mxu1 %v1076_v22 }
  0x2b   :  { %418 = vmatpush1.bf16.msra.mxu0 %v1078_v23  ;;  %1040 = vmatpush1.bf16.msra.mxu1 %v1078_v23 }
  0x2c   :  { %419 = vmatprep.subr.bf16.mxu0 %v1079_v24  ;;  %1025 = vmatprep.subr.bf16.mxu1 %v1079_v24 }
  0x2f   :  { %420 = vmatpush1.bf16.msra.mxu0 %v1081_v25  ;;  %1041 = vmatpush1.bf16.msra.mxu1 %v1081_v25 }
  0x30   :  { %421 = vmatprep.subr.bf16.mxu0 %v1082_v26  ;;  %1026 = vmatprep.subr.bf16.mxu1 %v1082_v26 }
  0x33   :  { %422 = vmatpush1.bf16.msra.mxu0 %v1084_v27  ;;  %1042 = vmatpush1.bf16.msra.mxu1 %v1084_v27 }
  0x34   :  { %423 = vmatprep.subr.bf16.mxu0 %v1085_v28  ;;  %1027 = vmatprep.subr.bf16.mxu1 %v1085_v28 }
  0x37   :  { %424 = vmatpush1.bf16.msra.mxu0 %v1087_v29  ;;  %1043 = vmatpush1.bf16.msra.mxu1 %v1087_v29 }
  0x38   :  { %425 = vmatprep.subr.bf16.mxu0 %v1088_v30  ;;  %1028 = vmatprep.subr.bf16.mxu1 %v1088_v30 }
  0x3b   :  { %426 = vmatpush1.bf16.msra.mxu0 %v1090_v31  ;;  %1044 = vmatpush1.bf16.msra.mxu1 %v1090_v31 }
  0x3c   :  { %427 = vmatprep.subr.bf16.mxu0 %v1091_v32  ;;  %1029 = vmatprep.subr.bf16.mxu1 %v1091_v32 }
  0x3f   :  { %428 = vmatpush1.bf16.msra.mxu0 %v1093_v33  ;;  %1045 = vmatpush1.bf16.msra.mxu1 %v1093_v33 }
  0x42   :  { %430 = vmatmul.mubr.bf16.vlgmr.msra.gmra.mrb[0].mxu0 %v1094_v34  ;;  %510 = vmatmul.mubr.bf16.vlgmr.msra.gmra.mrb[0].mxu1 %v1097_v35 }
  0x43   :  { %439 = vmatprep.mubr.bf16.mxu0 %v1100_v36  ;;  %519 = vmatprep.mubr.bf16.mxu1 %v1102_v37 }
  0x4a   :  { %440 = vmatmul.mubr.bf16.gmra.mrb[4].mxu0 %v1104_v38  ;;  %520 = vmatmul.mubr.bf16.gmra.mrb[4].mxu1 %v1105_v39 }
  0x4b   :  { %449 = vmatprep.mubr.bf16.mxu0 %v1106_v40  ;;  %529 = vmatprep.mubr.bf16.mxu1 %v1108_v41 }
  0x52   :  { %450 = vmatmul.mubr.bf16.gmra.mrb[8].mxu0 %v1110_v42  ;;  %530 = vmatmul.mubr.bf16.gmra.mrb[8].mxu1 %v1111_v43 }
  0x53   :  { %459 = vmatprep.mubr.bf16.mxu0 %v1112_v44  ;;  %539 = vmatprep.mubr.bf16.mxu1 %v1114_v45 }
  0x5a   :  { %460 = vmatmul.mubr.bf16.gmra.mrb[12].mxu0 %v1116_v46  ;;  %540 = vmatmul.mubr.bf16.gmra.mrb[12].mxu1 %v1117_v47 }
  0x5b   :  { %469 = vmatprep.mubr.bf16.mxu0 %v1118_v48  ;;  %549 = vmatprep.mubr.bf16.mxu1 %v1120_v49 }
  0x62   :  { %470 = vmatmul.mubr.bf16.gmra.mrb[16].mxu0 %v1122_v50  ;;  %550 = vmatmul.mubr.bf16.gmra.mrb[16].mxu1 %v1123_v51 }
  0x63   :  { %479 = vmatprep.mubr.bf16.mxu0 %v1124_v52  ;;  %559 = vmatprep.mubr.bf16.mxu1 %v1126_v53 }
  0x6a   :  { %480 = vmatmul.mubr.bf16.gmra.mrb[20].mxu0 %v1128_v54  ;;  %560 = vmatmul.mubr.bf16.gmra.mrb[20].mxu1 %v1129_v55 }
  0x6b   :  { %489 = vmatprep.mubr.bf16.mxu0 %v1130_v56  ;;  %569 = vmatprep.mubr.bf16.mxu1 %v1132_v57 }
  0x72   :  { %490 = vmatmul.mubr.bf16.gmra.mrb[24].mxu0 %v1134_v58  ;;  %570 = vmatmul.mubr.bf16.gmra.mrb[24].mxu1 %v1135_v59 }
  0x73   :  { %499 = vmatprep.mubr.bf16.mxu0 %v1136_v60  ;;  %579 = vmatprep.mubr.bf16.mxu1 %v1138_v61 }
  0x7a   :  { %500 = vmatmul.mubr.bf16.gmra.mrb[28].mxu0 %v1140_v62  ;;  %580 = vmatmul.mubr.bf16.gmra.mrb[28].mxu1 %v1141_v63 }
 0x115   :  { %v431_v0 = vpop.f32.mrb[0].mxu0  ;;  %v511_v1 = vpop.f32.mrb[0].mxu1 }
 0x116   :  { %590 = vst [vmem:[%s1644_s2] sm:$0xff] %v431_v0  ;;  %622 = vst [vmem:[%s1644_s2 + $0x100] sm:$0xff] %v511_v1  ;;  %v433_v2 = vpop.f32.mrb[1].mxu0  ;;  %v513_v3 = vpop.f32.mrb[1].mxu1 }
 0x117   :  { %591 = vst [vmem:[%s1644_s2 + $0x8] sm:$0xff] %v433_v2  ;;  %v982_v4 = vpack.c.bf16 %v433_v2, %v431_v0  ;;  %623 = vst [vmem:[%s1644_s2 + $0x108] sm:$0xff] %v513_v3  ;;  %v998_v5 = vpack.c.bf16 %v513_v3, %v511_v1  ;;  %v435_v6 = vpop.f32.mrb[2].mxu0  ;;  %v515_v7 = vpop.f32.mrb[2].mxu1 }
 0x118   :  { %592 = vst [vmem:[%s1644_s2 + $0x10] sm:$0xff] %v435_v6  ;;  %624 = vst [vmem:[%s1644_s2 + $0x110] sm:$0xff] %v515_v7  ;;  %v437_v8 = vpop.f32.mrb[3].mxu0  ;;  %v517_v9 = vpop.f32.mrb[3].mxu1 }
 0x119   :  { %846 = vst [vmem:[%s1645_s3] sm:$0xff] %v982_v4  ;;  %862 = vst [vmem:[%s1645_s3 + $0x80] sm:$0xff] %v998_v5  ;;  %v983_v10 = vpack.c.bf16 %v437_v8, %v435_v6  ;;  %v999_v11 = vpack.c.bf16 %v517_v9, %v515_v7 }
 0x11a   :  { %593 = vst [vmem:[%s1644_s2 + $0x18] sm:$0xff] %v437_v8  ;;  %625 = vst [vmem:[%s1644_s2 + $0x118] sm:$0xff] %v517_v9 }
 0x11b   :  { %847 = vst [vmem:[%s1645_s3 + $0x8] sm:$0xff] %v983_v10  ;;  %863 = vst [vmem:[%s1645_s3 + $0x88] sm:$0xff] %v999_v11 }
 0x11d   :  { %v441_v12 = vpop.f32.mrb[4].mxu0  ;;  %v521_v13 = vpop.f32.mrb[4].mxu1 }
 0x11e   :  { %594 = vst [vmem:[%s1644_s2 + $0x20] sm:$0xff] %v441_v12  ;;  %626 = vst [vmem:[%s1644_s2 + $0x120] sm:$0xff] %v521_v13  ;;  %v443_v14 = vpop.f32.mrb[5].mxu0  ;;  %v523_v15 = vpop.f32.mrb[5].mxu1 }
 0x11f   :  { %595 = vst [vmem:[%s1644_s2 + $0x28] sm:$0xff] %v443_v14  ;;  %v984_v16 = vpack.c.bf16 %v443_v14, %v441_v12  ;;  %627 = vst [vmem:[%s1644_s2 + $0x128] sm:$0xff] %v523_v15  ;;  %v1000_v17 = vpack.c.bf16 %v523_v15, %v521_v13  ;;  %v445_v18 = vpop.f32.mrb[6].mxu0  ;;  %v525_v19 = vpop.f32.mrb[6].mxu1 }
 0x120   :  { %596 = vst [vmem:[%s1644_s2 + $0x30] sm:$0xff] %v445_v18  ;;  %628 = vst [vmem:[%s1644_s2 + $0x130] sm:$0xff] %v525_v19  ;;  %v447_v20 = vpop.f32.mrb[7].mxu0  ;;  %v527_v21 = vpop.f32.mrb[7].mxu1 }
 0x121   :  { %848 = vst [vmem:[%s1645_s3 + $0x10] sm:$0xff] %v984_v16  ;;  %864 = vst [vmem:[%s1645_s3 + $0x90] sm:$0xff] %v1000_v17  ;;  %v985_v22 = vpack.c.bf16 %v447_v20, %v445_v18  ;;  %v1001_v23 = vpack.c.bf16 %v527_v21, %v525_v19 }
 0x122   :  { %597 = vst [vmem:[%s1644_s2 + $0x38] sm:$0xff] %v447_v20  ;;  %629 = vst [vmem:[%s1644_s2 + $0x138] sm:$0xff] %v527_v21 }
 0x123   :  { %849 = vst [vmem:[%s1645_s3 + $0x18] sm:$0xff] %v985_v22  ;;  %865 = vst [vmem:[%s1645_s3 + $0x98] sm:$0xff] %v1001_v23 }
 0x125   :  { %v451_v24 = vpop.f32.mrb[8].mxu0  ;;  %v531_v25 = vpop.f32.mrb[8].mxu1 }
 0x126   :  { %598 = vst [vmem:[%s1644_s2 + $0x40] sm:$0xff] %v451_v24  ;;  %630 = vst [vmem:[%s1644_s2 + $0x140] sm:$0xff] %v531_v25  ;;  %v453_v26 = vpop.f32.mrb[9].mxu0  ;;  %v533_v27 = vpop.f32.mrb[9].mxu1 }
 0x127   :  { %599 = vst [vmem:[%s1644_s2 + $0x48] sm:$0xff] %v453_v26  ;;  %v986_v28 = vpack.c.bf16 %v453_v26, %v451_v24  ;;  %631 = vst [vmem:[%s1644_s2 + $0x148] sm:$0xff] %v533_v27  ;;  %v1002_v29 = vpack.c.bf16 %v533_v27, %v531_v25  ;;  %v455_v30 = vpop.f32.mrb[10].mxu0  ;;  %v535_v31 = vpop.f32.mrb[10].mxu1 }
 0x128   :  { %600 = vst [vmem:[%s1644_s2 + $0x50] sm:$0xff] %v455_v30  ;;  %632 = vst [vmem:[%s1644_s2 + $0x150] sm:$0xff] %v535_v31  ;;  %v457_v32 = vpop.f32.mrb[11].mxu0  ;;  %v537_v33 = vpop.f32.mrb[11].mxu1 }
 0x129   :  { %850 = vst [vmem:[%s1645_s3 + $0x20] sm:$0xff] %v986_v28  ;;  %866 = vst [vmem:[%s1645_s3 + $0xa0] sm:$0xff] %v1002_v29  ;;  %v987_v34 = vpack.c.bf16 %v457_v32, %v455_v30  ;;  %v1003_v35 = vpack.c.bf16 %v537_v33, %v535_v31 }
 0x12a   :  { %601 = vst [vmem:[%s1644_s2 + $0x58] sm:$0xff] %v457_v32  ;;  %633 = vst [vmem:[%s1644_s2 + $0x158] sm:$0xff] %v537_v33 }
 0x12b   :  { %851 = vst [vmem:[%s1645_s3 + $0x28] sm:$0xff] %v987_v34  ;;  %867 = vst [vmem:[%s1645_s3 + $0xa8] sm:$0xff] %v1003_v35 }
 0x12d   :  { %v461_v36 = vpop.f32.mrb[12].mxu0  ;;  %v541_v37 = vpop.f32.mrb[12].mxu1 }
 0x12e   :  { %602 = vst [vmem:[%s1644_s2 + $0x60] sm:$0xff] %v461_v36  ;;  %634 = vst [vmem:[%s1644_s2 + $0x160] sm:$0xff] %v541_v37  ;;  %v463_v38 = vpop.f32.mrb[13].mxu0  ;;  %v543_v39 = vpop.f32.mrb[13].mxu1 }
 0x12f   :  { %603 = vst [vmem:[%s1644_s2 + $0x68] sm:$0xff] %v463_v38  ;;  %v988_v40 = vpack.c.bf16 %v463_v38, %v461_v36  ;;  %635 = vst [vmem:[%s1644_s2 + $0x168] sm:$0xff] %v543_v39  ;;  %v1004_v41 = vpack.c.bf16 %v543_v39, %v541_v37  ;;  %v465_v42 = vpop.f32.mrb[14].mxu0  ;;  %v545_v43 = vpop.f32.mrb[14].mxu1 }
 0x130   :  { %604 = vst [vmem:[%s1644_s2 + $0x70] sm:$0xff] %v465_v42  ;;  %636 = vst [vmem:[%s1644_s2 + $0x170] sm:$0xff] %v545_v43  ;;  %v467_v44 = vpop.f32.mrb[15].mxu0  ;;  %v547_v45 = vpop.f32.mrb[15].mxu1 }
 0x131   :  { %852 = vst [vmem:[%s1645_s3 + $0x30] sm:$0xff] %v988_v40  ;;  %868 = vst [vmem:[%s1645_s3 + $0xb0] sm:$0xff] %v1004_v41  ;;  %v989_v46 = vpack.c.bf16 %v467_v44, %v465_v42  ;;  %v1005_v47 = vpack.c.bf16 %v547_v45, %v545_v43 }
 0x132   :  { %605 = vst [vmem:[%s1644_s2 + $0x78] sm:$0xff] %v467_v44  ;;  %637 = vst [vmem:[%s1644_s2 + $0x178] sm:$0xff] %v547_v45 }
 0x133   :  { %853 = vst [vmem:[%s1645_s3 + $0x38] sm:$0xff] %v989_v46  ;;  %869 = vst [vmem:[%s1645_s3 + $0xb8] sm:$0xff] %v1005_v47 }
 0x135   :  { %v471_v48 = vpop.f32.mrb[16].mxu0  ;;  %v551_v49 = vpop.f32.mrb[16].mxu1 }
 0x136   :  { %606 = vst [vmem:[%s1644_s2 + $0x80] sm:$0xff] %v471_v48  ;;  %638 = vst [vmem:[%s1644_s2 + $0x180] sm:$0xff] %v551_v49  ;;  %v473_v50 = vpop.f32.mrb[17].mxu0  ;;  %v553_v51 = vpop.f32.mrb[17].mxu1 }
 0x137   :  { %607 = vst [vmem:[%s1644_s2 + $0x88] sm:$0xff] %v473_v50  ;;  %v990_v52 = vpack.c.bf16 %v473_v50, %v471_v48  ;;  %639 = vst [vmem:[%s1644_s2 + $0x188] sm:$0xff] %v553_v51  ;;  %v1006_v53 = vpack.c.bf16 %v553_v51, %v551_v49  ;;  %v475_v54 = vpop.f32.mrb[18].mxu0  ;;  %v555_v55 = vpop.f32.mrb[18].mxu1 }
 0x138   :  { %608 = vst [vmem:[%s1644_s2 + $0x90] sm:$0xff] %v475_v54  ;;  %640 = vst [vmem:[%s1644_s2 + $0x190] sm:$0xff] %v555_v55  ;;  %v477_v56 = vpop.f32.mrb[19].mxu0  ;;  %v557_v57 = vpop.f32.mrb[19].mxu1 }
 0x139   :  { %854 = vst [vmem:[%s1645_s3 + $0x40] sm:$0xff] %v990_v52  ;;  %870 = vst [vmem:[%s1645_s3 + $0xc0] sm:$0xff] %v1006_v53  ;;  %v991_v58 = vpack.c.bf16 %v477_v56, %v475_v54  ;;  %v1007_v59 = vpack.c.bf16 %v557_v57, %v555_v55 }
 0x13a   :  { %609 = vst [vmem:[%s1644_s2 + $0x98] sm:$0xff] %v477_v56  ;;  %641 = vst [vmem:[%s1644_s2 + $0x198] sm:$0xff] %v557_v57 }
 0x13b   :  { %855 = vst [vmem:[%s1645_s3 + $0x48] sm:$0xff] %v991_v58  ;;  %871 = vst [vmem:[%s1645_s3 + $0xc8] sm:$0xff] %v1007_v59 }
 0x13d   :  { %v481_v60 = vpop.f32.mrb[20].mxu0  ;;  %v561_v61 = vpop.f32.mrb[20].mxu1 }
 0x13e   :  { %610 = vst [vmem:[%s1644_s2 + $0xa0] sm:$0xff] %v481_v60  ;;  %642 = vst [vmem:[%s1644_s2 + $0x1a0] sm:$0xff] %v561_v61  ;;  %v483_v62 = vpop.f32.mrb[21].mxu0  ;;  %v563_v63 = vpop.f32.mrb[21].mxu1 }
 0x13f   :  { %611 = vst [vmem:[%s1644_s2 + $0xa8] sm:$0xff] %v483_v62  ;;  %v992_v0 = vpack.c.bf16 %v483_v62, %v481_v60  ;;  %643 = vst [vmem:[%s1644_s2 + $0x1a8] sm:$0xff] %v563_v63  ;;  %v1008_v1 = vpack.c.bf16 %v563_v63, %v561_v61  ;;  %v485_v2 = vpop.f32.mrb[22].mxu0  ;;  %v565_v3 = vpop.f32.mrb[22].mxu1 }
 0x140   :  { %612 = vst [vmem:[%s1644_s2 + $0xb0] sm:$0xff] %v485_v2  ;;  %644 = vst [vmem:[%s1644_s2 + $0x1b0] sm:$0xff] %v565_v3  ;;  %v487_v4 = vpop.f32.mrb[23].mxu0  ;;  %v567_v5 = vpop.f32.mrb[23].mxu1 }
 0x141   :  { %856 = vst [vmem:[%s1645_s3 + $0x50] sm:$0xff] %v992_v0  ;;  %872 = vst [vmem:[%s1645_s3 + $0xd0] sm:$0xff] %v1008_v1  ;;  %v993_v6 = vpack.c.bf16 %v487_v4, %v485_v2  ;;  %v1009_v7 = vpack.c.bf16 %v567_v5, %v565_v3 }
 0x142   :  { %613 = vst [vmem:[%s1644_s2 + $0xb8] sm:$0xff] %v487_v4  ;;  %645 = vst [vmem:[%s1644_s2 + $0x1b8] sm:$0xff] %v567_v5 }
 0x143   :  { %857 = vst [vmem:[%s1645_s3 + $0x58] sm:$0xff] %v993_v6  ;;  %873 = vst [vmem:[%s1645_s3 + $0xd8] sm:$0xff] %v1009_v7 }
 0x145   :  { %v491_v8 = vpop.f32.mrb[24].mxu0  ;;  %v571_v9 = vpop.f32.mrb[24].mxu1 }
 0x146   :  { %614 = vst [vmem:[%s1644_s2 + $0xc0] sm:$0xff] %v491_v8  ;;  %646 = vst [vmem:[%s1644_s2 + $0x1c0] sm:$0xff] %v571_v9  ;;  %v493_v10 = vpop.f32.mrb[25].mxu0  ;;  %v573_v11 = vpop.f32.mrb[25].mxu1 }
 0x147   :  { %615 = vst [vmem:[%s1644_s2 + $0xc8] sm:$0xff] %v493_v10  ;;  %v994_v12 = vpack.c.bf16 %v493_v10, %v491_v8  ;;  %647 = vst [vmem:[%s1644_s2 + $0x1c8] sm:$0xff] %v573_v11  ;;  %v1010_v13 = vpack.c.bf16 %v573_v11, %v571_v9  ;;  %v495_v14 = vpop.f32.mrb[26].mxu0  ;;  %v575_v15 = vpop.f32.mrb[26].mxu1 }
 0x148   :  { %616 = vst [vmem:[%s1644_s2 + $0xd0] sm:$0xff] %v495_v14  ;;  %648 = vst [vmem:[%s1644_s2 + $0x1d0] sm:$0xff] %v575_v15  ;;  %v497_v16 = vpop.f32.mrb[27].mxu0  ;;  %v577_v17 = vpop.f32.mrb[27].mxu1 }
 0x149   :  { %858 = vst [vmem:[%s1645_s3 + $0x60] sm:$0xff] %v994_v12  ;;  %874 = vst [vmem:[%s1645_s3 + $0xe0] sm:$0xff] %v1010_v13  ;;  %v995_v18 = vpack.c.bf16 %v497_v16, %v495_v14  ;;  %v1011_v19 = vpack.c.bf16 %v577_v17, %v575_v15 }
 0x14a   :  { %617 = vst [vmem:[%s1644_s2 + $0xd8] sm:$0xff] %v497_v16  ;;  %649 = vst [vmem:[%s1644_s2 + $0x1d8] sm:$0xff] %v577_v17 }
 0x14b   :  { %859 = vst [vmem:[%s1645_s3 + $0x68] sm:$0xff] %v995_v18  ;;  %875 = vst [vmem:[%s1645_s3 + $0xe8] sm:$0xff] %v1011_v19 }
 0x14d   :  { %v501_v20 = vpop.f32.mrb[28].mxu0  ;;  %v581_v21 = vpop.f32.mrb[28].mxu1 }
 0x14e   :  { %618 = vst [vmem:[%s1644_s2 + $0xe0] sm:$0xff] %v501_v20  ;;  %650 = vst [vmem:[%s1644_s2 + $0x1e0] sm:$0xff] %v581_v21  ;;  %v503_v22 = vpop.f32.mrb[29].mxu0  ;;  %v583_v23 = vpop.f32.mrb[29].mxu1 }
 0x14f   :  { %619 = vst [vmem:[%s1644_s2 + $0xe8] sm:$0xff] %v503_v22  ;;  %v996_v24 = vpack.c.bf16 %v503_v22, %v501_v20  ;;  %651 = vst [vmem:[%s1644_s2 + $0x1e8] sm:$0xff] %v583_v23  ;;  %v1012_v25 = vpack.c.bf16 %v583_v23, %v581_v21  ;;  %v505_v26 = vpop.f32.mrb[30].mxu0  ;;  %v585_v27 = vpop.f32.mrb[30].mxu1 }
 0x150   :  { %620 = vst [vmem:[%s1644_s2 + $0xf0] sm:$0xff] %v505_v26  ;;  %652 = vst [vmem:[%s1644_s2 + $0x1f0] sm:$0xff] %v585_v27  ;;  %v507_v28 = vpop.f32.mrb[31].mxu0  ;;  %v587_v29 = vpop.f32.mrb[31].mxu1 }
 0x151   :  { %860 = vst [vmem:[%s1645_s3 + $0x70] sm:$0xff] %v996_v24  ;;  %876 = vst [vmem:[%s1645_s3 + $0xf0] sm:$0xff] %v1012_v25  ;;  %v997_v30 = vpack.c.bf16 %v507_v28, %v505_v26  ;;  %v1013_v31 = vpack.c.bf16 %v587_v29, %v585_v27 }
 0x152   :  { %621 = vst [vmem:[%s1644_s2 + $0xf8] sm:$0xff] %v507_v28  ;;  %653 = vst [vmem:[%s1644_s2 + $0x1f8] sm:$0xff] %v587_v29 }
 0x153   :  { %861 = vst [vmem:[%s1645_s3 + $0x78] sm:$0xff] %v997_v30  ;;  %877 = vst [vmem:[%s1645_s3 + $0xf8] sm:$0xff] %v1013_v31 }

// kernel: gae_forward.13
= control target key start
LH: loop header
LB: loop body
LE: loop exit
PB: predicated region body
PF: predicated region fallthrough
CT: control target
= control target key end

     0   :  { %s2077_s1 = inlined_call_operand.vmem [shape: bf16[256,256], index: 1, kind: input, shape index: {}, may-alias: {0,1}]   ;;  %s2078_s0 = inlined_call_operand.vmem [shape: bf16[256,256], index: 0, kind: input, shape index: {}, may-alias: {0,1}]   ;;  %s2079_s2 = inlined_call_operand.vmem [shape: f32[256,256], index: 2, kind: output, shape index: {}]  }
   0x1   :  { %v1200_v0 = vld [vmem:[%s2077_s1 + $0x4] ss:$8 sps:$4 sm:$0xff]   ;;  %v1202_v1 = vld [vmem:[%s2077_s1] ss:$8 sps:$4 sm:$0xff]   ;;  %v1203_v2 = vld [vmem:[%s2077_s1 + $0x14] ss:$8 sps:$4 sm:$0xff]  }
   0x2   :  { %395 = vmatprep.subr.bf16.mxu0 %v1200_v0  ;;  %1168 = vmatprep.subr.bf16.mxu1 %v1200_v0  ;;  %v1205_v3 = vld [vmem:[%s2077_s1 + $0x10] ss:$8 sps:$4 sm:$0xff]   ;;  %v1206_v4 = vld [vmem:[%s2077_s1 + $0x24] ss:$8 sps:$4 sm:$0xff]   ;;  %v1208_v5 = vld [vmem:[%s2077_s1 + $0x20] ss:$8 sps:$4 sm:$0xff]  }
   0x3   :  { %396 = vmatpush1.bf16.xpose.msra.mxu0 %v1202_v1  ;;  %1184 = vmatpush1.bf16.xpose.msra.mxu1 %v1202_v1  ;;  %v1209_v6 = vld [vmem:[%s2077_s1 + $0x34] ss:$8 sps:$4 sm:$0xff]   ;;  %v1250_v7 = vld [vmem:[%s2078_s0 + $0x4] ss:$8 sps:$4 sm:$0xff]   ;;  %v1211_v8 = vld [vmem:[%s2077_s1 + $0x30] ss:$8 sps:$4 sm:$0xff]  }
   0x4   :  { %397 = vmatprep.subr.bf16.mxu0 %v1203_v2  ;;  %1169 = vmatprep.subr.bf16.mxu1 %v1203_v2  ;;  %v1253_v9 = vld [vmem:[%s2078_s0 + $0x84] ss:$8 sps:$4 sm:$0xff]   ;;  %v1214_v11 = vld [vmem:[%s2077_s1 + $0x40] ss:$8 sps:$4 sm:$0xff]   ;;  %v1215_v12 = vld [vmem:[%s2077_s1 + $0x54] ss:$8 sps:$4 sm:$0xff]  }
   0x5   :  { %v1212_v10 = vld [vmem:[%s2077_s1 + $0x44] ss:$8 sps:$4 sm:$0xff]   ;;  %427 = vmatprep.mubr.bf16.mxu0 %v1250_v7  ;;  %507 = vmatprep.mubr.bf16.mxu1 %v1253_v9  ;;  %v1217_v13 = vld [vmem:[%s2077_s1 + $0x50] ss:$8 sps:$4 sm:$0xff]   ;;  %v1220_v15 = vld [vmem:[%s2077_s1 + $0x60] ss:$8 sps:$4 sm:$0xff]  }
   0x6   :  { %v1218_v14 = vld [vmem:[%s2077_s1 + $0x64] ss:$8 sps:$4 sm:$0xff]   ;;  %v1221_v16 = vld [vmem:[%s2077_s1 + $0x74] ss:$8 sps:$4 sm:$0xff]   ;;  %v1223_v17 = vld [vmem:[%s2077_s1 + $0x70] ss:$8 sps:$4 sm:$0xff]  }
   0x7   :  { %v1224_v18 = vld [vmem:[%s2077_s1 + $0x84] ss:$8 sps:$4 sm:$0xff]   ;;  %v1226_v19 = vld [vmem:[%s2077_s1 + $0x80] ss:$8 sps:$4 sm:$0xff]   ;;  %v1227_v20 = vld [vmem:[%s2077_s1 + $0x94] ss:$8 sps:$4 sm:$0xff]  }
   0x8   :  { %v1229_v21 = vld [vmem:[%s2077_s1 + $0x90] ss:$8 sps:$4 sm:$0xff]   ;;  %v1230_v22 = vld [vmem:[%s2077_s1 + $0xa4] ss:$8 sps:$4 sm:$0xff]   ;;  %v1232_v23 = vld [vmem:[%s2077_s1 + $0xa0] ss:$8 sps:$4 sm:$0xff]  }
   0x9   :  { %v1233_v24 = vld [vmem:[%s2077_s1 + $0xb4] ss:$8 sps:$4 sm:$0xff]   ;;  %v1235_v25 = vld [vmem:[%s2077_s1 + $0xb0] ss:$8 sps:$4 sm:$0xff]   ;;  %v1236_v26 = vld [vmem:[%s2077_s1 + $0xc4] ss:$8 sps:$4 sm:$0xff]  }
   0xa   :  { %v1238_v27 = vld [vmem:[%s2077_s1 + $0xc0] ss:$8 sps:$4 sm:$0xff]   ;;  %v1239_v28 = vld [vmem:[%s2077_s1 + $0xd4] ss:$8 sps:$4 sm:$0xff]   ;;  %v1241_v29 = vld [vmem:[%s2077_s1 + $0xd0] ss:$8 sps:$4 sm:$0xff]  }
   0xb   :  { %398 = vmatpush1.bf16.xpose.msra.mxu0 %v1205_v3  ;;  %1185 = vmatpush1.bf16.xpose.msra.mxu1 %v1205_v3  ;;  %v1242_v30 = vld [vmem:[%s2077_s1 + $0xe4] ss:$8 sps:$4 sm:$0xff]   ;;  %v1244_v31 = vld [vmem:[%s2077_s1 + $0xe0] ss:$8 sps:$4 sm:$0xff]   ;;  %v1245_v32 = vld [vmem:[%s2077_s1 + $0xf4] ss:$8 sps:$4 sm:$0xff]  }
   0xc   :  { %399 = vmatprep.subr.bf16.mxu0 %v1206_v4  ;;  %1170 = vmatprep.subr.bf16.mxu1 %v1206_v4  ;;  %v1247_v33 = vld [vmem:[%s2077_s1 + $0xf0] ss:$8 sps:$4 sm:$0xff]   ;;  %v1248_v34 = vld [vmem:[%s2078_s0] ss:$8 sps:$4 sm:$0xff]   ;;  %v1254_v36 = vld [vmem:[%s2078_s0 + $0x14] ss:$8 sps:$4 sm:$0xff]  }
   0xd   :  { %v1251_v35 = vld [vmem:[%s2078_s0 + $0x80] ss:$8 sps:$4 sm:$0xff]   ;;  %v1256_v37 = vld [vmem:[%s2078_s0 + $0x94] ss:$8 sps:$4 sm:$0xff]   ;;  %v1258_v38 = vld [vmem:[%s2078_s0 + $0x10] ss:$8 sps:$4 sm:$0xff]  }
   0xe   :  { %v1259_v39 = vld [vmem:[%s2078_s0 + $0x90] ss:$8 sps:$4 sm:$0xff]   ;;  %v1260_v40 = vld [vmem:[%s2078_s0 + $0x24] ss:$8 sps:$4 sm:$0xff]   ;;  %v1264_v42 = vld [vmem:[%s2078_s0 + $0x20] ss:$8 sps:$4 sm:$0xff]  }
   0xf   :  { %v1262_v41 = vld [vmem:[%s2078_s0 + $0xa4] ss:$8 sps:$4 sm:$0xff]   ;;  %v1265_v43 = vld [vmem:[%s2078_s0 + $0xa0] ss:$8 sps:$4 sm:$0xff]   ;;  %v1266_v44 = vld [vmem:[%s2078_s0 + $0x34] ss:$8 sps:$4 sm:$0xff]  }
  0x10   :  { %v1268_v45 = vld [vmem:[%s2078_s0 + $0xb4] ss:$8 sps:$4 sm:$0xff]   ;;  %v1270_v46 = vld [vmem:[%s2078_s0 + $0x30] ss:$8 sps:$4 sm:$0xff]   ;;  %v1272_v48 = vld [vmem:[%s2078_s0 + $0x44] ss:$8 sps:$4 sm:$0xff]  }
  0x11   :  { %v1271_v47 = vld [vmem:[%s2078_s0 + $0xb0] ss:$8 sps:$4 sm:$0xff]   ;;  %v1274_v49 = vld [vmem:[%s2078_s0 + $0xc4] ss:$8 sps:$4 sm:$0xff]   ;;  %v1276_v50 = vld [vmem:[%s2078_s0 + $0x40] ss:$8 sps:$4 sm:$0xff]  }
  0x12   :  { %v1277_v51 = vld [vmem:[%s2078_s0 + $0xc0] ss:$8 sps:$4 sm:$0xff]   ;;  %v1278_v52 = vld [vmem:[%s2078_s0 + $0x54] ss:$8 sps:$4 sm:$0xff]   ;;  %v1282_v54 = vld [vmem:[%s2078_s0 + $0x50] ss:$8 sps:$4 sm:$0xff]  }
  0x13   :  { %400 = vmatpush1.bf16.xpose.msra.mxu0 %v1208_v5  ;;  %1186 = vmatpush1.bf16.xpose.msra.mxu1 %v1208_v5  ;;  %v1280_v53 = vld [vmem:[%s2078_s0 + $0xd4] ss:$8 sps:$4 sm:$0xff]   ;;  %v1283_v55 = vld [vmem:[%s2078_s0 + $0xd0] ss:$8 sps:$4 sm:$0xff]   ;;  %v1284_v56 = vld [vmem:[%s2078_s0 + $0x64] ss:$8 sps:$4 sm:$0xff]  }
  0x14   :  { %401 = vmatprep.subr.bf16.mxu0 %v1209_v6  ;;  %1171 = vmatprep.subr.bf16.mxu1 %v1209_v6  ;;  %v1286_v57 = vld [vmem:[%s2078_s0 + $0xe4] ss:$8 sps:$4 sm:$0xff]   ;;  %v1288_v58 = vld [vmem:[%s2078_s0 + $0x60] ss:$8 sps:$4 sm:$0xff]   ;;  %v1290_v60 = vld [vmem:[%s2078_s0 + $0x74] ss:$8 sps:$4 sm:$0xff]  }
  0x15   :  { %v1289_v59 = vld [vmem:[%s2078_s0 + $0xe0] ss:$8 sps:$4 sm:$0xff]   ;;  %v1292_v61 = vld [vmem:[%s2078_s0 + $0xf4] ss:$8 sps:$4 sm:$0xff]   ;;  %v1294_v62 = vld [vmem:[%s2078_s0 + $0x70] ss:$8 sps:$4 sm:$0xff]  }
  0x16   :  { %v1295_v63 = vld [vmem:[%s2078_s0 + $0xf0] ss:$8 sps:$4 sm:$0xff]  }
  0x1b   :  { %402 = vmatpush1.bf16.xpose.msra.mxu0 %v1211_v8  ;;  %1187 = vmatpush1.bf16.xpose.msra.mxu1 %v1211_v8 }
  0x1c   :  { %403 = vmatprep.subr.bf16.mxu0 %v1212_v10  ;;  %1172 = vmatprep.subr.bf16.mxu1 %v1212_v10 }
  0x23   :  { %404 = vmatpush1.bf16.xpose.msra.mxu0 %v1214_v11  ;;  %1188 = vmatpush1.bf16.xpose.msra.mxu1 %v1214_v11 }
  0x24   :  { %405 = vmatprep.subr.bf16.mxu0 %v1215_v12  ;;  %1173 = vmatprep.subr.bf16.mxu1 %v1215_v12 }
  0x2b   :  { %406 = vmatpush1.bf16.xpose.msra.mxu0 %v1217_v13  ;;  %1189 = vmatpush1.bf16.xpose.msra.mxu1 %v1217_v13 }
  0x2c   :  { %407 = vmatprep.subr.bf16.mxu0 %v1218_v14  ;;  %1174 = vmatprep.subr.bf16.mxu1 %v1218_v14 }
  0x33   :  { %408 = vmatpush1.bf16.xpose.msra.mxu0 %v1220_v15  ;;  %1190 = vmatpush1.bf16.xpose.msra.mxu1 %v1220_v15 }
  0x34   :  { %409 = vmatprep.subr.bf16.mxu0 %v1221_v16  ;;  %1175 = vmatprep.subr.bf16.mxu1 %v1221_v16 }
  0x3b   :  { %410 = vmatpush1.bf16.xpose.msra.mxu0 %v1223_v17  ;;  %1191 = vmatpush1.bf16.xpose.msra.mxu1 %v1223_v17 }
  0x3c   :  { %411 = vmatprep.subr.bf16.mxu0 %v1224_v18  ;;  %1176 = vmatprep.subr.bf16.mxu1 %v1224_v18 }
  0x43   :  { %412 = vmatpush1.bf16.xpose.msra.mxu0 %v1226_v19  ;;  %1192 = vmatpush1.bf16.xpose.msra.mxu1 %v1226_v19 }
  0x44   :  { %413 = vmatprep.subr.bf16.mxu0 %v1227_v20  ;;  %1177 = vmatprep.subr.bf16.mxu1 %v1227_v20 }
  0x4b   :  { %414 = vmatpush1.bf16.xpose.msra.mxu0 %v1229_v21  ;;  %1193 = vmatpush1.bf16.xpose.msra.mxu1 %v1229_v21 }
  0x4c   :  { %415 = vmatprep.subr.bf16.mxu0 %v1230_v22  ;;  %1178 = vmatprep.subr.bf16.mxu1 %v1230_v22 }
  0x53   :  { %416 = vmatpush1.bf16.xpose.msra.mxu0 %v1232_v23  ;;  %1194 = vmatpush1.bf16.xpose.msra.mxu1 %v1232_v23 }
  0x54   :  { %417 = vmatprep.subr.bf16.mxu0 %v1233_v24  ;;  %1179 = vmatprep.subr.bf16.mxu1 %v1233_v24 }
  0x5b   :  { %418 = vmatpush1.bf16.xpose.msra.mxu0 %v1235_v25  ;;  %1195 = vmatpush1.bf16.xpose.msra.mxu1 %v1235_v25 }
  0x5c   :  { %419 = vmatprep.subr.bf16.mxu0 %v1236_v26  ;;  %1180 = vmatprep.subr.bf16.mxu1 %v1236_v26 }
  0x63   :  { %420 = vmatpush1.bf16.xpose.msra.mxu0 %v1238_v27  ;;  %1196 = vmatpush1.bf16.xpose.msra.mxu1 %v1238_v27 }
  0x64   :  { %421 = vmatprep.subr.bf16.mxu0 %v1239_v28  ;;  %1181 = vmatprep.subr.bf16.mxu1 %v1239_v28 }
  0x6b   :  { %422 = vmatpush1.bf16.xpose.msra.mxu0 %v1241_v29  ;;  %1197 = vmatpush1.bf16.xpose.msra.mxu1 %v1241_v29 }
  0x6c   :  { %423 = vmatprep.subr.bf16.mxu0 %v1242_v30  ;;  %1182 = vmatprep.subr.bf16.mxu1 %v1242_v30 }
  0x73   :  { %424 = vmatpush1.bf16.xpose.msra.mxu0 %v1244_v31  ;;  %1198 = vmatpush1.bf16.xpose.msra.mxu1 %v1244_v31 }
  0x74   :  { %425 = vmatprep.subr.bf16.mxu0 %v1245_v32  ;;  %1183 = vmatprep.subr.bf16.mxu1 %v1245_v32 }
  0x7b   :  { %426 = vmatpush1.bf16.xpose.msra.mxu0 %v1247_v33  ;;  %1199 = vmatpush1.bf16.xpose.msra.mxu1 %v1247_v33 }
  0x82   :  { %428 = vmatmul.mubr.bf16.vlgmr.msra.gmra.mrb[0].mxu0 %v1248_v34  ;;  %508 = vmatmul.mubr.bf16.vlgmr.msra.gmra.mrb[0].mxu1 %v1251_v35 }
  0x83   :  { %437 = vmatprep.mubr.bf16.mxu0 %v1254_v36  ;;  %517 = vmatprep.mubr.bf16.mxu1 %v1256_v37 }
  0x8a   :  { %438 = vmatmul.mubr.bf16.gmra.mrb[4].mxu0 %v1258_v38  ;;  %518 = vmatmul.mubr.bf16.gmra.mrb[4].mxu1 %v1259_v39 }
  0x8b   :  { %447 = vmatprep.mubr.bf16.mxu0 %v1260_v40  ;;  %527 = vmatprep.mubr.bf16.mxu1 %v1262_v41 }
  0x92   :  { %448 = vmatmul.mubr.bf16.gmra.mrb[8].mxu0 %v1264_v42  ;;  %528 = vmatmul.mubr.bf16.gmra.mrb[8].mxu1 %v1265_v43 }
  0x93   :  { %457 = vmatprep.mubr.bf16.mxu0 %v1266_v44  ;;  %537 = vmatprep.mubr.bf16.mxu1 %v1268_v45 }
  0x9a   :  { %458 = vmatmul.mubr.bf16.gmra.mrb[12].mxu0 %v1270_v46  ;;  %538 = vmatmul.mubr.bf16.gmra.mrb[12].mxu1 %v1271_v47 }
  0x9b   :  { %467 = vmatprep.mubr.bf16.mxu0 %v1272_v48  ;;  %547 = vmatprep.mubr.bf16.mxu1 %v1274_v49 }
  0xa2   :  { %468 = vmatmul.mubr.bf16.gmra.mrb[16].mxu0 %v1276_v50  ;;  %548 = vmatmul.mubr.bf16.gmra.mrb[16].mxu1 %v1277_v51 }
  0xa3   :  { %477 = vmatprep.mubr.bf16.mxu0 %v1278_v52  ;;  %557 = vmatprep.mubr.bf16.mxu1 %v1280_v53 }
  0xaa   :  { %478 = vmatmul.mubr.bf16.gmra.mrb[20].mxu0 %v1282_v54  ;;  %558 = vmatmul.mubr.bf16.gmra.mrb[20].mxu1 %v1283_v55 }
  0xab   :  { %487 = vmatprep.mubr.bf16.mxu0 %v1284_v56  ;;  %567 = vmatprep.mubr.bf16.mxu1 %v1286_v57 }
  0xb2   :  { %488 = vmatmul.mubr.bf16.gmra.mrb[24].mxu0 %v1288_v58  ;;  %568 = vmatmul.mubr.bf16.gmra.mrb[24].mxu1 %v1289_v59 }
  0xb3   :  { %497 = vmatprep.mubr.bf16.mxu0 %v1290_v60  ;;  %577 = vmatprep.mubr.bf16.mxu1 %v1292_v61 }
  0xba   :  { %498 = vmatmul.mubr.bf16.gmra.mrb[28].mxu0 %v1294_v62  ;;  %578 = vmatmul.mubr.bf16.gmra.mrb[28].mxu1 %v1295_v63 }
 0x155   :  { %v429_v0 = vpop.f32.mrb[0].mxu0  ;;  %v509_v1 = vpop.f32.mrb[0].mxu1 }
 0x156   :  { %v1104_v2 = vmul.f32 -1.442695, %v429_v0  ;;  %v1136_v3 = vmul.f32 -1.442695, %v509_v1  ;;  %v431_v4 = vpop.f32.mrb[1].mxu0  ;;  %v511_v5 = vpop.f32.mrb[1].mxu1 }
 0x157   :  { %v1105_v6 = vmul.f32 -1.442695, %v431_v4  ;;  %v1137_v7 = vmul.f32 -1.442695, %v511_v5  ;;  %v433_v8 = vpop.f32.mrb[2].mxu0  ;;  %v513_v9 = vpop.f32.mrb[2].mxu1 }
 0x158   :  { %1296 = vpow2.f32 %v1104_v2  ;;  %v1106_v10 = vmul.f32 -1.442695, %v433_v8  ;;  %v435_v11 = vpop.f32.mrb[3].mxu0  ;;  %v515_v12 = vpop.f32.mrb[3].mxu1  ;;  %v1138_v13 = vmul.f32 -1.442695, %v513_v9 }
 0x159   :  { %1298 = vpow2.f32 %v1136_v3  ;;  %v1107_v14 = vmul.f32 -1.442695, %v435_v11  ;;  %v1139_v15 = vmul.f32 -1.442695, %v515_v12 }
 0x15a   :  { %1300 = vpow2.f32 %v1105_v6 }
 0x15b   :  { %1302 = vpow2.f32 %v1137_v7 }
 0x15c   :  { %1304 = vpow2.f32 %v1106_v10 }
 0x15d   :  { %1306 = vpow2.f32 %v1138_v13  ;;  %v439_v16 = vpop.f32.mrb[4].mxu0  ;;  %v519_v17 = vpop.f32.mrb[4].mxu1 }
 0x15e   :  { %1308 = vpow2.f32 %v1107_v14  ;;  %v1108_v18 = vmul.f32 -1.442695, %v439_v16  ;;  %v1140_v19 = vmul.f32 -1.442695, %v519_v17  ;;  %v441_v20 = vpop.f32.mrb[5].mxu0  ;;  %v521_v21 = vpop.f32.mrb[5].mxu1 }
 0x15f   :  { %1310 = vpow2.f32 %v1139_v15  ;;  %v1109_v22 = vmul.f32 -1.442695, %v441_v20  ;;  %v1141_v23 = vmul.f32 -1.442695, %v521_v21  ;;  %v443_v24 = vpop.f32.mrb[6].mxu0  ;;  %v523_v25 = vpop.f32.mrb[6].mxu1 }
 0x160   :  { %1312 = vpow2.f32 %v1108_v18  ;;  %v1110_v26 = vmul.f32 -1.442695, %v443_v24  ;;  %v445_v27 = vpop.f32.mrb[7].mxu0  ;;  %v525_v28 = vpop.f32.mrb[7].mxu1  ;;  %v1142_v0 = vmul.f32 -1.442695, %v523_v25 }
 0x161   :  { %1314 = vpow2.f32 %v1140_v19  ;;  %v1111_v4 = vmul.f32 -1.442695, %v445_v27  ;;  %v1143_v8 = vmul.f32 -1.442695, %v525_v28 }
 0x162   :  { %v1297_v29 = vpop.eup %1296  ;;  %1316 = vpow2.f32 %v1109_v22 }
 0x163   :  { %v1299_v30 = vpop.eup %1298  ;;  %v780_v31 = vadd.f32 1.0, %v1297_v29  ;;  %1318 = vpow2.f32 %v1141_v23 }
 0x164   :  { %v1301_v32 = vpop.eup %1300  ;;  %v812_v33 = vadd.f32 1.0, %v1299_v30  ;;  %1320 = vpow2.f32 %v1110_v26 }
 0x165   :  { %v1303_v34 = vpop.eup %1302  ;;  %1322 = vrcp.f32 %v780_v31  ;;  %v781_v35 = vadd.f32 1.0, %v1301_v32  ;;  %v449_v36 = vpop.f32.mrb[8].mxu0 }
 0x166   :  { %v529_v37 = vpop.f32.mrb[8].mxu1  ;;  %v1305_v38 = vpop.eup %1304  ;;  %1324 = vrcp.f32 %v812_v33  ;;  %v813_v39 = vadd.f32 1.0, %v1303_v34  ;;  %v1112_v12 = vmul.f32 -1.442695, %v449_v36 }
 0x167   :  { %v451_v40 = vpop.f32.mrb[9].mxu0  ;;  %v1307_v41 = vpop.eup %1306  ;;  %1326 = vrcp.f32 %v781_v35  ;;  %v782_v42 = vadd.f32 1.0, %v1305_v38  ;;  %v1144_v15 = vmul.f32 -1.442695, %v529_v37 }
 0x168   :  { %v531_v43 = vpop.f32.mrb[9].mxu1  ;;  %v453_v44 = vpop.f32.mrb[10].mxu0  ;;  %1328 = vrcp.f32 %v813_v39  ;;  %v814_v46 = vadd.f32 1.0, %v1307_v41  ;;  %v1113_v17 = vmul.f32 -1.442695, %v451_v40 }
 0x169   :  { %v1309_v45 = vpop.eup %1308  ;;  %v1759_v47 = vpop.f32.mrb[10].mxu1  ;;  %1330 = vrcp.f32 %v782_v42  ;;  %v1145_v19 = vmul.f32 -1.442695, %v531_v43  ;;  %v1114_v21 = vmul.f32 -1.442695, %v453_v44 }
 0x16a   :  { %v1311_v48 = vpop.eup %1310  ;;  %v783_v49 = vadd.f32 1.0, %v1309_v45  ;;  %v1761_v50 = vpop.f32.mrb[11].mxu0  ;;  %1332 = vrcp.f32 %v814_v46  ;;  %v1146_v25 = vmul.f32 -1.442695, %v1759_v47 }
 0x16b   :  { %v1763_v51 = vpop.f32.mrb[11].mxu1  ;;  %v1313_v52 = vpop.eup %1312  ;;  %v815_v53 = vadd.f32 1.0, %v1311_v48  ;;  %v1115_v29 = vmul.f32 -1.442695, %v1761_v50 }
 0x16c   :  { %v1315_v54 = vpop.eup %1314  ;;  %1334 = vrcp.f32 %v783_v49  ;;  %v784_v55 = vadd.f32 1.0, %v1313_v52  ;;  %v1147_v33 = vmul.f32 -1.442695, %v1763_v51 }
 0x16d   :  { %v1317_v56 = vpop.eup %1316  ;;  %1336 = vrcp.f32 %v815_v53  ;;  %v816_v57 = vadd.f32 1.0, %v1315_v54  ;;  %v459_v60 = vpop.f32.mrb[12].mxu0 }
 0x16e   :  { %v1319_v58 = vpop.eup %1318  ;;  %1338 = vrcp.f32 %v784_v55  ;;  %v785_v59 = vadd.f32 1.0, %v1317_v56  ;;  %v1765_v61 = vpop.f32.mrb[12].mxu1  ;;  %v1116_v37 = vmul.f32 -1.442695, %v459_v60 }
 0x16f   :  { %v1321_v62 = vpop.eup %1320  ;;  %1340 = vrcp.f32 %v816_v57  ;;  %v817_v63 = vadd.f32 1.0, %v1319_v58  ;;  %v1767_v1 = vpop.f32.mrb[13].mxu0  ;;  %v1148_v39 = vmul.f32 -1.442695, %v1765_v61 }
 0x170   :  { %v1323_v2 = vpop.eup %1322  ;;  %1342 = vrcp.f32 %v785_v59  ;;  %v786_v3 = vadd.f32 1.0, %v1321_v62  ;;  %v1769_v5 = vpop.f32.mrb[13].mxu1 }
 0x171   :  { %v1771_v6 = vpop.f32.mrb[14].mxu0  ;;  %v1325_v7 = vpop.eup %1324  ;;  %972 = vst [vmem:[%s2079_s2] sm:$0xff] %v1323_v2  ;;  %1344 = vrcp.f32 %v817_v63 }
 0x172   :  { %v1776_v9 = vpop.f32.mrb[14].mxu1  ;;  %v1778_v10 = vpop.f32.mrb[15].mxu0  ;;  %1004 = vst [vmem:[%s2079_s2 + $0x100] sm:$0xff] %v1325_v7  ;;  %1346 = vrcp.f32 %v786_v3 }
 0x173   :  { %v1327_v11 = vpop.eup %1326  ;;  %v1783_v13 = vpop.f32.mrb[15].mxu1  ;;  %1348 = vpow2.f32 %v1142_v0 }
 0x174   :  { %v1329_v14 = vpop.eup %1328  ;;  %973 = vst [vmem:[%s2079_s2 + $0x8] sm:$0xff] %v1327_v11  ;;  %1350 = vpow2.f32 %v1111_v4 }
 0x175   :  { %v1331_v16 = vpop.eup %1330  ;;  %1005 = vst [vmem:[%s2079_s2 + $0x108] sm:$0xff] %v1329_v14  ;;  %1352 = vpow2.f32 %v1143_v8  ;;  %v1797_v22 = vpop.f32.mrb[16].mxu0 }
 0x176   :  { %v1333_v18 = vpop.eup %1332  ;;  %974 = vst [vmem:[%s2079_s2 + $0x10] sm:$0xff] %v1331_v16  ;;  %1354 = vpow2.f32 %v1112_v12  ;;  %v1799_v23 = vpop.f32.mrb[16].mxu1 }
 0x177   :  { %v1335_v20 = vpop.eup %1334  ;;  %1006 = vst [vmem:[%s2079_s2 + $0x110] sm:$0xff] %v1333_v18  ;;  %1356 = vpow2.f32 %v1144_v15  ;;  %v1805_v26 = vpop.f32.mrb[17].mxu0 }
 0x178   :  { %v1337_v24 = vpop.eup %1336  ;;  %975 = vst [vmem:[%s2079_s2 + $0x18] sm:$0xff] %v1335_v20  ;;  %v1807_v27 = vpop.f32.mrb[17].mxu1  ;;  %1358 = vpow2.f32 %v1113_v17 }
 0x179   :  { %v1339_v28 = vpop.eup %1338  ;;  %1007 = vst [vmem:[%s2079_s2 + $0x118] sm:$0xff] %v1337_v24  ;;  %v1813_v30 = vpop.f32.mrb[18].mxu0  ;;  %1360 = vpow2.f32 %v1145_v19 }
 0x17a   :  { %v1815_v31 = vpop.f32.mrb[18].mxu1  ;;  %v1341_v32 = vpop.eup %1340  ;;  %976 = vst [vmem:[%s2079_s2 + $0x20] sm:$0xff] %v1339_v28  ;;  %1362 = vpow2.f32 %v1114_v21  ;;  %v1117_v21 = vmul.f32 -1.442695, %v1767_v1 }
 0x17b   :  { %v1821_v34 = vpop.f32.mrb[19].mxu0  ;;  %v1823_v35 = vpop.f32.mrb[19].mxu1  ;;  %1008 = vst [vmem:[%s2079_s2 + $0x120] sm:$0xff] %v1341_v32  ;;  %1364 = vpow2.f32 %v1146_v25 }
 0x17c   :  { %v1343_v36 = vpop.eup %1342  ;;  %1366 = vpow2.f32 %v1115_v29  ;;  %v1149_v29 = vmul.f32 -1.442695, %v1769_v5  ;;  %v1150_v5 = vmul.f32 -1.442695, %v1776_v9 }
 0x17d   :  { %v1345_v38 = vpop.eup %1344  ;;  %977 = vst [vmem:[%s2079_s2 + $0x28] sm:$0xff] %v1343_v36  ;;  %1368 = vpow2.f32 %v1147_v33  ;;  %v1838_v44 = vpop.f32.mrb[20].mxu0 }
 0x17e   :  { %v1347_v40 = vpop.eup %1346  ;;  %1009 = vst [vmem:[%s2079_s2 + $0x128] sm:$0xff] %v1345_v38  ;;  %1370 = vpow2.f32 %v1116_v37  ;;  %v1840_v45 = vpop.f32.mrb[20].mxu1  ;;  %v1118_v37 = vmul.f32 -1.442695, %v1771_v6  ;;  %v1151_v6 = vmul.f32 -1.442695, %v1783_v13 }
 0x17f   :  { %v1349_v41 = vpop.eup %1348  ;;  %978 = vst [vmem:[%s2079_s2 + $0x30] sm:$0xff] %v1347_v40  ;;  %1372 = vpow2.f32 %v1148_v39  ;;  %v1842_v48 = vpop.f32.mrb[21].mxu0  ;;  %v1119_v39 = vmul.f32 -1.442695, %v1778_v10  ;;  %v1120_v10 = vmul.f32 -1.442695, %v1797_v22 }
 0x180   :  { %v1351_v42 = vpop.eup %1350  ;;  %v818_v43 = vadd.f32 1.0, %v1349_v41  ;;  %v1844_v51 = vpop.f32.mrb[21].mxu1  ;;  %v1152_v13 = vmul.f32 -1.442695, %v1799_v23  ;;  %v1121_v22 = vmul.f32 -1.442695, %v1805_v26 }
 0x181   :  { %v1353_v46 = vpop.eup %1352  ;;  %v787_v47 = vadd.f32 1.0, %v1351_v42  ;;  %v1846_v52 = vpop.f32.mrb[22].mxu0  ;;  %v1153_v23 = vmul.f32 -1.442695, %v1807_v27  ;;  %v1122_v26 = vmul.f32 -1.442695, %v1813_v30 }
 0x182   :  { %v1355_v49 = vpop.eup %1354  ;;  %1374 = vrcp.f32 %v818_v43  ;;  %v819_v50 = vadd.f32 1.0, %v1353_v46  ;;  %v1848_v55 = vpop.f32.mrb[22].mxu1  ;;  %v1123_v27 = vmul.f32 -1.442695, %v1821_v34 }
 0x183   :  { %v1357_v53 = vpop.eup %1356  ;;  %1376 = vrcp.f32 %v787_v47  ;;  %v788_v54 = vadd.f32 1.0, %v1355_v49  ;;  %v1850_v58 = vpop.f32.mrb[23].mxu0 }
 0x184   :  { %v1359_v56 = vpop.eup %1358  ;;  %1378 = vrcp.f32 %v819_v50  ;;  %v820_v57 = vadd.f32 1.0, %v1357_v53  ;;  %v1852_v59 = vpop.f32.mrb[23].mxu1 }
 0x185   :  { %v1361_v60 = vpop.eup %1360  ;;  %1380 = vrcp.f32 %v788_v54  ;;  %v789_v61 = vadd.f32 1.0, %v1359_v56  ;;  %v1854_v7 = vpop.f32.mrb[24].mxu0 }
 0x186   :  { %v1363_v62 = vpop.eup %1362  ;;  %1382 = vrcp.f32 %v820_v57  ;;  %v821_v63 = vadd.f32 1.0, %v1361_v60  ;;  %v1856_v8 = vpop.f32.mrb[24].mxu1 }
 0x187   :  { %v1365_v0 = vpop.eup %1364  ;;  %1384 = vrcp.f32 %v789_v61  ;;  %v790_v2 = vadd.f32 1.0, %v1363_v62  ;;  %v1858_v14 = vpop.f32.mrb[25].mxu0  ;;  %v1154_v62 = vmul.f32 -1.442695, %v1815_v31 }
 0x188   :  { %v1367_v3 = vpop.eup %1366  ;;  %1386 = vrcp.f32 %v821_v63  ;;  %v822_v4 = vadd.f32 1.0, %v1365_v0  ;;  %v1860_v17 = vpop.f32.mrb[25].mxu1 }
 0x189   :  { %v1369_v11 = vpop.eup %1368  ;;  %1388 = vrcp.f32 %v790_v2  ;;  %v791_v12 = vadd.f32 1.0, %v1367_v3  ;;  %v1862_v18 = vpop.f32.mrb[26].mxu0 }
 0x18a   :  { %v1371_v15 = vpop.eup %1370  ;;  %1390 = vrcp.f32 %v822_v4  ;;  %v823_v16 = vadd.f32 1.0, %v1369_v11  ;;  %v1865_v24 = vpop.f32.mrb[26].mxu1 }
 0x18b   :  { %v1373_v19 = vpop.eup %1372  ;;  %1392 = vrcp.f32 %v791_v12  ;;  %v792_v20 = vadd.f32 1.0, %v1371_v15  ;;  %v1868_v32 = vpop.f32.mrb[27].mxu0 }
 0x18c   :  { %v1375_v25 = vpop.eup %1374  ;;  %1394 = vrcp.f32 %v823_v16  ;;  %v824_v28 = vadd.f32 1.0, %v1373_v19  ;;  %v1870_v33 = vpop.f32.mrb[27].mxu1 }
 0x18d   :  { %v1377_v36 = vpop.eup %1376  ;;  %1010 = vst [vmem:[%s2079_s2 + $0x130] sm:$0xff] %v1375_v25  ;;  %1396 = vrcp.f32 %v792_v20  ;;  %v1888_v41 = vpop.f32.mrb[28].mxu0 }
 0x18e   :  { %v1379_v1 = vpop.eup %1378  ;;  %979 = vst [vmem:[%s2079_s2 + $0x38] sm:$0xff] %v1377_v36  ;;  %1398 = vrcp.f32 %v824_v28  ;;  %v1890_v42 = vpop.f32.mrb[28].mxu1 }
 0x18f   :  { %v1381_v38 = vpop.eup %1380  ;;  %1011 = vst [vmem:[%s2079_s2 + $0x138] sm:$0xff] %v1379_v1  ;;  %1400 = vpow2.f32 %v1117_v21  ;;  %v1896_v43 = vpop.f32.mrb[29].mxu0 }
 0x190   :  { %v1383_v40 = vpop.eup %1382  ;;  %980 = vst [vmem:[%s2079_s2 + $0x40] sm:$0xff] %v1381_v38  ;;  %1402 = vpow2.f32 %v1149_v29  ;;  %v1898_v46 = vpop.f32.mrb[29].mxu1 }
 0x191   :  { %v1385_v9 = vpop.eup %1384  ;;  %1012 = vst [vmem:[%s2079_s2 + $0x140] sm:$0xff] %v1383_v40  ;;  %1404 = vpow2.f32 %v1118_v37  ;;  %v1904_v49 = vpop.f32.mrb[30].mxu0 }
 0x192   :  { %v1387_v47 = vpop.eup %1386  ;;  %981 = vst [vmem:[%s2079_s2 + $0x48] sm:$0xff] %v1385_v9  ;;  %1406 = vpow2.f32 %v1150_v5  ;;  %v1906_v50 = vpop.f32.mrb[30].mxu1 }
 0x193   :  { %v1389_v53 = vpop.eup %1388  ;;  %1013 = vst [vmem:[%s2079_s2 + $0x148] sm:$0xff] %v1387_v47  ;;  %1408 = vpow2.f32 %v1119_v39  ;;  %v1912_v54 = vpop.f32.mrb[31].mxu0 }
 0x194   :  { %v1914_v56 = vpop.f32.mrb[31].mxu1  ;;  %v1391_v57 = vpop.eup %1390  ;;  %982 = vst [vmem:[%s2079_s2 + $0x50] sm:$0xff] %v1389_v53  ;;  %1410 = vpow2.f32 %v1151_v6  ;;  %v1124_v53 = vmul.f32 -1.442695, %v1838_v44  ;;  %v1157_v44 = vmul.f32 -1.442695, %v1844_v51 }
 0x195   :  { %v1393_v60 = vpop.eup %1392  ;;  %1014 = vst [vmem:[%s2079_s2 + $0x150] sm:$0xff] %v1391_v57  ;;  %1412 = vpow2.f32 %v1120_v10  ;;  %v1155_v10 = vmul.f32 -1.442695, %v1823_v35  ;;  %v1156_v57 = vmul.f32 -1.442695, %v1840_v45 }
 0x196   :  { %v1395_v61 = vpop.eup %1394  ;;  %983 = vst [vmem:[%s2079_s2 + $0x58] sm:$0xff] %v1393_v60  ;;  %1414 = vpow2.f32 %v1152_v13  ;;  %v1125_v35 = vmul.f32 -1.442695, %v1842_v48  ;;  %v1126_v45 = vmul.f32 -1.442695, %v1846_v52 }
 0x197   :  { %v1397_v63 = vpop.eup %1396  ;;  %1015 = vst [vmem:[%s2079_s2 + $0x158] sm:$0xff] %v1395_v61  ;;  %1416 = vpow2.f32 %v1121_v22  ;;  %v1158_v48 = vmul.f32 -1.442695, %v1848_v55  ;;  %v1127_v51 = vmul.f32 -1.442695, %v1850_v58 }
 0x198   :  { %v1399_v0 = vpop.eup %1398  ;;  %984 = vst [vmem:[%s2079_s2 + $0x60] sm:$0xff] %v1397_v63  ;;  %1418 = vpow2.f32 %v1153_v23  ;;  %v1159_v52 = vmul.f32 -1.442695, %v1852_v59  ;;  %v1128_v55 = vmul.f32 -1.442695, %v1854_v7 }
 0x199   :  { %v1401_v30 = vpop.eup %1400  ;;  %1016 = vst [vmem:[%s2079_s2 + $0x160] sm:$0xff] %v1399_v0  ;;  %1420 = vpow2.f32 %v1122_v26  ;;  %v1160_v58 = vmul.f32 -1.442695, %v1856_v8  ;;  %v1129_v59 = vmul.f32 -1.442695, %v1858_v14 }
 0x19a   :  { %v1403_v31 = vpop.eup %1402  ;;  %v793_v2 = vadd.f32 1.0, %v1401_v30  ;;  %1422 = vpow2.f32 %v1154_v62  ;;  %v1161_v7 = vmul.f32 -1.442695, %v1860_v17 }
 0x19b   :  { %v1405_v3 = vpop.eup %1404  ;;  %v825_v4 = vadd.f32 1.0, %v1403_v31  ;;  %1424 = vpow2.f32 %v1123_v27 }
 0x19c   :  { %v1407_v11 = vpop.eup %1406  ;;  %1426 = vrcp.f32 %v793_v2  ;;  %v794_v34 = vadd.f32 1.0, %v1405_v3 }
 0x19d   :  { %v1409_v12 = vpop.eup %1408  ;;  %1428 = vrcp.f32 %v825_v4  ;;  %v826_v15 = vadd.f32 1.0, %v1407_v11 }
 0x19e   :  { %v1411_v16 = vpop.eup %1410  ;;  %1430 = vrcp.f32 %v794_v34  ;;  %v795_v19 = vadd.f32 1.0, %v1409_v12 }
 0x19f   :  { %v1413_v20 = vpop.eup %1412  ;;  %1432 = vrcp.f32 %v826_v15  ;;  %v827_v21 = vadd.f32 1.0, %v1411_v16 }
 0x1a0   :  { %v1415_v25 = vpop.eup %1414  ;;  %1434 = vrcp.f32 %v795_v19  ;;  %v796_v28 = vadd.f32 1.0, %v1413_v20 }
 0x1a1   :  { %v1417_v29 = vpop.eup %1416  ;;  %1436 = vrcp.f32 %v827_v21  ;;  %v828_v36 = vadd.f32 1.0, %v1415_v25 }
 0x1a2   :  { %v1419_v37 = vpop.eup %1418  ;;  %1438 = vrcp.f32 %v796_v28  ;;  %v797_v1 = vadd.f32 1.0, %v1417_v29 }
 0x1a3   :  { %v1421_v5 = vpop.eup %1420  ;;  %1440 = vrcp.f32 %v828_v36  ;;  %v829_v38 = vadd.f32 1.0, %v1419_v37 }
 0x1a4   :  { %v1423_v39 = vpop.eup %1422  ;;  %1442 = vrcp.f32 %v797_v1  ;;  %v798_v40 = vadd.f32 1.0, %v1421_v5 }
 0x1a5   :  { %v1425_v6 = vpop.eup %1424  ;;  %1444 = vrcp.f32 %v829_v38  ;;  %v830_v9 = vadd.f32 1.0, %v1423_v39 }
 0x1a6   :  { %v1427_v47 = vpop.eup %1426  ;;  %1446 = vrcp.f32 %v798_v40  ;;  %v799_v13 = vadd.f32 1.0, %v1425_v6 }
 0x1a7   :  { %v1429_v22 = vpop.eup %1428  ;;  %985 = vst [vmem:[%s2079_s2 + $0x68] sm:$0xff] %v1427_v47  ;;  %1448 = vrcp.f32 %v830_v9 }
 0x1a8   :  { %v1431_v23 = vpop.eup %1430  ;;  %1017 = vst [vmem:[%s2079_s2 + $0x168] sm:$0xff] %v1429_v22  ;;  %1450 = vrcp.f32 %v799_v13 }
 0x1a9   :  { %v1433_v60 = vpop.eup %1432  ;;  %986 = vst [vmem:[%s2079_s2 + $0x70] sm:$0xff] %v1431_v23  ;;  %1452 = vpow2.f32 %v1155_v10  ;;  %v1130_v10 = vmul.f32 -1.442695, %v1862_v18  ;;  %v1163_v18 = vmul.f32 -1.442695, %v1870_v33 }
 0x1aa   :  { %v1435_v26 = vpop.eup %1434  ;;  %1018 = vst [vmem:[%s2079_s2 + $0x170] sm:$0xff] %v1433_v60  ;;  %1454 = vpow2.f32 %v1124_v53  ;;  %v1162_v53 = vmul.f32 -1.442695, %v1865_v24  ;;  %v1132_v24 = vmul.f32 -1.442695, %v1888_v41 }
 0x1ab   :  { %v1437_v61 = vpop.eup %1436  ;;  %987 = vst [vmem:[%s2079_s2 + $0x78] sm:$0xff] %v1435_v26  ;;  %1456 = vpow2.f32 %v1156_v57  ;;  %v1131_v57 = vmul.f32 -1.442695, %v1868_v32  ;;  %v1164_v32 = vmul.f32 -1.442695, %v1890_v42 }
 0x1ac   :  { %v1439_v62 = vpop.eup %1438  ;;  %1019 = vst [vmem:[%s2079_s2 + $0x178] sm:$0xff] %v1437_v61  ;;  %1458 = vpow2.f32 %v1125_v35  ;;  %v1133_v33 = vmul.f32 -1.442695, %v1896_v43  ;;  %v1165_v41 = vmul.f32 -1.442695, %v1898_v46 }
 0x1ad   :  { %v1441_v63 = vpop.eup %1440  ;;  %988 = vst [vmem:[%s2079_s2 + $0x80] sm:$0xff] %v1439_v62  ;;  %1460 = vpow2.f32 %v1157_v44  ;;  %v1134_v42 = vmul.f32 -1.442695, %v1904_v49  ;;  %v1166_v43 = vmul.f32 -1.442695, %v1906_v50 }
 0x1ae   :  { %v1443_v27 = vpop.eup %1442  ;;  %1020 = vst [vmem:[%s2079_s2 + $0x180] sm:$0xff] %v1441_v63  ;;  %1462 = vpow2.f32 %v1126_v45  ;;  %v1135_v46 = vmul.f32 -1.442695, %v1912_v54  ;;  %v1167_v49 = vmul.f32 -1.442695, %v1914_v56 }
 0x1af   :  { %v1445_v0 = vpop.eup %1444  ;;  %989 = vst [vmem:[%s2079_s2 + $0x88] sm:$0xff] %v1443_v27  ;;  %1464 = vpow2.f32 %v1158_v48 }
 0x1b0   :  { %v1447_v30 = vpop.eup %1446  ;;  %1021 = vst [vmem:[%s2079_s2 + $0x188] sm:$0xff] %v1445_v0  ;;  %1466 = vpow2.f32 %v1127_v51 }
 0x1b1   :  { %v1449_v31 = vpop.eup %1448  ;;  %990 = vst [vmem:[%s2079_s2 + $0x90] sm:$0xff] %v1447_v30  ;;  %1468 = vpow2.f32 %v1159_v52 }
 0x1b2   :  { %v1451_v2 = vpop.eup %1450  ;;  %1022 = vst [vmem:[%s2079_s2 + $0x190] sm:$0xff] %v1449_v31  ;;  %1470 = vpow2.f32 %v1128_v55 }
 0x1b3   :  { %v1453_v8 = vpop.eup %1452  ;;  %991 = vst [vmem:[%s2079_s2 + $0x98] sm:$0xff] %v1451_v2  ;;  %1472 = vpow2.f32 %v1160_v58 }
 0x1b4   :  { %v1455_v14 = vpop.eup %1454  ;;  %v831_v3 = vadd.f32 1.0, %v1453_v8  ;;  %1474 = vpow2.f32 %v1129_v59 }
 0x1b5   :  { %v1457_v4 = vpop.eup %1456  ;;  %v800_v11 = vadd.f32 1.0, %v1455_v14  ;;  %1476 = vpow2.f32 %v1161_v7 }
 0x1b6   :  { %v1459_v34 = vpop.eup %1458  ;;  %1478 = vrcp.f32 %v831_v3  ;;  %v832_v17 = vadd.f32 1.0, %v1457_v4 }
 0x1b7   :  { %v1461_v12 = vpop.eup %1460  ;;  %1480 = vrcp.f32 %v800_v11  ;;  %v801_v15 = vadd.f32 1.0, %v1459_v34 }
 0x1b8   :  { %v1463_v16 = vpop.eup %1462  ;;  %1482 = vrcp.f32 %v832_v17  ;;  %v833_v19 = vadd.f32 1.0, %v1461_v12 }
 0x1b9   :  { %v1465_v20 = vpop.eup %1464  ;;  %1484 = vrcp.f32 %v801_v15  ;;  %v802_v21 = vadd.f32 1.0, %v1463_v16 }
 0x1ba   :  { %v1467_v25 = vpop.eup %1466  ;;  %1486 = vrcp.f32 %v833_v19  ;;  %v834_v28 = vadd.f32 1.0, %v1465_v20 }
 0x1bb   :  { %v1469_v29 = vpop.eup %1468  ;;  %1488 = vrcp.f32 %v802_v21  ;;  %v803_v36 = vadd.f32 1.0, %v1467_v25 }
 0x1bc   :  { %v1471_v37 = vpop.eup %1470  ;;  %1490 = vrcp.f32 %v834_v28  ;;  %v835_v1 = vadd.f32 1.0, %v1469_v29 }
 0x1bd   :  { %v1473_v5 = vpop.eup %1472  ;;  %1492 = vrcp.f32 %v803_v36  ;;  %v804_v38 = vadd.f32 1.0, %v1471_v37 }
 0x1be   :  { %v1475_v39 = vpop.eup %1474  ;;  %1494 = vrcp.f32 %v835_v1  ;;  %v836_v40 = vadd.f32 1.0, %v1473_v5 }
 0x1bf   :  { %v1477_v6 = vpop.eup %1476  ;;  %1496 = vrcp.f32 %v804_v38  ;;  %v805_v9 = vadd.f32 1.0, %v1475_v39 }
 0x1c0   :  { %v1479_v47 = vpop.eup %1478  ;;  %1498 = vrcp.f32 %v836_v40  ;;  %v837_v13 = vadd.f32 1.0, %v1477_v6 }
 0x1c1   :  { %v1481_v22 = vpop.eup %1480  ;;  %1023 = vst [vmem:[%s2079_s2 + $0x198] sm:$0xff] %v1479_v47  ;;  %1500 = vrcp.f32 %v805_v9 }
 0x1c2   :  { %v1483_v23 = vpop.eup %1482  ;;  %992 = vst [vmem:[%s2079_s2 + $0xa0] sm:$0xff] %v1481_v22  ;;  %1502 = vrcp.f32 %v837_v13 }
 0x1c3   :  { %v1485_v35 = vpop.eup %1484  ;;  %1024 = vst [vmem:[%s2079_s2 + $0x1a0] sm:$0xff] %v1483_v23  ;;  %1504 = vpow2.f32 %v1130_v10 }
 0x1c4   :  { %v1487_v60 = vpop.eup %1486  ;;  %993 = vst [vmem:[%s2079_s2 + $0xa8] sm:$0xff] %v1485_v35  ;;  %1506 = vpow2.f32 %v1162_v53 }
 0x1c5   :  { %v1489_v44 = vpop.eup %1488  ;;  %1025 = vst [vmem:[%s2079_s2 + $0x1a8] sm:$0xff] %v1487_v60  ;;  %1508 = vpow2.f32 %v1131_v57 }
 0x1c6   :  { %v1491_v26 = vpop.eup %1490  ;;  %994 = vst [vmem:[%s2079_s2 + $0xb0] sm:$0xff] %v1489_v44  ;;  %1510 = vpow2.f32 %v1163_v18 }
 0x1c7   :  { %v1493_v45 = vpop.eup %1492  ;;  %1026 = vst [vmem:[%s2079_s2 + $0x1b0] sm:$0xff] %v1491_v26  ;;  %1512 = vpow2.f32 %v1132_v24 }
 0x1c8   :  { %v1495_v61 = vpop.eup %1494  ;;  %995 = vst [vmem:[%s2079_s2 + $0xb8] sm:$0xff] %v1493_v45  ;;  %1514 = vpow2.f32 %v1164_v32 }
 0x1c9   :  { %v1497_v48 = vpop.eup %1496  ;;  %1027 = vst [vmem:[%s2079_s2 + $0x1b8] sm:$0xff] %v1495_v61  ;;  %1516 = vpow2.f32 %v1133_v33 }
 0x1ca   :  { %v1499_v62 = vpop.eup %1498  ;;  %996 = vst [vmem:[%s2079_s2 + $0xc0] sm:$0xff] %v1497_v48  ;;  %1518 = vpow2.f32 %v1165_v41 }
 0x1cb   :  { %v1501_v51 = vpop.eup %1500  ;;  %1028 = vst [vmem:[%s2079_s2 + $0x1c0] sm:$0xff] %v1499_v62  ;;  %1520 = vpow2.f32 %v1134_v42 }
 0x1cc   :  { %v1503_v50 = vpop.eup %1502  ;;  %997 = vst [vmem:[%s2079_s2 + $0xc8] sm:$0xff] %v1501_v51  ;;  %1522 = vpow2.f32 %v1166_v43 }
 0x1cd   :  { %v1505_v54 = vpop.eup %1504  ;;  %1029 = vst [vmem:[%s2079_s2 + $0x1c8] sm:$0xff] %v1503_v50  ;;  %1524 = vpow2.f32 %v1135_v46 }
 0x1ce   :  { %v1507_v63 = vpop.eup %1506  ;;  %v806_v56 = vadd.f32 1.0, %v1505_v54  ;;  %1526 = vpow2.f32 %v1167_v49 }
 0x1cf   :  { %v1509_v52 = vpop.eup %1508  ;;  %v838_v27 = vadd.f32 1.0, %v1507_v63 }
 0x1d0   :  { %v1511_v55 = vpop.eup %1510  ;;  %1528 = vrcp.f32 %v806_v56  ;;  %v807_v0 = vadd.f32 1.0, %v1509_v52 }
 0x1d1   :  { %v1513_v58 = vpop.eup %1512  ;;  %1530 = vrcp.f32 %v838_v27  ;;  %v839_v30 = vadd.f32 1.0, %v1511_v55 }
 0x1d2   :  { %v1515_v59 = vpop.eup %1514  ;;  %1532 = vrcp.f32 %v807_v0  ;;  %v808_v31 = vadd.f32 1.0, %v1513_v58 }
 0x1d3   :  { %v1517_v7 = vpop.eup %1516  ;;  %1534 = vrcp.f32 %v839_v30  ;;  %v840_v2 = vadd.f32 1.0, %v1515_v59 }
 0x1d4   :  { %v1519_v8 = vpop.eup %1518  ;;  %1536 = vrcp.f32 %v808_v31  ;;  %v809_v14 = vadd.f32 1.0, %v1517_v7 }
 0x1d5   :  { %v1521_v3 = vpop.eup %1520  ;;  %1538 = vrcp.f32 %v840_v2  ;;  %v841_v4 = vadd.f32 1.0, %v1519_v8 }
 0x1d6   :  { %v1523_v11 = vpop.eup %1522  ;;  %1540 = vrcp.f32 %v809_v14  ;;  %v810_v34 = vadd.f32 1.0, %v1521_v3 }
 0x1d7   :  { %v1525_v17 = vpop.eup %1524  ;;  %1542 = vrcp.f32 %v841_v4  ;;  %v842_v12 = vadd.f32 1.0, %v1523_v11 }
 0x1d8   :  { %v1527_v15 = vpop.eup %1526  ;;  %1544 = vrcp.f32 %v810_v34  ;;  %v811_v16 = vadd.f32 1.0, %v1525_v17 }
 0x1d9   :  { %1546 = vrcp.f32 %v842_v12  ;;  %v843_v19 = vadd.f32 1.0, %v1527_v15 }
 0x1da   :  { %v1529_v20 = vpop.eup %1528  ;;  %1548 = vrcp.f32 %v811_v16 }
 0x1db   :  { %v1531_v21 = vpop.eup %1530  ;;  %998 = vst [vmem:[%s2079_s2 + $0xd0] sm:$0xff] %v1529_v20  ;;  %1550 = vrcp.f32 %v843_v19 }
 0x1dc   :  { %v1533_v25 = vpop.eup %1532  ;;  %1030 = vst [vmem:[%s2079_s2 + $0x1d0] sm:$0xff] %v1531_v21 }
 0x1dd   :  { %v1535_v28 = vpop.eup %1534  ;;  %999 = vst [vmem:[%s2079_s2 + $0xd8] sm:$0xff] %v1533_v25 }
 0x1de   :  { %v1537_v29 = vpop.eup %1536  ;;  %1031 = vst [vmem:[%s2079_s2 + $0x1d8] sm:$0xff] %v1535_v28 }
 0x1df   :  { %v1539_v36 = vpop.eup %1538  ;;  %1000 = vst [vmem:[%s2079_s2 + $0xe0] sm:$0xff] %v1537_v29 }
 0x1e0   :  { %v1541_v37 = vpop.eup %1540  ;;  %1032 = vst [vmem:[%s2079_s2 + $0x1e0] sm:$0xff] %v1539_v36 }
 0x1e1   :  { %v1543_v1 = vpop.eup %1542  ;;  %1001 = vst [vmem:[%s2079_s2 + $0xe8] sm:$0xff] %v1541_v37 }
 0x1e2   :  { %v1545_v5 = vpop.eup %1544  ;;  %1033 = vst [vmem:[%s2079_s2 + $0x1e8] sm:$0xff] %v1543_v1 }
 0x1e3   :  { %v1547_v38 = vpop.eup %1546  ;;  %1002 = vst [vmem:[%s2079_s2 + $0xf0] sm:$0xff] %v1545_v5 }
 0x1e4   :  { %v1549_v39 = vpop.eup %1548  ;;  %1034 = vst [vmem:[%s2079_s2 + $0x1f0] sm:$0xff] %v1547_v38 }
 0x1e5   :  { %v1551_v40 = vpop.eup %1550  ;;  %1003 = vst [vmem:[%s2079_s2 + $0xf8] sm:$0xff] %v1549_v39 }
 0x1e6   :  { %1035 = vst [vmem:[%s2079_s2 + $0x1f8] sm:$0xff] %v1551_v40 }

</bundles_post_ra>
